<compile_context>
chip_gen: v7x
topology: tpu7x:2x2x1
jax: 0.10.0
libtpu: 0.0.40
codegen_flags: <defaults>
</compile_context>

<pallas_src>
import functools
import math

import jax
import jax.numpy as jnp
from jax import lax
from jax.experimental import pallas as pl
from jax.experimental.pallas import tpu as pltpu


def yblock_kernel(x_ref, wqkv_ref, bqkv_ref, w1_ref, b1_ref, w2_ref, vecs_ref,
                  o_ref, *, ncols, seq, nhead):
    """One grid step = `ncols` whole (batch, column) pairs = (ncols*seq, C) rows."""
    R, C = x_ref.shape
    dh = C // nhead
    scale = 1.0 / math.sqrt(C / nhead)      # matches torch: / sqrt(ninp / nhead)
    eps = 1e-5

    x = x_ref[...]                           # (R, C) float32
    vecs = vecs_ref[...]                     # (5, C): g1, be1, bl2, g2, be2
    g1, be1, bl2, g2, be2 = (vecs[i:i + 1, :] for i in range(5))

    # --- fused QKV projection: one bf16 MXU matmul, f32 accumulation ---------
    qkv = jnp.dot(x.astype(jnp.bfloat16), wqkv_ref[...],
                  preferred_element_type=jnp.float32) + bqkv_ref[...]
    q = qkv[:, 0 * C:1 * C]
    k = qkv[:, 1 * C:2 * C]
    v = qkv[:, 2 * C:3 * C]

    # --- multi-head attention over the seq axis, batched over the G columns --
    head_outs = []
    for h in range(nhead):                   # small static loop over heads
        qh = q[:, h * dh:(h + 1) * dh].reshape(ncols, seq, dh)
        kh = k[:, h * dh:(h + 1) * dh].reshape(ncols, seq, dh)
        vh = v[:, h * dh:(h + 1) * dh].reshape(ncols, seq, dh)
        s = jnp.einsum("gnd,gkd->gnk", qh, kh,
                       preferred_element_type=jnp.float32) * scale
        s = s - jnp.max(s, axis=-1, keepdims=True)
        p = jnp.exp(s)
        p = p * pl.reciprocal(jnp.sum(p, axis=-1, keepdims=True), approx=True)
        head_outs.append(jnp.einsum("gnk,gkd->gnd", p, vh,
                                    preferred_element_type=jnp.float32))
    branch = jnp.concatenate(head_outs, axis=-1).reshape(R, C)

    # --- residual + LayerNorm 1 (f32 elementwise, rsqrt on the EUP) ----------
    h1 = x + branch
    mu1 = jnp.mean(h1, axis=-1, keepdims=True)
    var1 = jnp.mean((h1 - mu1) ** 2, axis=-1, keepdims=True)
    h1n = (h1 - mu1) * lax.rsqrt(var1 + eps) * g1 + be1

    # --- feed-forward (bf16 matmuls, f32 bias / ReLU) -------------------------
    ff = jnp.dot(h1n.astype(jnp.bfloat16), w1_ref[...],
                 preferred_element_type=jnp.float32) + b1_ref[...]
    ff = jnp.maximum(ff, 0.0)
    ff = jnp.dot(ff.astype(jnp.bfloat16), w2_ref[...],
                 preferred_element_type=jnp.float32) + bl2

    # --- residual + LayerNorm 2 ----------------------------------------------
    h2 = h1n + ff
    mu2 = jnp.mean(h2, axis=-1, keepdims=True)
    var2 = jnp.mean((h2 - mu2) ** 2, axis=-1, keepdims=True)
    o_ref[...] = (h2 - mu2) * lax.rsqrt(var2 + eps) * g2 + be2


def _pick_group(bm, n, max_rows=1024):
    """Largest number of (b, m) columns per grid step such that the block stays
    (8,128)-legal, has <= max_rows rows, and (when possible) the grid keeps
    >= 2 steps so both v7x TensorCores get work."""
    best = bm                                # full-array block: always legal
    for g in range(1, bm + 1):
        if bm % g or (g * n) % 8 or g * n > max_rows:
            continue
        if bm // g >= 2:
            best = g
    return best


def yblock_forward(x1d, x2d, params, nhead, group=None):
    B, N, M, C = x1d.shape
    BM = B * M
    dff = params["w1"].shape[1]

    # row (b*M + m)*N + n  ==  x1d[b, n, m, :]
    x_rows = jnp.transpose(x1d, (0, 2, 1, 3)).reshape(BM * N, C)

    if group is None:
        group = _pick_group(BM, N)
    rows = group * N
    grid = (BM // group,)

    # --- pack parameters: fused QKV weight/bias + merged LN/bias vectors ------
    wqkv = jnp.concatenate([params["wq"], params["wk"], params["wv"]],
                           axis=1).astype(jnp.bfloat16)             # (C, 3C)
    bqkv = jnp.concatenate([params["bq"], params["bk"], params["bv"]],
                           axis=1)                                   # (1, 3C) f32
    w1 = params["w1"].astype(jnp.bfloat16)                           # (C, dff)
    b1 = params["bl1"]                                               # (1, dff)
    w2 = params["w2"].astype(jnp.bfloat16)                           # (dff, C)
    vecs = jnp.concatenate([params["g1"], params["be1"], params["bl2"],
                            params["g2"], params["be2"]], axis=0)    # (5, C)

    kernel = functools.partial(yblock_kernel, ncols=group, seq=N, nhead=nhead)

    def rep(shape):          # whole (2-D) parameter array, resident across grid
        return pl.BlockSpec(shape, lambda i: (0, 0))

    out_rows = pl.pallas_call(
        kernel,
        out_shape=jax.ShapeDtypeStruct((BM * N, C), jnp.float32),
        grid=grid,
        in_specs=[
            pl.BlockSpec((rows, C), lambda i: (i, 0)),     # activation rows
            rep((C, 3 * C)), rep((1, 3 * C)),              # fused Wqkv, bqkv
            rep((C, dff)), rep((1, dff)),                  # W1, b1
            rep((dff, C)),                                 # W2
            rep((5, C)),                                   # g1, be1, bl2, g2, be2
        ],
        out_specs=pl.BlockSpec((rows, C), lambda i: (i, 0)),
        compiler_params=pltpu.CompilerParams(
            dimension_semantics=("parallel",)),
    )(x_rows, wqkv, bqkv, w1, b1, w2, vecs)

    x1d_out = out_rows.reshape(B, M, N, C).transpose(0, 2, 1, 3)
    return x1d_out, x2d


def yblock_ref(x1d, x2d, params, nhead):
    """Pure-JAX f32 reference mirroring the PyTorch semantics (dropout = identity)."""
    B, N, M, C = x1d.shape
    dh = C // nhead
    eps = 1e-5

    branch = jnp.transpose(x1d, (0, 2, 1, 3))                    # (B, M, N, C)
    q = branch @ params["wq"] + params["bq"]
    k = branch @ params["wk"] + params["bk"]
    v = branch @ params["wv"] + params["bv"]

    def split(t):
        return t.reshape(B, M, N, nhead, dh).transpose(0, 1, 3, 2, 4)   # (B,M,H,N,dh)

    qh, kh, vh = split(q), split(k), split(v)
    s = jnp.einsum("bmhnd,bmhkd->bmhnk", qh, kh) / math.sqrt(C / nhead)
    p = jax.nn.softmax(s, axis=-1)
    o = jnp.einsum("bmhnk,bmhkd->bmhnd", p, vh)
    o = o.transpose(0, 1, 3, 2, 4).reshape(B, M, N, C)
    branch = jnp.transpose(o, (0, 2, 1, 3))                      # (B, N, M, C)

    def ln(x, g, b):
        mu = x.mean(-1, keepdims=True)
        var = ((x - mu) ** 2).mean(-1, keepdims=True)
        return (x - mu) / jnp.sqrt(var + eps) * g + b

    h1 = ln(x1d + branch, params["g1"], params["be1"])
    ff = jax.nn.relu(h1 @ params["w1"] + params["bl1"]) @ params["w2"] + params["bl2"]
    h2 = ln(h1 + ff, params["g2"], params["be2"])
    return h2, x2d


if __name__ == "__main__":
    # small shapes consistent with YBlock(ninp=32, nhead=4, dim_feedforward=64, dropout=0.0)
    B, N, M, C, H, DFF = 2, 8, 16, 32, 4, 64

    key = jax.random.PRNGKey(0)
    ks = jax.random.split(key, 12)

    x1d = jax.random.normal(ks[0], (B, N, M, C), jnp.float32)
    x2d = jax.random.normal(ks[1], (B, N, M, C), jnp.float32)   # passed through unchanged

    # deterministic synthetic parameters (linear weights stored as (in, out))
    params = {
        "wq": 0.1 * jax.random.normal(ks[2], (C, C), jnp.float32),
        "bq": 0.01 * jax.random.normal(ks[3], (1, C), jnp.float32),
        "wk": 0.1 * jax.random.normal(ks[4], (C, C), jnp.float32),
        "bk": 0.01 * jax.random.normal(ks[5], (1, C), jnp.float32),
        "wv": 0.1 * jax.random.normal(ks[6], (C, C), jnp.float32),
        "bv": 0.01 * jax.random.normal(ks[7], (1, C), jnp.float32),
        "g1": jnp.ones((1, C), jnp.float32),
        "be1": jnp.zeros((1, C), jnp.float32),
        "w1": 0.1 * jax.random.normal(ks[8], (C, DFF), jnp.float32),
        "bl1": 0.01 * jax.random.normal(ks[9], (1, DFF), jnp.float32),
        "w2": 0.1 * jax.random.normal(ks[10], (DFF, C), jnp.float32),
        "bl2": 0.01 * jax.random.normal(ks[11], (1, C), jnp.float32),
        "g2": jnp.ones((1, C), jnp.float32),
        "be2": jnp.zeros((1, C), jnp.float32),
    }

    out1d, out2d = yblock_forward(x1d, x2d, params, H)
    jax.block_until_ready(out1d)

    ref1d, ref2d = yblock_ref(x1d, x2d, params, H)
    # Tolerance loosened vs the pure-f32 version: matmuls use bf16 MXU inputs
    # (f32 accumulation) and the softmax denominator uses the EUP approx reciprocal.
    assert jnp.allclose(out1d, ref1d, atol=5e-2, rtol=5e-2), "x1d mismatch vs reference"
    assert jnp.array_equal(out2d, ref2d), "x2d must pass through unchanged"

    print("KERNEL_OK")
</pallas_src>

<mosaic_0001>
module attributes {stable_mosaic.version = 11 : i64} {
  func.func @yblock_kernel(%arg0: i32, %arg1: memref<128x32xf32, #tpu.memory_space<vmem>>, %arg2: memref<32x96xbf16, #tpu.memory_space<vmem>>, %arg3: memref<1x96xf32, #tpu.memory_space<vmem>>, %arg4: memref<32x64xbf16, #tpu.memory_space<vmem>>, %arg5: memref<1x64xf32, #tpu.memory_space<vmem>>, %arg6: memref<64x32xbf16, #tpu.memory_space<vmem>>, %arg7: memref<5x32xf32, #tpu.memory_space<vmem>>, %arg8: memref<128x32xf32, #tpu.memory_space<vmem>>) attributes {dimension_semantics = [#tpu.dimension_semantics<parallel>], iteration_bounds = array<i64: 2>, scalar_prefetch = 0 : i64, scratch_operands = 0 : i64, tpu.core_type = #tpu.core_type<tc>, window_params = [{transform_indices = @transform_0, window_bounds = array<i64: 128, 32>}, {pipeline_mode = #tpu.pipeline_mode<synchronous>, transform_indices = @transform_1, window_bounds = array<i64: 32, 96>}, {pipeline_mode = #tpu.pipeline_mode<synchronous>, transform_indices = @transform_2, window_bounds = array<i64: 1, 96>}, {pipeline_mode = #tpu.pipeline_mode<synchronous>, transform_indices = @transform_3, window_bounds = array<i64: 32, 64>}, {pipeline_mode = #tpu.pipeline_mode<synchronous>, transform_indices = @transform_4, window_bounds = array<i64: 1, 64>}, {pipeline_mode = #tpu.pipeline_mode<synchronous>, transform_indices = @transform_5, window_bounds = array<i64: 64, 32>}, {pipeline_mode = #tpu.pipeline_mode<synchronous>, transform_indices = @transform_6, window_bounds = array<i64: 5, 32>}, {transform_indices = @transform_7, window_bounds = array<i64: 128, 32>}]} {
    %c0 = arith.constant 0 : index
    %c0_0 = arith.constant 0 : index
    %0 = vector.load %arg1[%c0, %c0_0] : memref<128x32xf32, #tpu.memory_space<vmem>>, vector<128x32xf32>
    %c0_1 = arith.constant 0 : index
    %c0_2 = arith.constant 0 : index
    %1 = vector.load %arg7[%c0_1, %c0_2] : memref<5x32xf32, #tpu.memory_space<vmem>>, vector<5x32xf32>
    %2 = vector.extract_strided_slice %1 {offsets = [0, 0], sizes = [1, 32], strides = [1, 1]} : vector<5x32xf32> to vector<1x32xf32>
    %3 = vector.extract_strided_slice %1 {offsets = [1, 0], sizes = [1, 32], strides = [1, 1]} : vector<5x32xf32> to vector<1x32xf32>
    %4 = vector.extract_strided_slice %1 {offsets = [2, 0], sizes = [1, 32], strides = [1, 1]} : vector<5x32xf32> to vector<1x32xf32>
    %5 = vector.extract_strided_slice %1 {offsets = [3, 0], sizes = [1, 32], strides = [1, 1]} : vector<5x32xf32> to vector<1x32xf32>
    %6 = vector.extract_strided_slice %1 {offsets = [4, 0], sizes = [1, 32], strides = [1, 1]} : vector<5x32xf32> to vector<1x32xf32>
    %7 = arith.truncf %0 : vector<128x32xf32> to vector<128x32xbf16>
    %c0_3 = arith.constant 0 : index
    %c0_4 = arith.constant 0 : index
    %8 = vector.load %arg2[%c0_3, %c0_4] : memref<32x96xbf16, #tpu.memory_space<vmem>>, vector<32x96xbf16>
    %cst = arith.constant dense<0.000000e+00> : vector<128x96xf32>
    %9 = tpu.matmul %7, %8, %cst {dimension_numbers = #tpu.dot_dimension_numbers<[1], [0], [0], [1], [0, 0, 1, 1], [], []>} : vector<128x32xbf16>, vector<32x96xbf16>, vector<128x96xf32> -> vector<128x96xf32>
    %c0_5 = arith.constant 0 : index
    %c0_6 = arith.constant 0 : index
    %10 = vector.load %arg3[%c0_5, %c0_6] : memref<1x96xf32, #tpu.memory_space<vmem>>, vector<1x96xf32>
    %11 = vector.broadcast %10 : vector<1x96xf32> to vector<128x96xf32>
    %12 = arith.addf %9, %11 : vector<128x96xf32>
    %13 = vector.extract_strided_slice %12 {offsets = [0, 0], sizes = [128, 32], strides = [1, 1]} : vector<128x96xf32> to vector<128x32xf32>
    %14 = vector.extract_strided_slice %12 {offsets = [0, 32], sizes = [128, 32], strides = [1, 1]} : vector<128x96xf32> to vector<128x32xf32>
    %15 = vector.extract_strided_slice %12 {offsets = [0, 64], sizes = [128, 32], strides = [1, 1]} : vector<128x96xf32> to vector<128x32xf32>
    %16 = vector.extract_strided_slice %13 {offsets = [0, 0], sizes = [128, 8], strides = [1, 1]} : vector<128x32xf32> to vector<128x8xf32>
    %17 = vector.shape_cast %16 : vector<128x8xf32> to vector<16x8x8xf32>
    %18 = vector.extract_strided_slice %14 {offsets = [0, 0], sizes = [128, 8], strides = [1, 1]} : vector<128x32xf32> to vector<128x8xf32>
    %19 = vector.shape_cast %18 : vector<128x8xf32> to vector<16x8x8xf32>
    %20 = vector.extract_strided_slice %15 {offsets = [0, 0], sizes = [128, 8], strides = [1, 1]} : vector<128x32xf32> to vector<128x8xf32>
    %21 = vector.shape_cast %20 : vector<128x8xf32> to vector<16x8x8xf32>
    "tpu.trace_start"() <{level = 10 : i32, message = "gnd,gkd->gnk"}> : () -> ()
    %cst_7 = arith.constant dense<0.000000e+00> : vector<16x8x8xf32>
    %22 = tpu.matmul %17, %19, %cst_7 {dimension_numbers = #tpu.dot_dimension_numbers<[2], [2], [1], [1], [0, 0, 0, 1, 1, 1], [0], [0]>} : vector<16x8x8xf32>, vector<16x8x8xf32>, vector<16x8x8xf32> -> vector<16x8x8xf32>
    "tpu.trace_stop"() : () -> ()
    %cst_8 = arith.constant 0.353553385 : f32
    %23 = vector.broadcast %cst_8 : f32 to vector<16x8x8xf32>
    %24 = arith.mulf %22, %23 : vector<16x8x8xf32>
    %cst_9 = arith.constant dense<0xFF800000> : vector<16x8xf32>
    %25 = vector.multi_reduction <maximumf>, %24, %cst_9 [2] : vector<16x8x8xf32> to vector<16x8xf32>
    %26 = vector.shape_cast %25 : vector<16x8xf32> to vector<16x8x1xf32>
    %27 = vector.broadcast %26 : vector<16x8x1xf32> to vector<16x8x8xf32>
    %28 = arith.subf %24, %27 : vector<16x8x8xf32>
    %29 = math.exp %28 : vector<16x8x8xf32>
    %cst_10 = arith.constant dense<0.000000e+00> : vector<16x8xf32>
    %30 = vector.multi_reduction <add>, %29, %cst_10 [2] : vector<16x8x8xf32> to vector<16x8xf32>
    %31 = vector.shape_cast %30 : vector<16x8xf32> to vector<16x8x1xf32>
    %32 = tpu.reciprocal %31 {approx = true} : vector<16x8x1xf32> -> vector<16x8x1xf32>
    %33 = vector.broadcast %32 : vector<16x8x1xf32> to vector<16x8x8xf32>
    %34 = arith.mulf %29, %33 : vector<16x8x8xf32>
    "tpu.trace_start"() <{level = 10 : i32, message = "gnk,gkd->gnd"}> : () -> ()
    %cst_11 = arith.constant dense<0.000000e+00> : vector<16x8x8xf32>
    %35 = tpu.matmul %34, %21, %cst_11 {dimension_numbers = #tpu.dot_dimension_numbers<[2], [1], [1], [2], [0, 0, 0, 1, 1, 2], [0], [0]>} : vector<16x8x8xf32>, vector<16x8x8xf32>, vector<16x8x8xf32> -> vector<16x8x8xf32>
    "tpu.trace_stop"() : () -> ()
    %36 = vector.extract_strided_slice %13 {offsets = [0, 8], sizes = [128, 8], strides = [1, 1]} : vector<128x32xf32> to vector<128x8xf32>
    %37 = vector.shape_cast %36 : vector<128x8xf32> to vector<16x8x8xf32>
    %38 = vector.extract_strided_slice %14 {offsets = [0, 8], sizes = [128, 8], strides = [1, 1]} : vector<128x32xf32> to vector<128x8xf32>
    %39 = vector.shape_cast %38 : vector<128x8xf32> to vector<16x8x8xf32>
    %40 = vector.extract_strided_slice %15 {offsets = [0, 8], sizes = [128, 8], strides = [1, 1]} : vector<128x32xf32> to vector<128x8xf32>
    %41 = vector.shape_cast %40 : vector<128x8xf32> to vector<16x8x8xf32>
    "tpu.trace_start"() <{level = 10 : i32, message = "gnd,gkd->gnk"}> : () -> ()
    %cst_12 = arith.constant dense<0.000000e+00> : vector<16x8x8xf32>
    %42 = tpu.matmul %37, %39, %cst_12 {dimension_numbers = #tpu.dot_dimension_numbers<[2], [2], [1], [1], [0, 0, 0, 1, 1, 1], [0], [0]>} : vector<16x8x8xf32>, vector<16x8x8xf32>, vector<16x8x8xf32> -> vector<16x8x8xf32>
    "tpu.trace_stop"() : () -> ()
    %cst_13 = arith.constant 0.353553385 : f32
    %43 = vector.broadcast %cst_13 : f32 to vector<16x8x8xf32>
    %44 = arith.mulf %42, %43 : vector<16x8x8xf32>
    %cst_14 = arith.constant dense<0xFF800000> : vector<16x8xf32>
    %45 = vector.multi_reduction <maximumf>, %44, %cst_14 [2] : vector<16x8x8xf32> to vector<16x8xf32>
    %46 = vector.shape_cast %45 : vector<16x8xf32> to vector<16x8x1xf32>
    %47 = vector.broadcast %46 : vector<16x8x1xf32> to vector<16x8x8xf32>
    %48 = arith.subf %44, %47 : vector<16x8x8xf32>
    %49 = math.exp %48 : vector<16x8x8xf32>
    %cst_15 = arith.constant dense<0.000000e+00> : vector<16x8xf32>
    %50 = vector.multi_reduction <add>, %49, %cst_15 [2] : vector<16x8x8xf32> to vector<16x8xf32>
    %51 = vector.shape_cast %50 : vector<16x8xf32> to vector<16x8x1xf32>
    %52 = tpu.reciprocal %51 {approx = true} : vector<16x8x1xf32> -> vector<16x8x1xf32>
    %53 = vector.broadcast %52 : vector<16x8x1xf32> to vector<16x8x8xf32>
    %54 = arith.mulf %49, %53 : vector<16x8x8xf32>
    "tpu.trace_start"() <{level = 10 : i32, message = "gnk,gkd->gnd"}> : () -> ()
    %cst_16 = arith.constant dense<0.000000e+00> : vector<16x8x8xf32>
    %55 = tpu.matmul %54, %41, %cst_16 {dimension_numbers = #tpu.dot_dimension_numbers<[2], [1], [1], [2], [0, 0, 0, 1, 1, 2], [0], [0]>} : vector<16x8x8xf32>, vector<16x8x8xf32>, vector<16x8x8xf32> -> vector<16x8x8xf32>
    "tpu.trace_stop"() : () -> ()
    %56 = vector.extract_strided_slice %13 {offsets = [0, 16], sizes = [128, 8], strides = [1, 1]} : vector<128x32xf32> to vector<128x8xf32>
    %57 = vector.shape_cast %56 : vector<128x8xf32> to vector<16x8x8xf32>
    %58 = vector.extract_strided_slice %14 {offsets = [0, 16], sizes = [128, 8], strides = [1, 1]} : vector<128x32xf32> to vector<128x8xf32>
    %59 = vector.shape_cast %58 : vector<128x8xf32> to vector<16x8x8xf32>
    %60 = vector.extract_strided_slice %15 {offsets = [0, 16], sizes = [128, 8], strides = [1, 1]} : vector<128x32xf32> to vector<128x8xf32>
    %61 = vector.shape_cast %60 : vector<128x8xf32> to vector<16x8x8xf32>
    "tpu.trace_start"() <{level = 10 : i32, message = "gnd,gkd->gnk"}> : () -> ()
    %cst_17 = arith.constant dense<0.000000e+00> : vector<16x8x8xf32>
    %62 = tpu.matmul %57, %59, %cst_17 {dimension_numbers = #tpu.dot_dimension_numbers<[2], [2], [1], [1], [0, 0, 0, 1, 1, 1], [0], [0]>} : vector<16x8x8xf32>, vector<16x8x8xf32>, vector<16x8x8xf32> -> vector<16x8x8xf32>
    "tpu.trace_stop"() : () -> ()
    %cst_18 = arith.constant 0.353553385 : f32
    %63 = vector.broadcast %cst_18 : f32 to vector<16x8x8xf32>
    %64 = arith.mulf %62, %63 : vector<16x8x8xf32>
    %cst_19 = arith.constant dense<0xFF800000> : vector<16x8xf32>
    %65 = vector.multi_reduction <maximumf>, %64, %cst_19 [2] : vector<16x8x8xf32> to vector<16x8xf32>
    %66 = vector.shape_cast %65 : vector<16x8xf32> to vector<16x8x1xf32>
    %67 = vector.broadcast %66 : vector<16x8x1xf32> to vector<16x8x8xf32>
    %68 = arith.subf %64, %67 : vector<16x8x8xf32>
    %69 = math.exp %68 : vector<16x8x8xf32>
    %cst_20 = arith.constant dense<0.000000e+00> : vector<16x8xf32>
    %70 = vector.multi_reduction <add>, %69, %cst_20 [2] : vector<16x8x8xf32> to vector<16x8xf32>
    %71 = vector.shape_cast %70 : vector<16x8xf32> to vector<16x8x1xf32>
    %72 = tpu.reciprocal %71 {approx = true} : vector<16x8x1xf32> -> vector<16x8x1xf32>
    %73 = vector.broadcast %72 : vector<16x8x1xf32> to vector<16x8x8xf32>
    %74 = arith.mulf %69, %73 : vector<16x8x8xf32>
    "tpu.trace_start"() <{level = 10 : i32, message = "gnk,gkd->gnd"}> : () -> ()
    %cst_21 = arith.constant dense<0.000000e+00> : vector<16x8x8xf32>
    %75 = tpu.matmul %74, %61, %cst_21 {dimension_numbers = #tpu.dot_dimension_numbers<[2], [1], [1], [2], [0, 0, 0, 1, 1, 2], [0], [0]>} : vector<16x8x8xf32>, vector<16x8x8xf32>, vector<16x8x8xf32> -> vector<16x8x8xf32>
    "tpu.trace_stop"() : () -> ()
    %76 = vector.extract_strided_slice %13 {offsets = [0, 24], sizes = [128, 8], strides = [1, 1]} : vector<128x32xf32> to vector<128x8xf32>
    %77 = vector.shape_cast %76 : vector<128x8xf32> to vector<16x8x8xf32>
    %78 = vector.extract_strided_slice %14 {offsets = [0, 24], sizes = [128, 8], strides = [1, 1]} : vector<128x32xf32> to vector<128x8xf32>
    %79 = vector.shape_cast %78 : vector<128x8xf32> to vector<16x8x8xf32>
    %80 = vector.extract_strided_slice %15 {offsets = [0, 24], sizes = [128, 8], strides = [1, 1]} : vector<128x32xf32> to vector<128x8xf32>
    %81 = vector.shape_cast %80 : vector<128x8xf32> to vector<16x8x8xf32>
    "tpu.trace_start"() <{level = 10 : i32, message = "gnd,gkd->gnk"}> : () -> ()
    %cst_22 = arith.constant dense<0.000000e+00> : vector<16x8x8xf32>
    %82 = tpu.matmul %77, %79, %cst_22 {dimension_numbers = #tpu.dot_dimension_numbers<[2], [2], [1], [1], [0, 0, 0, 1, 1, 1], [0], [0]>} : vector<16x8x8xf32>, vector<16x8x8xf32>, vector<16x8x8xf32> -> vector<16x8x8xf32>
    "tpu.trace_stop"() : () -> ()
    %cst_23 = arith.constant 0.353553385 : f32
    %83 = vector.broadcast %cst_23 : f32 to vector<16x8x8xf32>
    %84 = arith.mulf %82, %83 : vector<16x8x8xf32>
    %cst_24 = arith.constant dense<0xFF800000> : vector<16x8xf32>
    %85 = vector.multi_reduction <maximumf>, %84, %cst_24 [2] : vector<16x8x8xf32> to vector<16x8xf32>
    %86 = vector.shape_cast %85 : vector<16x8xf32> to vector<16x8x1xf32>
    %87 = vector.broadcast %86 : vector<16x8x1xf32> to vector<16x8x8xf32>
    %88 = arith.subf %84, %87 : vector<16x8x8xf32>
    %89 = math.exp %88 : vector<16x8x8xf32>
    %cst_25 = arith.constant dense<0.000000e+00> : vector<16x8xf32>
    %90 = vector.multi_reduction <add>, %89, %cst_25 [2] : vector<16x8x8xf32> to vector<16x8xf32>
    %91 = vector.shape_cast %90 : vector<16x8xf32> to vector<16x8x1xf32>
    %92 = tpu.reciprocal %91 {approx = true} : vector<16x8x1xf32> -> vector<16x8x1xf32>
    %93 = vector.broadcast %92 : vector<16x8x1xf32> to vector<16x8x8xf32>
    %94 = arith.mulf %89, %93 : vector<16x8x8xf32>
    "tpu.trace_start"() <{level = 10 : i32, message = "gnk,gkd->gnd"}> : () -> ()
    %cst_26 = arith.constant dense<0.000000e+00> : vector<16x8x8xf32>
    %95 = tpu.matmul %94, %81, %cst_26 {dimension_numbers = #tpu.dot_dimension_numbers<[2], [1], [1], [2], [0, 0, 0, 1, 1, 2], [0], [0]>} : vector<16x8x8xf32>, vector<16x8x8xf32>, vector<16x8x8xf32> -> vector<16x8x8xf32>
    "tpu.trace_stop"() : () -> ()
    %96 = tpu.concatenate %35, %55, %75, %95 in 2 : vector<16x8x8xf32>, vector<16x8x8xf32>, vector<16x8x8xf32>, vector<16x8x8xf32> -> vector<16x8x32xf32>
    %97 = vector.shape_cast %96 : vector<16x8x32xf32> to vector<128x32xf32>
    %98 = arith.addf %0, %97 : vector<128x32xf32>
    %cst_27 = arith.constant dense<0.000000e+00> : vector<128xf32>
    %99 = vector.multi_reduction <add>, %98, %cst_27 [1] : vector<128x32xf32> to vector<128xf32>
    %100 = vector.shape_cast %99 : vector<128xf32> to vector<128x1xf32>
    %cst_28 = arith.constant 3.200000e+01 : f32
    %101 = vector.broadcast %cst_28 : f32 to vector<128x1xf32>
    %102 = arith.divf %100, %101 : vector<128x1xf32>
    %103 = vector.broadcast %102 : vector<128x1xf32> to vector<128x32xf32>
    %104 = arith.subf %98, %103 : vector<128x32xf32>
    %105 = arith.mulf %104, %104 : vector<128x32xf32>
    %cst_29 = arith.constant dense<0.000000e+00> : vector<128xf32>
    %106 = vector.multi_reduction <add>, %105, %cst_29 [1] : vector<128x32xf32> to vector<128xf32>
    %107 = vector.shape_cast %106 : vector<128xf32> to vector<128x1xf32>
    %cst_30 = arith.constant 3.200000e+01 : f32
    %108 = vector.broadcast %cst_30 : f32 to vector<128x1xf32>
    %109 = arith.divf %107, %108 : vector<128x1xf32>
    %110 = vector.broadcast %102 : vector<128x1xf32> to vector<128x32xf32>
    %111 = arith.subf %98, %110 : vector<128x32xf32>
    %cst_31 = arith.constant 9.99999974E-6 : f32
    %112 = vector.broadcast %cst_31 : f32 to vector<128x1xf32>
    %113 = arith.addf %109, %112 : vector<128x1xf32>
    %114 = math.rsqrt %113 : vector<128x1xf32>
    %115 = vector.broadcast %114 : vector<128x1xf32> to vector<128x32xf32>
    %116 = arith.mulf %111, %115 : vector<128x32xf32>
    %117 = vector.broadcast %2 : vector<1x32xf32> to vector<128x32xf32>
    %118 = arith.mulf %116, %117 : vector<128x32xf32>
    %119 = vector.broadcast %3 : vector<1x32xf32> to vector<128x32xf32>
    %120 = arith.addf %118, %119 : vector<128x32xf32>
    %121 = arith.truncf %120 : vector<128x32xf32> to vector<128x32xbf16>
    %c0_32 = arith.constant 0 : index
    %c0_33 = arith.constant 0 : index
    %122 = vector.load %arg4[%c0_32, %c0_33] : memref<32x64xbf16, #tpu.memory_space<vmem>>, vector<32x64xbf16>
    %cst_34 = arith.constant dense<0.000000e+00> : vector<128x64xf32>
    %123 = tpu.matmul %121, %122, %cst_34 {dimension_numbers = #tpu.dot_dimension_numbers<[1], [0], [0], [1], [0, 0, 1, 1], [], []>} : vector<128x32xbf16>, vector<32x64xbf16>, vector<128x64xf32> -> vector<128x64xf32>
    %c0_35 = arith.constant 0 : index
    %c0_36 = arith.constant 0 : index
    %124 = vector.load %arg5[%c0_35, %c0_36] : memref<1x64xf32, #tpu.memory_space<vmem>>, vector<1x64xf32>
    %125 = vector.broadcast %124 : vector<1x64xf32> to vector<128x64xf32>
    %126 = arith.addf %123, %125 : vector<128x64xf32>
    %cst_37 = arith.constant 0.000000e+00 : f32
    %127 = vector.broadcast %cst_37 : f32 to vector<128x64xf32>
    %128 = arith.maximumf %126, %127 : vector<128x64xf32>
    %129 = arith.truncf %128 : vector<128x64xf32> to vector<128x64xbf16>
    %c0_38 = arith.constant 0 : index
    %c0_39 = arith.constant 0 : index
    %130 = vector.load %arg6[%c0_38, %c0_39] : memref<64x32xbf16, #tpu.memory_space<vmem>>, vector<64x32xbf16>
    %cst_40 = arith.constant dense<0.000000e+00> : vector<128x32xf32>
    %131 = tpu.matmul %129, %130, %cst_40 {dimension_numbers = #tpu.dot_dimension_numbers<[1], [0], [0], [1], [0, 0, 1, 1], [], []>} : vector<128x64xbf16>, vector<64x32xbf16>, vector<128x32xf32> -> vector<128x32xf32>
    %132 = vector.broadcast %4 : vector<1x32xf32> to vector<128x32xf32>
    %133 = arith.addf %131, %132 : vector<128x32xf32>
    %134 = arith.addf %120, %133 : vector<128x32xf32>
    %cst_41 = arith.constant dense<0.000000e+00> : vector<128xf32>
    %135 = vector.multi_reduction <add>, %134, %cst_41 [1] : vector<128x32xf32> to vector<128xf32>
    %136 = vector.shape_cast %135 : vector<128xf32> to vector<128x1xf32>
    %cst_42 = arith.constant 3.200000e+01 : f32
    %137 = vector.broadcast %cst_42 : f32 to vector<128x1xf32>
    %138 = arith.divf %136, %137 : vector<128x1xf32>
    %139 = vector.broadcast %138 : vector<128x1xf32> to vector<128x32xf32>
    %140 = arith.subf %134, %139 : vector<128x32xf32>
    %141 = arith.mulf %140, %140 : vector<128x32xf32>
    %cst_43 = arith.constant dense<0.000000e+00> : vector<128xf32>
    %142 = vector.multi_reduction <add>, %141, %cst_43 [1] : vector<128x32xf32> to vector<128xf32>
    %143 = vector.shape_cast %142 : vector<128xf32> to vector<128x1xf32>
    %cst_44 = arith.constant 3.200000e+01 : f32
    %144 = vector.broadcast %cst_44 : f32 to vector<128x1xf32>
    %145 = arith.divf %143, %144 : vector<128x1xf32>
    %146 = vector.broadcast %138 : vector<128x1xf32> to vector<128x32xf32>
    %147 = arith.subf %134, %146 : vector<128x32xf32>
    %cst_45 = arith.constant 9.99999974E-6 : f32
    %148 = vector.broadcast %cst_45 : f32 to vector<128x1xf32>
    %149 = arith.addf %145, %148 : vector<128x1xf32>
    %150 = math.rsqrt %149 : vector<128x1xf32>
    %151 = vector.broadcast %150 : vector<128x1xf32> to vector<128x32xf32>
    %152 = arith.mulf %147, %151 : vector<128x32xf32>
    %153 = vector.broadcast %5 : vector<1x32xf32> to vector<128x32xf32>
    %154 = arith.mulf %152, %153 : vector<128x32xf32>
    %155 = vector.broadcast %6 : vector<1x32xf32> to vector<128x32xf32>
    %156 = arith.addf %154, %155 : vector<128x32xf32>
    %c0_46 = arith.constant 0 : index
    %c0_47 = arith.constant 0 : index
    %157 = vector.load %arg8[%c0_46, %c0_47] : memref<128x32xf32, #tpu.memory_space<vmem>>, vector<128x32xf32>
    tpu.vector_store %arg8[%c0_46, %c0_47], %156 {strides = array<i32>} : memref<128x32xf32, #tpu.memory_space<vmem>>, vector<128x32xf32>,
    return
  }
  func.func @transform_0(%arg0: i32) -> (i32, i32) {
    %c0_i32 = arith.constant 0 : i32
    %c0_i32_0 = arith.constant 0 : i32
    return %arg0, %c0_i32 : i32, i32
  }
  func.func @transform_1(%arg0: i32) -> (i32, i32) {
    %c0_i32 = arith.constant 0 : i32
    %c0_i32_0 = arith.constant 0 : i32
    %c0_i32_1 = arith.constant 0 : i32
    return %c0_i32, %c0_i32_0 : i32, i32
  }
  func.func @transform_2(%arg0: i32) -> (i32, i32) {
    %c0_i32 = arith.constant 0 : i32
    %c0_i32_0 = arith.constant 0 : i32
    %c0_i32_1 = arith.constant 0 : i32
    return %c0_i32, %c0_i32_0 : i32, i32
  }
  func.func @transform_3(%arg0: i32) -> (i32, i32) {
    %c0_i32 = arith.constant 0 : i32
    %c0_i32_0 = arith.constant 0 : i32
    %c0_i32_1 = arith.constant 0 : i32
    return %c0_i32, %c0_i32_0 : i32, i32
  }
  func.func @transform_4(%arg0: i32) -> (i32, i32) {
    %c0_i32 = arith.constant 0 : i32
    %c0_i32_0 = arith.constant 0 : i32
    %c0_i32_1 = arith.constant 0 : i32
    return %c0_i32, %c0_i32_0 : i32, i32
  }
  func.func @transform_5(%arg0: i32) -> (i32, i32) {
    %c0_i32 = arith.constant 0 : i32
    %c0_i32_0 = arith.constant 0 : i32
    %c0_i32_1 = arith.constant 0 : i32
    return %c0_i32, %c0_i32_0 : i32, i32
  }
  func.func @transform_6(%arg0: i32) -> (i32, i32) {
    %c0_i32 = arith.constant 0 : i32
    %c0_i32_0 = arith.constant 0 : i32
    %c0_i32_1 = arith.constant 0 : i32
    return %c0_i32, %c0_i32_0 : i32, i32
  }
  func.func @transform_7(%arg0: i32) -> (i32, i32) {
    %c0_i32 = arith.constant 0 : i32
    %c0_i32_0 = arith.constant 0 : i32
    return %arg0, %c0_i32 : i32, i32
  }
}

</mosaic_0001>

<bundles_post_ra>
// kernel: tpu_custom_call.1
= control target key start
LH: loop header
LB: loop body
LE: loop exit
PB: predicated region body
PF: predicated region fallthrough
CT: control target
= control target key end

     0   :  { %s13900_s24 = smov 0   ;;  %s16740_s0 = inlined_call_operand.vmem [shape: f32[256,32], index: 0, kind: input, shape index: {}]   ;;  %s16741_s1 = inlined_call_operand.vmem [shape: bf16[32,96], index: 1, kind: input, shape index: {}]   ;;  %s16742_s2 = inlined_call_operand.vmem [shape: f32[1,96], index: 2, kind: input, shape index: {}]   ;;  %s16743_s3 = inlined_call_operand.vmem [shape: bf16[32,64], index: 3, kind: input, shape index: {}]   ;;  %s16744_s4 = inlined_call_operand.vmem [shape: f32[1,64], index: 4, kind: input, shape index: {}]   ;;  %s16745_s5 = inlined_call_operand.vmem [shape: bf16[64,32], index: 5, kind: input, shape index: {}]   ;;  %s16746_s6 = inlined_call_operand.vmem [shape: f32[5,32], index: 6, kind: input, shape index: {}]   ;;  %s16747_s7 = inlined_call_operand.vmem [shape: f32[256,32], index: 7, kind: output, shape index: {}]  }
   0x1 LB: > { %s12239_s25 = sadd.s32 4294967295, %s13842_s24   ;;  %p12243_p0 = scmp.ge.s32.totalorder %s13842_s24, 1  ;;  %s13842_s24 = sphi %s13900_s24, %s17_s24  }
   0x2   : > { %p238_p1 = scmp.lt.s32.totalorder %s13842_s24, 3 }
   0x4   : > { %p239_p2 = pnand %p12243_p0, %p238_p1 }
   0x6   : > { %242 = sbr.rel (%p239_p2) target bundleno = 4135 (0x1027), region = 48 }
   0xd   : > { %v13492_v0 = vld [vmem:[%s16741_s1] sm:$0xff]   ;;  %s12244_s28 = sshll.u32 %s12239_s25, 4  ;;  %v13493_v1 = vld [vmem:[%s16741_s1 + $0x8] sm:$0xff]   ;;  %vm331_vm0 = vcmask 261120   ;;  %v16748_v26 = vmov 0.0   ;;  %vm13845_vm1 = vmmov 0  }
   0xe   : > { %p271_p3 = scmp.lt.s32.totalorder %s12244_s28, 31  ;;  %12764 = vmatprep.subr.bf16.mxu0 %v13492_v0  ;;  %12784 = vmatprep.subr.mxu1 %v16748_v26  ;;  %v12248_v27 = vld [vmem:[%s16742_s2] ss:$0 sm:$0xff]  ;;  %s13846_s14 = smov 96   ;;  %vm456_vm2 = vcmask 64512   ;;  %vm11287_vm3 = vcmask 195584  }
   0xf   : > { %12765 = vmatpush3.bf16.msra.mxu0 %v13492_v0  ;;  %12786 = vmatprep.mubr.msk.f32.mxu1 %vm13845_vm1, %v16748_v26  ;;  %s13847_s15 = smov 64   ;;  %s13848_s16 = smov 88   ;;  %vm11270_vm4 = vcmask 130048   ;;  %vm11781_vm5 = vcmask 523264  }
  0x10   : > { %s16842_s28 = smov (!%p271_p3, %s12244_s28), 31  ;;  %12766 = vmatprep.subr.bf16.mxu0 %v13493_v1  ;;  %s13849_s17 = smov 120  }
  0x11   : > { %s12245_s8 = sshll.u32 %s16842_s28, 3  ;;  %s13850_s18 = smov 56  }
  0x12   : > { %s13922_s11 = scalar_lea.vmem %s16740_s0, %s12245_s8  ;;  %s13851_s19 = smov 80  }
  0x13   : > { %12767 = vmatpush3.bf16.msra.mxu0 %v13493_v1  ;;  %v283_v2 = vld [vmem:[%s13922_s11] sm:$0xff]  ;;  %v284_v3 = vld [vmem:[%s13922_s11 + $0x8] sm:$0xff]  ;;  %v285_v4 = vld [vmem:[%s13922_s11 + $0x10] sm:$0xff]  ;;  %s13852_s20 = smov 112   ;;  %s13853_s21 = smov 48  }
  0x14   : > { %v300_v5 = vpack.c.bf16 %v284_v3, %v283_v2  ;;  %v286_v6 = vld [vmem:[%s13922_s11 + $0x18] sm:$0xff]  ;;  %v287_v7 = vld [vmem:[%s13922_s11 + $0x20] sm:$0xff]  ;;  %v288_v8 = vld [vmem:[%s13922_s11 + $0x28] sm:$0xff]  ;;  %12839 = vmatprep.subr.mxu0 %v16748_v26  ;;  %s13854_s22 = smov 72   ;;  %s13855_s23 = smov 104  }
  0x15   : > { %v301_v9 = vpack.c.bf16 %v286_v6, %v285_v4  ;;  %v302_v10 = vpack.c.bf16 %v288_v8, %v287_v7  ;;  %v289_v11 = vld [vmem:[%s13922_s11 + $0x30] sm:$0xff]  ;;  %v290_v12 = vld [vmem:[%s13922_s11 + $0x38] sm:$0xff]  ;;  %v291_v13 = vld [vmem:[%s13922_s11 + $0x40] sm:$0xff]  ;;  %s13856_s25 = smov 40   ;;  %s13857_s26 = smov 8  }
  0x16   : > { %12768 = vmatprep.mubr.msk.bf16.mxu0 %vm331_vm0, %v300_v5  ;;  %v292_v14 = vld [vmem:[%s13922_s11 + $0x48] sm:$0xff]  ;;  %v303_v15 = vpack.c.bf16 %v290_v12, %v289_v11  ;;  %v293_v17 = vld [vmem:[%s13922_s11 + $0x50] sm:$0xff]  ;;  %v294_v18 = vld [vmem:[%s13922_s11 + $0x58] sm:$0xff]  ;;  %s13858_s27 = smov 16   ;;  %s13859_s29 = smov 24  }
  0x17   : > { %12769 = vmatmul.mubr.msk.bf16.vlgmr.msra.gmra.mrb[0].mxu0 %vm331_vm0, %v301_v9  ;;  %v304_v16 = vpack.c.bf16 %v292_v14, %v291_v13  ;;  %v295_v19 = vld [vmem:[%s13922_s11 + $0x60] sm:$0xff]  ;;  %v296_v20 = vld [vmem:[%s13922_s11 + $0x68] sm:$0xff]  ;;  %v305_v21 = vpack.c.bf16 %v294_v18, %v293_v17  ;;  %v297_v23 = vld [vmem:[%s13922_s11 + $0x70] sm:$0xff] }
  0x18   : > { %12772 = vmatprep.mubr.msk.bf16.mxu0 %vm331_vm0, %v302_v10  ;;  %v306_v22 = vpack.c.bf16 %v296_v20, %v295_v19  ;;  %v298_v24 = vld [vmem:[%s13922_s11 + $0x78] sm:$0xff] }
  0x19   : > { %v307_v25 = vpack.c.bf16 %v298_v24, %v297_v23 }
  0x1f   : > { %12773 = vmatmul.mubr.msk.bf16.gmra.mrb[4].mxu0 %vm331_vm0, %v303_v15 }
  0x20   : > { %12776 = vmatprep.mubr.msk.bf16.mxu0 %vm331_vm0, %v304_v16 }
  0x27   : > { %12777 = vmatmul.mubr.msk.bf16.gmra.mrb[8].mxu0 %vm331_vm0, %v305_v21 }
  0x28   : > { %12780 = vmatprep.mubr.msk.bf16.mxu0 %vm331_vm0, %v306_v22 }
  0x2f   : > { %12781 = vmatmul.mubr.msk.bf16.gmra.mrb[12].mxu0 %vm331_vm0, %v307_v25 }
  0x30   : > { %12841 = vmatprep.mubr.msk.f32.mxu0 %vm13845_vm1, %v16748_v26 }
  0xea   : > { %v12770_v28 = vpop.f32.mrb[0].mxu0 }
  0xeb   : > { %v13957_v29 = vadd.f32 %v12770_v28, %v12248_v27  ;;  %v390_v30 = vpop.f32.mrb[1].mxu0 }
  0xec   : > { %v13959_v31 = vadd.f32 %v12248_v27, %v390_v30  ;;  %v12771_v32 = vpop.f32.mrb[2].mxu0 }
  0xed   : > { %609 = vrot.lane.b32.xlu1 %v13957_v29, %s13846_s14  ;;  %v393_v33 = vpop.f32.mrb[3].mxu0  ;;  %v13965_v34 = vadd.f32 %v12771_v32, %v12248_v27 }
  0xee   : > { %454 = vrot.lane.b32.xlu0 %v13959_v31, %s13846_s14  ;;  %v13967_v35 = vadd.f32 %v12248_v27, %v393_v33 }
  0xf1   : > { %686 = vrot.lane.b32.xlu1 %v13965_v34, %s13846_s14 }
  0xf2   : > { %v12774_v36 = vpop.f32.mrb[4].mxu0  ;;  %532 = vrot.lane.b32.xlu0 %v13967_v35, %s13846_s14 }
  0xf3   : > { %v406_v37 = vpop.f32.mrb[5].mxu0  ;;  %v13975_v41 = vadd.f32 %v12774_v36, %v12248_v27 }
  0xf4   : > { %v13973_v38 = vadd.f32 %v12248_v27, %v406_v37  ;;  %v12775_v39 = vpop.f32.mrb[6].mxu0 }
  0xf5   : > { %v409_v40 = vpop.f32.mrb[7].mxu0  ;;  %v13981_v43 = vadd.f32 %v12775_v39, %v12248_v27 }
  0xf6   : > { %v13977_v42 = vadd.f32 %v12248_v27, %v409_v40  ;;  %763 = vrot.lane.b32.xlu0 %v13973_v38, %s13846_s14 }
  0xf8   : > { %840 = vrot.lane.b32.xlu1 %v13977_v42, %s13846_s14 }
  0xfa   : > { %v12778_v44 = vpop.f32.mrb[8].mxu0  ;;  %917 = vrot.lane.b32.xlu0 %v13975_v41, %s13846_s14 }
  0xfb   : > { %v422_v45 = vpop.f32.mrb[9].mxu0  ;;  %v13991_v49 = vadd.f32 %v12778_v44, %v12248_v27 }
  0xfc   : > { %v13987_v46 = vadd.f32 %v12248_v27, %v422_v45  ;;  %v12779_v47 = vpop.f32.mrb[10].mxu0  ;;  %994 = vrot.lane.b32.xlu1 %v13981_v43, %s13846_s14 }
  0xfd   : > { %v425_v48 = vpop.f32.mrb[11].mxu0  ;;  %v13997_v51 = vadd.f32 %v12779_v47, %v12248_v27 }
  0xfe   : > { %v13993_v50 = vadd.f32 %v12248_v27, %v425_v48  ;;  %1071 = vrot.lane.b32.xlu0 %v13987_v46, %s13846_s14 }
 0x100   : > { %1148 = vrot.lane.b32.xlu1 %v13993_v50, %s13846_s14 }
 0x102   : > { %v12782_v52 = vpop.f32.mrb[12].mxu0  ;;  %1225 = vrot.lane.b32.xlu0 %v13991_v49, %s13846_s14 }
 0x103   : > { %v438_v53 = vpop.f32.mrb[13].mxu0  ;;  %v14007_v57 = vadd.f32 %v12782_v52, %v12248_v27 }
 0x104   : > { %v14003_v54 = vadd.f32 %v12248_v27, %v438_v53  ;;  %v12783_v55 = vpop.f32.mrb[14].mxu0  ;;  %1302 = vrot.lane.b32.xlu1 %v13997_v51, %s13846_s14 }
 0x105   : > { %v441_v56 = vpop.f32.mrb[15].mxu0  ;;  %v14013_v59 = vadd.f32 %v12783_v55, %v12248_v27 }
 0x106   : > { %v14009_v58 = vadd.f32 %v12248_v27, %v441_v56  ;;  %1379 = vrot.lane.b32.xlu0 %v14003_v54, %s13846_s14 }
 0x108   : > { %1456 = vrot.lane.b32.xlu1 %v14009_v58, %s13846_s14 }
 0x10a   : > { %1533 = vrot.lane.b32.xlu0 %v14007_v57, %s13846_s14 }
 0x10c   : > { %1610 = vrot.lane.b32.xlu1 %v14013_v59, %s13846_s14 }
 0x10e   : > { %1954 = vrot.lane.b32.xlu0 %v13967_v35, %s13847_s15 }
 0x110   : > { %1878 = vrot.lane.b32.xlu1 %v13959_v31, %s13847_s15 }
 0x112   : > { %2106 = vrot.lane.b32.xlu0 %v13965_v34, %s13847_s15 }
 0x114   : > { %2030 = vrot.lane.b32.xlu1 %v13957_v29, %s13847_s15 }
 0x116   : > { %2334 = vrot.lane.b32.xlu0 %v13975_v41, %s13847_s15 }
 0x118   : > { %2182 = vrot.lane.b32.xlu1 %v13973_v38, %s13847_s15 }
 0x11a   : > { %2486 = vrot.lane.b32.xlu0 %v13987_v46, %s13847_s15 }
 0x11c   : > { %2258 = vrot.lane.b32.xlu1 %v13977_v42, %s13847_s15 }
 0x11e   : > { %2638 = vrot.lane.b32.xlu0 %v13991_v49, %s13847_s15 }
 0x120   : > { %2410 = vrot.lane.b32.xlu1 %v13981_v43, %s13847_s15 }
 0x122   : > { %2790 = vrot.lane.b32.xlu0 %v14003_v54, %s13847_s15 }
 0x124   : > { %2562 = vrot.lane.b32.xlu1 %v13993_v50, %s13847_s15 }
 0x126   : > { %2942 = vrot.lane.b32.xlu0 %v14007_v57, %s13847_s15 }
 0x128   : > { %2714 = vrot.lane.b32.xlu1 %v13997_v51, %s13847_s15 }
 0x12a   : > { %3096 = vrot.lane.b32.xlu0 %v13959_v31, %s13848_s16 }
 0x12c   : > { %3018 = vrot.lane.b32.xlu1 %v14013_v59, %s13847_s15 }
 0x130   : > { %3174 = vrot.lane.b32.xlu1 %v13967_v35, %s13848_s16 }
 0x134   : > { %2866 = vrot.lane.b32.xlu1 %v14009_v58, %s13847_s15 }
 0x15f   : > { %v610_v60 = vpop.permute.xlu1 %609 }
 0x160   : > { %v455_v61 = vpop.permute.xlu0 %454 }
 0x161   : > { %12785 = vmatpush3.xpose.msk.msra.mxu1 %vm456_vm2, %v455_v61 }
 0x162   : > { %12789 = vmatprep.subr.mxu1 %v16748_v26 }
 0x163   : > { %v687_v63 = vpop.permute.xlu1 %686 }
 0x164   : > { %12787 = vmatmul.mubr.msk.f32.vlgmr.msra.gmra.mrb[0].mxu1 %vm456_vm2, %v13959_v31  ;;  %v533_v62 = vpop.permute.xlu0 %532 }
 0x165   : > { %12790 = vmatpush3.xpose.msk.msra.mxu1 %vm456_vm2, %v533_v62  ;;  %12791 = vmatprep.mubr.msk.f32.mxu1 %vm13845_vm1, %v16748_v26 }
 0x166   : > { %12794 = vmatprep.subr.mxu1 %v16748_v26 }
 0x168   : > { %12792 = vmatmul.mubr.msk.f32.vlgmr.msra.gmra.mrb[2].mxu1 %vm456_vm2, %v13967_v35  ;;  %v764_v0 = vpop.permute.xlu0 %763 }
 0x169   : > { %12795 = vmatpush3.xpose.msk.msra.mxu1 %vm456_vm2, %v610_v60  ;;  %12796 = vmatprep.mubr.msk.f32.mxu1 %vm13845_vm1, %v16748_v26 }
 0x16a   : > { %v841_v1 = vpop.permute.xlu1 %840  ;;  %12799 = vmatprep.subr.mxu1 %v16748_v26 }
 0x16c   : > { %12797 = vmatmul.mubr.msk.f32.vlgmr.msra.gmra.mrb[4].mxu1 %vm456_vm2, %v13957_v29  ;;  %v918_v2 = vpop.permute.xlu0 %917 }
 0x16d   : > { %12800 = vmatpush3.xpose.msk.msra.mxu1 %vm456_vm2, %v687_v63  ;;  %12801 = vmatprep.mubr.msk.f32.mxu1 %vm13845_vm1, %v16748_v26 }
 0x16e   : > { %v995_v3 = vpop.permute.xlu1 %994  ;;  %12804 = vmatprep.subr.mxu1 %v16748_v26 }
 0x170   : > { %12802 = vmatmul.mubr.msk.f32.vlgmr.msra.gmra.mrb[6].mxu1 %vm456_vm2, %v13965_v34  ;;  %v1072_v4 = vpop.permute.xlu0 %1071 }
 0x171   : > { %12805 = vmatpush3.xpose.msk.msra.mxu1 %vm456_vm2, %v764_v0  ;;  %12806 = vmatprep.mubr.msk.f32.mxu1 %vm13845_vm1, %v16748_v26 }
 0x172   : > { %v1149_v5 = vpop.permute.xlu1 %1148  ;;  %12809 = vmatprep.subr.mxu1 %v16748_v26 }
 0x174   : > { %12807 = vmatmul.mubr.msk.f32.vlgmr.msra.gmra.mrb[8].mxu1 %vm456_vm2, %v13973_v38  ;;  %v1226_v6 = vpop.permute.xlu0 %1225 }
 0x175   : > { %12810 = vmatpush3.xpose.msk.msra.mxu1 %vm456_vm2, %v841_v1  ;;  %12811 = vmatprep.mubr.msk.f32.mxu1 %vm13845_vm1, %v16748_v26 }
 0x176   : > { %v1303_v7 = vpop.permute.xlu1 %1302  ;;  %12814 = vmatprep.subr.mxu1 %v16748_v26 }
 0x177   : > { %12840 = vmatpush3.xpose.msk.msra.mxu0 %vm456_vm2, %v1303_v7 }
 0x178   : > { %12812 = vmatmul.mubr.msk.f32.vlgmr.msra.gmra.mrb[10].mxu1 %vm456_vm2, %v13977_v42  ;;  %v1380_v8 = vpop.permute.xlu0 %1379  ;;  %12849 = vmatprep.subr.mxu0 %v16748_v26 }
 0x179   : > { %12815 = vmatpush3.xpose.msk.msra.mxu1 %vm456_vm2, %v918_v2  ;;  %12816 = vmatprep.mubr.msk.f32.mxu1 %vm13845_vm1, %v16748_v26 }
 0x17a   : > { %12842 = vmatmul.mubr.msk.f32.vlgmr.msra.gmra.mrb[16].mxu0 %vm456_vm2, %v13997_v51  ;;  %v1457_v9 = vpop.permute.xlu1 %1456  ;;  %12819 = vmatprep.subr.mxu1 %v16748_v26 }
 0x17b   : > { %12850 = vmatpush3.xpose.msk.msra.mxu0 %vm456_vm2, %v1457_v9  ;;  %12851 = vmatprep.mubr.msk.f32.mxu0 %vm13845_vm1, %v16748_v26 }
 0x17c   : > { %12817 = vmatmul.mubr.msk.f32.vlgmr.msra.gmra.mrb[12].mxu1 %vm456_vm2, %v13975_v41  ;;  %v1534_v10 = vpop.permute.xlu0 %1533  ;;  %12859 = vmatprep.subr.mxu0 %v16748_v26 }
 0x17d   : > { %12820 = vmatpush3.xpose.msk.msra.mxu1 %vm456_vm2, %v995_v3  ;;  %12821 = vmatprep.mubr.msk.f32.mxu1 %vm13845_vm1, %v16748_v26 }
 0x17e   : > { %12852 = vmatmul.mubr.msk.f32.vlgmr.msra.gmra.mrb[18].mxu0 %vm456_vm2, %v14009_v58  ;;  %v1611_v11 = vpop.permute.xlu1 %1610  ;;  %12824 = vmatprep.subr.mxu1 %v16748_v26 }
 0x17f   : > { %12860 = vmatpush3.xpose.msk.msra.mxu0 %vm456_vm2, %v1611_v11  ;;  %12861 = vmatprep.mubr.msk.f32.mxu0 %vm13845_vm1, %v16748_v26 }
 0x180   : > { %12822 = vmatmul.mubr.msk.f32.vlgmr.msra.gmra.mrb[14].mxu1 %vm456_vm2, %v13981_v43  ;;  %12869 = vmatprep.subr.mxu0 %v16748_v26  ;;  %v1955_v12 = vpop.permute.xlu0 %1954 }
 0x181   : > { %12825 = vmatpush3.xpose.msk.msra.mxu1 %vm456_vm2, %v1072_v4  ;;  %12826 = vmatprep.mubr.msk.f32.mxu1 %vm13845_vm1, %v16748_v26 }
 0x182   : > { %12862 = vmatmul.mubr.msk.f32.vlgmr.msra.gmra.mrb[20].mxu0 %vm456_vm2, %v14013_v59  ;;  %12829 = vmatprep.subr.mxu1 %v16748_v26  ;;  %v1879_v13 = vpop.permute.xlu1 %1878 }
 0x183   : > { %12870 = vmatpush3.msra.mxu0 %v1955_v12  ;;  %12871 = vmatprep.mubr.msk.f32.mxu0 %vm13845_vm1, %v16748_v26 }
 0x184   : > { %12827 = vmatmul.mubr.msk.f32.vlgmr.msra.gmra.mrb[16].mxu1 %vm456_vm2, %v13987_v46  ;;  %12879 = vmatprep.subr.mxu0 %v16748_v26 }
 0x185   : > { %12830 = vmatpush3.xpose.msk.msra.mxu1 %vm456_vm2, %v1149_v5  ;;  %12831 = vmatprep.mubr.msk.f32.mxu1 %vm13845_vm1, %v16748_v26 }
 0x186   : > { %12834 = vmatprep.subr.mxu1 %v16748_v26 }
 0x188   : > { %12832 = vmatmul.mubr.msk.f32.vlgmr.msra.gmra.mrb[18].mxu1 %vm456_vm2, %v13993_v50 }
 0x189   : > { %12835 = vmatpush3.xpose.msk.msra.mxu1 %vm456_vm2, %v1226_v6  ;;  %12836 = vmatprep.mubr.msk.f32.mxu1 %vm13845_vm1, %v16748_v26 }
 0x18a   : > { %12844 = vmatprep.subr.mxu1 %v16748_v26 }
 0x18c   : > { %12837 = vmatmul.mubr.msk.f32.vlgmr.msra.gmra.mrb[20].mxu1 %vm456_vm2, %v13991_v49 }
 0x18d   : > { %12845 = vmatpush3.xpose.msk.msra.mxu1 %vm456_vm2, %v1380_v8  ;;  %12846 = vmatprep.mubr.msk.f32.mxu1 %vm13845_vm1, %v16748_v26 }
 0x18e   : > { %12854 = vmatprep.subr.mxu1 %v16748_v26 }
 0x190   : > { %12847 = vmatmul.mubr.msk.f32.vlgmr.msra.gmra.mrb[22].mxu1 %vm456_vm2, %v14003_v54 }
 0x191   : > { %12855 = vmatpush3.xpose.msk.msra.mxu1 %vm456_vm2, %v1534_v10  ;;  %12856 = vmatprep.mubr.msk.f32.mxu1 %vm13845_vm1, %v16748_v26 }
 0x192   : > { %12864 = vmatprep.subr.mxu1 %v16748_v26 }
 0x194   : > { %12857 = vmatmul.mubr.msk.f32.vlgmr.msra.gmra.mrb[24].mxu1 %vm456_vm2, %v14007_v57 }
 0x195   : > { %12865 = vmatpush3.msra.mxu1 %v1879_v13  ;;  %12866 = vmatprep.mubr.msk.f32.mxu1 %vm13845_vm1, %v16748_v26 }
 0x196   : > { %12874 = vmatprep.subr.mxu1 %v16748_v26 }
 0x237   : > { %v527_v14 = vpop.f32.mrb[0].mxu1 }
 0x238   : > { %v14139_v15 = vmul.f32 0.35355338, %v527_v14  ;;  %v12788_v16 = vpop.f32.mrb[1].mxu1 }
 0x23a   : > { %v1702_v17 = vsel %vm456_vm2, %v14139_v15, -inf }
 0x23b   : > { %1703 = vmax.xlane.f32.xlu0 %v1702_v17  ;;  %v604_v18 = vpop.f32.mrb[2].mxu1 }
 0x23c   : > { %v14143_v19 = vmul.f32 0.35355338, %v604_v18  ;;  %v12793_v20 = vpop.f32.mrb[3].mxu1 }
 0x23e   : > { %v1705_v21 = vsel %vm456_vm2, %v14143_v19, -inf }
 0x23f   : > { %1706 = vmax.xlane.f32.xlu1 %v1705_v21  ;;  %v681_v22 = vpop.f32.mrb[4].mxu1 }
 0x240   : > { %v14147_v23 = vmul.f32 0.35355338, %v681_v22  ;;  %v12798_v24 = vpop.f32.mrb[5].mxu1 }
 0x242   : > { %v1708_v25 = vsel %vm456_vm2, %v14147_v23, -inf }
 0x243   : > { %1709 = vmax.xlane.f32.xlu0 %v1708_v25  ;;  %v758_v27 = vpop.f32.mrb[6].mxu1 }
 0x244   : > { %v14151_v28 = vmul.f32 0.35355338, %v758_v27  ;;  %v12803_v30 = vpop.f32.mrb[7].mxu1 }
 0x246   : > { %v1711_v32 = vsel %vm456_vm2, %v14151_v28, -inf }
 0x247   : > { %1712 = vmax.xlane.f32.xlu0 %v1711_v32  ;;  %v835_v33 = vpop.f32.mrb[8].mxu1 }
 0x248   : > { %v14155_v36 = vmul.f32 0.35355338, %v835_v33  ;;  %v12808_v37 = vpop.f32.mrb[9].mxu1 }
 0x24a   : > { %v1714_v39 = vsel %vm456_vm2, %v14155_v36, -inf }
 0x24b   : > { %1715 = vmax.xlane.f32.xlu1 %v1714_v39  ;;  %v912_v40 = vpop.f32.mrb[10].mxu1  ;;  %v14209_v39 = vpop.permute.xlu1 %2030 }
 0x24c   : > { %v12813_v44 = vpop.f32.mrb[11].mxu1  ;;  %v14161_v53 = vmul.f32 0.35355338, %v912_v40 }
 0x24d   : > { %v1374_v45 = vpop.f32.mrb[16].mxu0 }
 0x24e   : > { %v14159_v47 = vmul.f32 0.35355338, %v1374_v45  ;;  %v12843_v48 = vpop.f32.mrb[17].mxu0  ;;  %v1717_v3 = vsel %vm456_vm2, %v14161_v53, -inf }
 0x24f   : > { %v989_v52 = vpop.f32.mrb[12].mxu1  ;;  %v14217_v48 = vpop.permute.xlu0 %2106 }
 0x250   : > { %v14163_v55 = vmul.f32 0.35355338, %v989_v52  ;;  %v12818_v56 = vpop.f32.mrb[13].mxu1  ;;  %v1735_v60 = vsel %vm456_vm2, %v14159_v47, -inf  ;;  %v14219_v52 = vpop.permute.xlu1 %2182 }
 0x251   : > { %v1528_v61 = vpop.f32.mrb[18].mxu0  ;;  %1736 = vmax.xlane.f32.xlu0 %v1735_v60 }
 0x252   : > { %v12853_v62 = vpop.f32.mrb[19].mxu0  ;;  %v1720_v63 = vsel %vm456_vm2, %v14163_v55, -inf  ;;  %v14169_v1 = vmul.f32 0.35355338, %v1528_v61 }
 0x253   : > { %1721 = vmax.xlane.f32.xlu1 %v1720_v63  ;;  %v1066_v0 = vpop.f32.mrb[14].mxu1  ;;  %v14221_v56 = vpop.permute.xlu0 %2334 }
 0x254   : > { %v12823_v2 = vpop.f32.mrb[15].mxu1  ;;  %v14173_v7 = vmul.f32 0.35355338, %v1066_v0  ;;  %v1741_v10 = vsel %vm456_vm2, %v14169_v1, -inf  ;;  %v14223_v60 = vpop.permute.xlu1 %2258 }
 0x255   : > { %v1682_v4 = vpop.f32.mrb[20].mxu0  ;;  %1718 = vmax.xlane.f32.xlu0 %v1717_v3 }
 0x256   : > { %v12863_v5 = vpop.f32.mrb[21].mxu0  ;;  %v14181_v13 = vmul.f32 0.35355338, %v1682_v4  ;;  %v1723_v16 = vsel %vm456_vm2, %v14173_v7, -inf }
 0x257   : > { %v1143_v6 = vpop.f32.mrb[16].mxu1  ;;  %v14225_v61 = vpop.permute.xlu0 %2486 }
 0x258   : > { %v14175_v8 = vmul.f32 0.35355338, %v1143_v6  ;;  %v12828_v9 = vpop.f32.mrb[17].mxu1  ;;  %v1747_v21 = vsel %vm456_vm2, %v14181_v13, -inf  ;;  %v14227_v62 = vpop.permute.xlu1 %2410 }
 0x259   : > { %1742 = vmax.xlane.f32.xlu0 %v1741_v10 }
 0x25a   : > { %v1726_v11 = vsel %vm456_vm2, %v14175_v8, -inf }
 0x25b   : > { %1727 = vmax.xlane.f32.xlu1 %v1726_v11  ;;  %v1220_v12 = vpop.f32.mrb[18].mxu1  ;;  %v14229_v63 = vpop.permute.xlu0 %2638 }
 0x25c   : > { %v12833_v14 = vpop.f32.mrb[19].mxu1  ;;  %v14185_v18 = vmul.f32 0.35355338, %v1220_v12  ;;  %v14231_v0 = vpop.permute.xlu1 %2562 }
 0x25d   : > { %1724 = vmax.xlane.f32.xlu0 %v1723_v16 }
 0x25e   : > { %v1729_v25 = vsel %vm456_vm2, %v14185_v18, -inf }
 0x25f   : > { %v1297_v17 = vpop.f32.mrb[20].mxu1  ;;  %v14233_v2 = vpop.permute.xlu0 %2790 }
 0x260   : > { %v12838_v20 = vpop.f32.mrb[21].mxu1  ;;  %v14203_v32 = vmul.f32 0.35355338, %v1297_v17  ;;  %v14235_v3 = vpop.permute.xlu1 %2714 }
 0x261   : > { %1748 = vmax.xlane.f32.xlu0 %v1747_v21 }
 0x262   : > { %v1732_v37 = vsel %vm456_vm2, %v14203_v32, -inf }
 0x263   : > { %v1451_v22 = vpop.f32.mrb[22].mxu1  ;;  %v14237_v4 = vpop.permute.xlu0 %2942 }
 0x264   : > { %v12848_v24 = vpop.f32.mrb[23].mxu1  ;;  %v14205_v33 = vmul.f32 0.35355338, %v1451_v22  ;;  %v14239_v5 = vpop.permute.xlu1 %3018 }
 0x265   : > { %1730 = vmax.xlane.f32.xlu0 %v1729_v25 }
 0x266   : > { %v1738_v44 = vsel %vm456_vm2, %v14205_v33, -inf }
 0x267   : > { %v1605_v27 = vpop.f32.mrb[24].mxu1  ;;  %v14241_v6 = vpop.permute.xlu0 %3096 }
 0x268   : > { %v12858_v30 = vpop.f32.mrb[25].mxu1  ;;  %v14211_v40 = vmul.f32 0.35355338, %v1605_v27  ;;  %v14243_v9 = vpop.permute.xlu1 %3174 }
 0x26a   : > { %v1744_v45 = vsel %vm456_vm2, %v14211_v40, -inf }
 0x26c   : > { %3172 = vrot.lane.b32.xlu1 %v13967_v35, %s13849_s17  ;;  %v14245_v10 = vpop.permute.xlu1 %2866 }
 0x270   : > { %3330 = vrot.lane.b32.xlu1 %v13965_v34, %s13848_s16 }
 0x274   : > { %3328 = vrot.lane.b32.xlu1 %v13965_v34, %s13849_s17 }
 0x27b   : > { %3094 = vrot.lane.b32.xlu0 %v13959_v31, %s13849_s17 }
 0x27f   : > { %3252 = vrot.lane.b32.xlu0 %v13957_v29, %s13848_s16 }
 0x283   : > { %3250 = vrot.lane.b32.xlu0 %v13957_v29, %s13849_s17 }
 0x298   : > { %1733 = vmax.xlane.f32.xlu1 %v1732_v37 }
 0x29c   : > { %1739 = vmax.xlane.f32.xlu1 %v1738_v44 }
 0x2a0   : > { %1745 = vmax.xlane.f32.xlu1 %v1744_v45 }
 0x2c8   : > { %v1704_v11 = vpop.xlane.xlu0 %1703 }
 0x2c9   : > { %v1750_v12 = vsub.f32 %v14139_v15, %v1704_v11 }
 0x2cb   : > { %v1766_v14 = vmul.f32 1.442695, %v1750_v12 }
 0x2cc   : > { %v1707_v16 = vpop.xlane.xlu1 %1706 }
 0x2cd   : > { %13500 = vpow2.f32 %v1766_v14  ;;  %v1751_v17 = vsub.f32 %v14143_v19, %v1707_v16 }
 0x2cf   : > { %v1768_v20 = vmul.f32 1.442695, %v1751_v17 }
 0x2d0   : > { %v1710_v21 = vpop.xlane.xlu0 %1709 }
 0x2d1   : > { %13502 = vpow2.f32 %v1768_v20  ;;  %v1752_v22 = vsub.f32 %v14147_v23, %v1710_v21 }
 0x2d3   : > { %v1770_v24 = vmul.f32 1.442695, %v1752_v22 }
 0x2d4   : > { %v1713_v25 = vpop.xlane.xlu0 %1712 }
 0x2d5   : > { %13504 = vpow2.f32 %v1770_v24  ;;  %v1753_v27 = vsub.f32 %v14151_v28, %v1713_v25 }
 0x2d7   : > { %v14251_v30 = vpop.eup %13500  ;;  %v1772_v37 = vmul.f32 1.442695, %v1753_v27 }
 0x2d8   : > { %v1716_v44 = vpop.xlane.xlu1 %1715  ;;  %v1798_v15 = vsel %vm456_vm2, %v14251_v30, 0.0 }
 0x2d9   : > { %13506 = vpow2.f32 %v1772_v37  ;;  %v1754_v19 = vsub.f32 %v14155_v36, %v1716_v44  ;;  %1799 = vadd.xlane.f32.xlu1 %v1798_v15 }
 0x2db   : > { %v14256_v45 = vpop.eup %13502  ;;  %v1774_v11 = vmul.f32 1.442695, %v1754_v19 }
 0x2dc   : > { %v1801_v23 = vsel %vm456_vm2, %v14256_v45, 0.0 }
 0x2dd   : > { %13508 = vpow2.f32 %v1774_v11  ;;  %1802 = vadd.xlane.f32.xlu0 %v1801_v23 }
 0x2de   : > { %v1737_v28 = vpop.xlane.xlu0 %1736 }
 0x2df   : > { %v14260_v12 = vpop.eup %13504  ;;  %v1761_v14 = vsub.f32 %v14159_v47, %v1737_v28 }
 0x2e0   : > { %v1722_v16 = vpop.xlane.xlu1 %1721  ;;  %v1804_v17 = vsel %vm456_vm2, %v14260_v12, 0.0 }
 0x2e1   : > { %v1788_v20 = vmul.f32 1.442695, %v1761_v14  ;;  %v1756_v36 = vsub.f32 %v14163_v55, %v1722_v16  ;;  %1805 = vadd.xlane.f32.xlu1 %v1804_v17 }
 0x2e2   : > { %v1719_v21 = vpop.xlane.xlu0 %1718 }
 0x2e3   : > { %v14266_v22 = vpop.eup %13506  ;;  %13510 = vpow2.f32 %v1788_v20  ;;  %v1778_v24 = vmul.f32 1.442695, %v1756_v36  ;;  %v1755_v25 = vsub.f32 %v14161_v53, %v1719_v21 }
 0x2e4   : > { %v1807_v27 = vsel %vm456_vm2, %v14266_v22, 0.0 }
 0x2e5   : > { %13512 = vpow2.f32 %v1778_v24  ;;  %v1776_v47 = vmul.f32 1.442695, %v1755_v25  ;;  %1808 = vadd.xlane.f32.xlu0 %v1807_v27 }
 0x2e6   : > { %v1743_v37 = vpop.xlane.xlu0 %1742 }
 0x2e7   : > { %v14271_v44 = vpop.eup %13508  ;;  %13514 = vpow2.f32 %v1776_v47  ;;  %v1763_v55 = vsub.f32 %v14169_v1, %v1743_v37 }
 0x2e8   : > { %v1728_v15 = vpop.xlane.xlu1 %1727  ;;  %v1810_v19 = vsel %vm456_vm2, %v14271_v44, 0.0 }
 0x2e9   : > { %v1792_v11 = vmul.f32 1.442695, %v1763_v55  ;;  %v1758_v23 = vsub.f32 %v14175_v8, %v1728_v15  ;;  %1811 = vadd.xlane.f32.xlu1 %v1810_v19 }
 0x2ea   : > { %v1725_v53 = vpop.xlane.xlu0 %1724 }
 0x2eb   : > { %13516 = vpow2.f32 %v1792_v11  ;;  %v1782_v28 = vmul.f32 1.442695, %v1758_v23  ;;  %v1757_v14 = vsub.f32 %v14173_v7, %v1725_v53 }
 0x2ed   : > { %v14278_v16 = vpop.eup %13510  ;;  %13518 = vpow2.f32 %v1782_v28  ;;  %v1780_v17 = vmul.f32 1.442695, %v1757_v14 }
 0x2ee   : > { %v1749_v20 = vpop.xlane.xlu0 %1748  ;;  %v1831_v1 = vsel %vm456_vm2, %v14278_v16, 0.0 }
 0x2ef   : > { %v14282_v36 = vpop.eup %13512  ;;  %13520 = vpow2.f32 %v1780_v17  ;;  %v1765_v21 = vsub.f32 %v14181_v13, %v1749_v20  ;;  %1832 = vadd.xlane.f32.xlu0 %v1831_v1  ;;  %v14318_v17 = vpop.permute.xlu1 %3172 }
 0x2f0   : > { %v1816_v8 = vsel %vm456_vm2, %v14282_v36, 0.0 }
 0x2f1   : > { %v14287_v24 = vpop.eup %13514  ;;  %v1796_v7 = vmul.f32 1.442695, %v1765_v21  ;;  %1817 = vadd.xlane.f32.xlu1 %v1816_v8 }
 0x2f2   : > { %v1731_v25 = vpop.xlane.xlu0 %1730  ;;  %v1813_v27 = vsel %vm456_vm2, %v14287_v24, 0.0 }
 0x2f3   : > { %13522 = vpow2.f32 %v1796_v7  ;;  %v1759_v47 = vsub.f32 %v14185_v18, %v1731_v25  ;;  %1814 = vadd.xlane.f32.xlu0 %v1813_v27  ;;  %v14324_v20 = vpop.permute.xlu1 %3330 }
 0x2f5   : > { %v14292_v37 = vpop.eup %13516  ;;  %v1784_v55 = vmul.f32 1.442695, %v1759_v47 }
 0x2f6   : > { %v1837_v13 = vsel %vm456_vm2, %v14292_v37, 0.0 }
 0x2f7   : > { %v14296_v15 = vpop.eup %13518  ;;  %13524 = vpow2.f32 %v1784_v55  ;;  %1838 = vadd.xlane.f32.xlu0 %v1837_v13  ;;  %v14328_v1 = vpop.permute.xlu1 %3328 }
 0x2f8   : > { %v1822_v19 = vsel %vm456_vm2, %v14296_v15, 0.0 }
 0x2f9   : > { %v14300_v11 = vpop.eup %13520  ;;  %1823 = vadd.xlane.f32.xlu1 %v1822_v19 }
 0x2fa   : > { %v1819_v18 = vsel %vm456_vm2, %v14300_v11, 0.0 }
 0x2fb   : > { %1820 = vadd.xlane.f32.xlu0 %v1819_v18 }
 0x2fd   : > { %v14304_v23 = vpop.eup %13522 }
 0x2fe   : > { %v1843_v53 = vsel %vm456_vm2, %v14304_v23, 0.0 }
 0x2ff   : > { %1844 = vadd.xlane.f32.xlu0 %v1843_v53 }
 0x301   : > { %v14308_v28 = vpop.eup %13524 }
 0x302   : > { %v1825_v14 = vsel %vm456_vm2, %v14308_v28, 0.0 }
 0x303   : > { %1826 = vadd.xlane.f32.xlu0 %v1825_v14 }
 0x30a   : > { %3486 = vrot.lane.b32.xlu1 %v13977_v42, %s13848_s16 }
 0x30e   : > { %3484 = vrot.lane.b32.xlu1 %v13977_v42, %s13849_s17 }
 0x312   : > { %3642 = vrot.lane.b32.xlu1 %v13981_v43, %s13848_s16 }
 0x316   : > { %3640 = vrot.lane.b32.xlu1 %v13981_v43, %s13849_s17 }
 0x319   : > { %3408 = vrot.lane.b32.xlu0 %v13973_v38, %s13848_s16 }
 0x31d   : > { %3406 = vrot.lane.b32.xlu0 %v13973_v38, %s13849_s17 }
 0x321   : > { %3564 = vrot.lane.b32.xlu0 %v13975_v41, %s13848_s16 }
 0x325   : > { %v1734_v21 = vpop.xlane.xlu1 %1733  ;;  %3562 = vrot.lane.b32.xlu0 %v13975_v41, %s13849_s17 }
 0x326   : > { %v1760_v8 = vsub.f32 %v14203_v32, %v1734_v21  ;;  %v14379_v21 = vpop.permute.xlu0 %3094 }
 0x328   : > { %v1786_v7 = vmul.f32 1.442695, %v1760_v8 }
 0x329   : > { %v1740_v25 = vpop.xlane.xlu1 %1739  ;;  %3720 = vrot.lane.b32.xlu0 %v13987_v46, %s13848_s16 }
 0x32a   : > { %v1762_v27 = vsub.f32 %v14205_v33, %v1740_v25  ;;  %13526 = vpow2.f32 %v1786_v7  ;;  %v14387_v8 = vpop.permute.xlu0 %3252 }
 0x32c   : > { %v1790_v47 = vmul.f32 1.442695, %v1762_v27 }
 0x32d   : > { %v1746_v55 = vpop.xlane.xlu1 %1745  ;;  %3718 = vrot.lane.b32.xlu0 %v13987_v46, %s13849_s17 }
 0x32e   : > { %v1764_v13 = vsub.f32 %v14211_v40, %v1746_v55  ;;  %13528 = vpow2.f32 %v1790_v47  ;;  %v14395_v7 = vpop.permute.xlu0 %3250 }
 0x330   : > { %v1794_v19 = vmul.f32 1.442695, %v1764_v13 }
 0x331   : > { %3876 = vrot.lane.b32.xlu0 %v13991_v49, %s13848_s16 }
 0x332   : > { %13530 = vpow2.f32 %v1794_v19 }
 0x334   : > { %v14345_v32 = vpop.eup %13526 }
 0x335   : > { %3874 = vrot.lane.b32.xlu0 %v13991_v49, %s13849_s17  ;;  %v1828_v33 = vsel %vm456_vm2, %v14345_v32, 0.0 }
 0x338   : > { %v14351_v18 = vpop.eup %13528 }
 0x339   : > { %4032 = vrot.lane.b32.xlu0 %v14003_v54, %s13848_s16  ;;  %v1834_v40 = vsel %vm456_vm2, %v14351_v18, 0.0 }
 0x33a   : > { %1829 = vadd.xlane.f32.xlu1 %v1828_v33 }
 0x33c   : > { %v14357_v53 = vpop.eup %13530 }
 0x33d   : > { %4030 = vrot.lane.b32.xlu0 %v14003_v54, %s13849_s17  ;;  %v1840_v14 = vsel %vm456_vm2, %v14357_v53, 0.0 }
 0x33e   : > { %1835 = vadd.xlane.f32.xlu1 %v1834_v40 }
 0x341   : > { %4188 = vrot.lane.b32.xlu0 %v14007_v57, %s13848_s16 }
 0x342   : > { %1841 = vadd.xlane.f32.xlu1 %v1840_v14 }
 0x345   : > { %4186 = vrot.lane.b32.xlu0 %v14007_v57, %s13849_s17 }
 0x349   : > { %4610 = vrot.lane.b32.xlu0 %v13967_v35, %s13850_s18 }
 0x34d   : > { %4762 = vrot.lane.b32.xlu0 %v13965_v34, %s13850_s18 }
 0x351   : > { %4990 = vrot.lane.b32.xlu0 %v13975_v41, %s13850_s18 }
 0x353   : > { %3798 = vrot.lane.b32.xlu1 %v13993_v50, %s13848_s16 }
 0x355   : > { %5142 = vrot.lane.b32.xlu0 %v13987_v46, %s13850_s18 }
 0x357   : > { %3796 = vrot.lane.b32.xlu1 %v13993_v50, %s13849_s17 }
 0x359   : > { %5294 = vrot.lane.b32.xlu0 %v13991_v49, %s13850_s18 }
 0x35b   : > { %3954 = vrot.lane.b32.xlu1 %v13997_v51, %s13848_s16 }
 0x35d   : > { %5446 = vrot.lane.b32.xlu0 %v14003_v54, %s13850_s18 }
 0x35f   : > { %3952 = vrot.lane.b32.xlu1 %v13997_v51, %s13849_s17 }
 0x361   : > { %5598 = vrot.lane.b32.xlu0 %v14007_v57, %s13850_s18 }
 0x363   : > { %4110 = vrot.lane.b32.xlu1 %v14009_v58, %s13848_s16 }
 0x365   : > { %5752 = vrot.lane.b32.xlu0 %v13959_v31, %s13851_s19 }
 0x366   : > { %v1800_v25 = vpop.xlane.xlu1 %1799 }
 0x367   : > { %13532 = vrcp.f32 %v1800_v25  ;;  %4108 = vrot.lane.b32.xlu1 %v14009_v58, %s13849_s17 }
 0x369   : > { %5750 = vrot.lane.b32.xlu0 %v13959_v31, %s13852_s20 }
 0x36a   : > { %v1803_v27 = vpop.xlane.xlu0 %1802 }
 0x36b   : > { %13534 = vrcp.f32 %v1803_v27  ;;  %4266 = vrot.lane.b32.xlu1 %v14013_v59, %s13848_s16 }
 0x36d   : > { %5908 = vrot.lane.b32.xlu0 %v13957_v29, %s13851_s19 }
 0x36e   : > { %v1806_v47 = vpop.xlane.xlu1 %1805 }
 0x36f   : > { %13536 = vrcp.f32 %v1806_v47  ;;  %4264 = vrot.lane.b32.xlu1 %v14013_v59, %s13849_s17 }
 0x371   : > { %v13533_v55 = vpop.eup %13532  ;;  %5906 = vrot.lane.b32.xlu0 %v13957_v29, %s13852_s20 }
 0x372   : > { %v1809_v13 = vpop.xlane.xlu0 %1808  ;;  %v1862_v19 = vmul.f32 %v13533_v55, %v14251_v30 }
 0x373   : > { %13538 = vrcp.f32 %v1809_v13  ;;  %4534 = vrot.lane.b32.xlu1 %v13959_v31, %s13850_s18 }
 0x374   : > { %12867 = vmatmul.mubr.msk.f32.vlgmr.msra.gmra.mrb[26].mxu1 %vm456_vm2, %v1862_v19 }
 0x375   : > { %v13535_v33 = vpop.eup %13534  ;;  %12875 = vmatpush3.msra.mxu1 %v14209_v39  ;;  %12876 = vmatprep.mubr.msk.f32.mxu1 %vm13845_vm1, %v16748_v26 }
 0x376   : > { %v1812_v40 = vpop.xlane.xlu1 %1811  ;;  %v1863_v14 = vmul.f32 %v13535_v33, %v14256_v45  ;;  %12884 = vmatprep.subr.mxu1 %v16748_v26 }
 0x377   : > { %13540 = vrcp.f32 %v1812_v40  ;;  %4686 = vrot.lane.b32.xlu1 %v13957_v29, %s13850_s18 }
 0x378   : > { %12872 = vmatmul.mubr.msk.f32.vlgmr.msra.gmra.mrb[22].mxu0 %vm456_vm2, %v1863_v14 }
 0x379   : > { %v13537_v30 = vpop.eup %13536  ;;  %12880 = vmatpush3.msra.mxu0 %v14217_v48  ;;  %12881 = vmatprep.mubr.msk.f32.mxu0 %vm13845_vm1, %v16748_v26 }
 0x37a   : > { %v1864_v39 = vmul.f32 %v13537_v30, %v14260_v12  ;;  %12889 = vmatprep.subr.mxu0 %v16748_v26 }
 0x37b   : > { %4838 = vrot.lane.b32.xlu1 %v13973_v38, %s13850_s18 }
 0x37c   : > { %12877 = vmatmul.mubr.msk.f32.vlgmr.msra.gmra.mrb[28].mxu1 %vm456_vm2, %v1864_v39  ;;  %v1833_v45 = vpop.xlane.xlu0 %1832 }
 0x37d   : > { %v13539_v25 = vpop.eup %13538  ;;  %12885 = vmatpush3.msra.mxu1 %v14219_v52  ;;  %12886 = vmatprep.mubr.msk.f32.mxu1 %vm13845_vm1, %v16748_v26 }
 0x37e   : > { %v1818_v48 = vpop.xlane.xlu1 %1817  ;;  %v1865_v27 = vmul.f32 %v13539_v25, %v14266_v22  ;;  %12894 = vmatprep.subr.mxu1 %v16748_v26 }
 0x37f   : > { %13542 = vrcp.f32 %v1818_v48  ;;  %4914 = vrot.lane.b32.xlu1 %v13977_v42, %s13850_s18 }
 0x380   : > { %12882 = vmatmul.mubr.msk.f32.vlgmr.msra.gmra.mrb[24].mxu0 %vm456_vm2, %v1865_v27  ;;  %v1815_v12 = vpop.xlane.xlu0 %1814 }
 0x381   : > { %v13541_v47 = vpop.eup %13540  ;;  %12890 = vmatpush3.msra.mxu0 %v14223_v60  ;;  %13544 = vrcp.f32 %v1815_v12  ;;  %12891 = vmatprep.mubr.msk.f32.mxu0 %vm13845_vm1, %v16748_v26 }
 0x382   : > { %v1866_v52 = vmul.f32 %v13541_v47, %v14271_v44  ;;  %12899 = vmatprep.subr.mxu0 %v16748_v26 }
 0x383   : > { %5066 = vrot.lane.b32.xlu1 %v13981_v43, %s13850_s18 }
 0x384   : > { %12887 = vmatmul.mubr.msk.f32.vlgmr.msra.gmra.mrb[30].mxu1 %vm456_vm2, %v1866_v52  ;;  %v1839_v22 = vpop.xlane.xlu0 %1838 }
 0x385   : > { %12895 = vmatpush3.msra.mxu1 %v14221_v56  ;;  %12896 = vmatprep.mubr.msk.f32.mxu1 %vm13845_vm1, %v16748_v26 }
 0x386   : > { %v1824_v60 = vpop.xlane.xlu1 %1823  ;;  %12904 = vmatprep.subr.mxu1 %v16748_v26 }
 0x387   : > { %13546 = vrcp.f32 %v1824_v60  ;;  %5218 = vrot.lane.b32.xlu1 %v13993_v50, %s13850_s18 }
 0x388   : > { %v1821_v44 = vpop.xlane.xlu0 %1820 }
 0x389   : > { %v13543_v55 = vpop.eup %13542  ;;  %13548 = vrcp.f32 %v1821_v44 }
 0x38a   : > { %v1868_v13 = vmul.f32 %v13543_v55, %v14282_v36  ;;  %v3487_v30 = vpop.permute.xlu1 %3486 }
 0x38b   : > { %v13545_v19 = vpop.eup %13544  ;;  %5370 = vrot.lane.b32.xlu1 %v13997_v51, %s13850_s18 }
 0x38c   : > { %12897 = vmatmul.mubr.msk.f32.vlgmr.msra.gmra.mrb[32].mxu1 %vm456_vm2, %v1868_v13  ;;  %v1845_v56 = vpop.xlane.xlu0 %1844  ;;  %v1867_v33 = vmul.f32 %v13545_v19, %v14287_v24 }
 0x38d   : > { %12905 = vmatpush3.msra.mxu1 %v14225_v61  ;;  %12906 = vmatprep.mubr.msk.f32.mxu1 %vm13845_vm1, %v16748_v26 }
 0x38e   : > { %12892 = vmatmul.mubr.msk.f32.vlgmr.msra.gmra.mrb[26].mxu0 %vm456_vm2, %v1867_v33  ;;  %12914 = vmatprep.subr.mxu1 %v16748_v26 }
 0x38f   : > { %12900 = vmatpush3.msra.mxu0 %v14227_v62  ;;  %5522 = vrot.lane.b32.xlu1 %v14009_v58, %s13850_s18 }
 0x390   : > { %v1827_v36 = vpop.xlane.xlu0 %1826  ;;  %12901 = vmatprep.mubr.msk.f32.mxu0 %vm13845_vm1, %v16748_v26  ;;  %12909 = vmatprep.subr.mxu0 %v16748_v26 }
 0x391   : > { %v13547_v24 = vpop.eup %13546  ;;  %13550 = vrcp.f32 %v1827_v36 }
 0x392   : > { %v1870_v61 = vmul.f32 %v13547_v24, %v14296_v15  ;;  %13552 = vrcp.f32 %v1833_v45 }
 0x393   : > { %v13549_v40 = vpop.eup %13548  ;;  %5674 = vrot.lane.b32.xlu1 %v14013_v59, %s13850_s18  ;;  %13554 = vrcp.f32 %v1839_v22 }
 0x394   : > { %12907 = vmatmul.mubr.msk.f32.vlgmr.msra.gmra.mrb[34].mxu1 %vm456_vm2, %v1870_v61  ;;  %v1869_v62 = vmul.f32 %v13549_v40, %v14300_v11  ;;  %13556 = vrcp.f32 %v1845_v56 }
 0x395   : > { %12915 = vmatpush3.msra.mxu1 %v14229_v63  ;;  %12916 = vmatprep.mubr.msk.f32.mxu1 %vm13845_vm1, %v16748_v26 }
 0x396   : > { %12902 = vmatmul.mubr.msk.f32.vlgmr.msra.gmra.mrb[28].mxu0 %vm456_vm2, %v1869_v62  ;;  %12924 = vmatprep.subr.mxu1 %v16748_v26 }
 0x397   : > { %12910 = vmatpush3.msra.mxu0 %v14231_v0  ;;  %5830 = vrot.lane.b32.xlu1 %v13967_v35, %s13851_s19 }
 0x398   : > { %12911 = vmatprep.mubr.msk.f32.mxu0 %vm13845_vm1, %v16748_v26  ;;  %12919 = vmatprep.subr.mxu0 %v16748_v26 }
 0x39b   : > { %v13551_v15 = vpop.eup %13550  ;;  %5828 = vrot.lane.b32.xlu1 %v13967_v35, %s13852_s20 }
 0x39c   : > { %v1871_v63 = vmul.f32 %v13551_v15, %v14308_v28  ;;  %v13553_v11 = vpop.eup %13552 }
 0x39d   : > { %v1873_v0 = vmul.f32 %v13553_v11, %v14278_v16  ;;  %v13555_v14 = vpop.eup %13554  ;;  %v14506_v16 = vpop.permute.xlu0 %3408 }
 0x39e   : > { %12912 = vmatmul.mubr.msk.f32.vlgmr.msra.gmra.mrb[30].mxu0 %vm456_vm2, %v1871_v63  ;;  %v13557_v28 = vpop.eup %13556 }
 0x39f   : > { %12920 = vmatpush3.msra.mxu0 %v14235_v3  ;;  %5986 = vrot.lane.b32.xlu1 %v13965_v34, %s13851_s19  ;;  %v1875_v3 = vmul.f32 %v13555_v14, %v14292_v37 }
 0x3a0   : > { %12921 = vmatprep.mubr.msk.f32.mxu0 %vm13845_vm1, %v16748_v26  ;;  %12929 = vmatprep.subr.mxu0 %v16748_v26 }
 0x3a1   : > { %v14513_v37 = vpop.permute.xlu0 %3406 }
 0x3a2   : > { %12922 = vmatmul.mubr.msk.f32.vlgmr.msra.gmra.mrb[32].mxu0 %vm456_vm2, %v1873_v0 }
 0x3a3   : > { %12930 = vmatpush3.msra.mxu0 %v14245_v10  ;;  %5984 = vrot.lane.b32.xlu1 %v13965_v34, %s13852_s20  ;;  %v1877_v10 = vmul.f32 %v13557_v28, %v14304_v23 }
 0x3a4   : > { %12931 = vmatprep.mubr.msk.f32.mxu0 %vm13845_vm1, %v16748_v26  ;;  %12939 = vmatprep.subr.mxu0 %v16748_v26 }
 0x3a5   : > { %v14525_v23 = vpop.permute.xlu0 %3564 }
 0x3a6   : > { %12932 = vmatmul.mubr.msk.f32.vlgmr.msra.gmra.mrb[34].mxu0 %vm456_vm2, %v1875_v3 }
 0x3a7   : > { %12940 = vmatpush3.msra.mxu0 %v14239_v5  ;;  %12941 = vmatprep.mubr.msk.f32.mxu0 %vm13845_vm1, %v16748_v26  ;;  %v3485_v5 = vpop.permute.xlu1 %3484 }
 0x3a8   : > { %12949 = vmatprep.subr.mxu0 %v16748_v26 }
 0x3aa   : > { %12942 = vmatmul.mubr.msk.f32.vlgmr.msra.gmra.mrb[36].mxu0 %vm456_vm2, %v1877_v10 }
 0x3ab   : > { %12951 = vmatprep.mubr.msk.f32.mxu0 %vm13845_vm1, %v16748_v26 }
 0x3ae   : > { %12950 = vmatpush3.xpose.msk.msra.mxu0 %vm456_vm2, %v14243_v9  ;;  %v3643_v9 = vpop.permute.xlu1 %3642 }
 0x3af   : > { %12959 = vmatprep.subr.mxu0 %v16748_v26 }
 0x3b1   : > { %12952 = vmatmul.mubr.msk.f32.vlgmr.msra.gmra.mrb[38].mxu0 %vm456_vm2, %v14318_v17  ;;  %v14534_v17 = vpop.permute.xlu0 %3562 }
 0x3b2   : > { %12960 = vmatpush3.xpose.msk.msra.mxu0 %vm456_vm2, %v14324_v20  ;;  %12961 = vmatprep.mubr.msk.f32.mxu0 %vm13845_vm1, %v16748_v26  ;;  %v3641_v20 = vpop.permute.xlu1 %3640 }
 0x3b3   : > { %12969 = vmatprep.subr.mxu0 %v16748_v26 }
 0x3b5   : > { %12962 = vmatmul.mubr.msk.f32.vlgmr.msra.gmra.mrb[40].mxu0 %vm456_vm2, %v14328_v1  ;;  %v14543_v1 = vpop.permute.xlu0 %3720 }
 0x3b6   : > { %12970 = vmatpush3.xpose.msk.msra.mxu0 %vm456_vm2, %v3487_v30  ;;  %12971 = vmatprep.mubr.msk.f32.mxu0 %vm13845_vm1, %v16748_v26 }
 0x3b7   : > { %12979 = vmatprep.subr.mxu0 %v16748_v26 }
 0x3b9   : > { %12972 = vmatmul.mubr.msk.f32.vlgmr.msra.gmra.mrb[42].mxu0 %vm456_vm2, %v3485_v5  ;;  %v14545_v39 = vpop.permute.xlu0 %3718 }
 0x3ba   : > { %12980 = vmatpush3.xpose.msk.msra.mxu0 %vm456_vm2, %v3643_v9  ;;  %12981 = vmatprep.mubr.msk.f32.mxu0 %vm13845_vm1, %v16748_v26 }
 0x3bb   : > { %12989 = vmatprep.subr.mxu0 %v16748_v26 }
 0x3bd   : > { %12982 = vmatmul.mubr.msk.f32.vlgmr.msra.gmra.mrb[44].mxu0 %vm456_vm2, %v3641_v20  ;;  %v14547_v48 = vpop.permute.xlu0 %3876 }
 0x3be   : > { %12991 = vmatprep.mubr.msk.f32.mxu0 %vm13845_vm1, %v16748_v26 }
 0x3c1   : > { %v14549_v47 = vpop.permute.xlu0 %3874 }
 0x3c5   : > { %v4033_v13 = vpop.permute.xlu0 %4032 }
 0x3c7   : > { %v1830_v45 = vpop.xlane.xlu1 %1829 }
 0x3c8   : > { %13558 = vrcp.f32 %v1830_v45 }
 0x3cb   : > { %v1836_v25 = vpop.xlane.xlu1 %1835 }
 0x3cc   : > { %13560 = vrcp.f32 %v1836_v25 }
 0x3cf   : > { %v1842_v27 = vpop.xlane.xlu1 %1841 }
 0x3d0   : > { %13562 = vrcp.f32 %v1842_v27 }
 0x3d2   : > { %v13559_v12 = vpop.eup %13558 }
 0x3d3   : > { %v3799_v52 = vpop.permute.xlu1 %3798  ;;  %v1872_v22 = vmul.f32 %v13559_v12, %v14345_v32 }
 0x3d4   : > { %12990 = vmatpush3.xpose.msk.msra.mxu0 %vm456_vm2, %v3799_v52 }
 0x3d5   : > { %12917 = vmatmul.mubr.msk.f32.vlgmr.msra.gmra.mrb[36].mxu1 %vm456_vm2, %v1872_v22  ;;  %12999 = vmatprep.subr.mxu0 %v16748_v26 }
 0x3d6   : > { %v13561_v60 = vpop.eup %13560  ;;  %12925 = vmatpush3.msra.mxu1 %v14233_v2  ;;  %12926 = vmatprep.mubr.msk.f32.mxu1 %vm13845_vm1, %v16748_v26 }
 0x3d7   : > { %v3797_v44 = vpop.permute.xlu1 %3796  ;;  %12934 = vmatprep.subr.mxu1 %v16748_v26  ;;  %v1874_v55 = vmul.f32 %v13561_v60, %v14351_v18  ;;  %v4031_v18 = vpop.permute.xlu0 %4030 }
 0x3d8   : > { %12992 = vmatmul.mubr.msk.f32.vlgmr.msra.gmra.mrb[46].mxu0 %vm456_vm2, %v3797_v44 }
 0x3d9   : > { %12927 = vmatmul.mubr.msk.f32.vlgmr.msra.gmra.mrb[38].mxu1 %vm456_vm2, %v1874_v55  ;;  %13001 = vmatprep.mubr.msk.f32.mxu0 %vm13845_vm1, %v16748_v26 }
 0x3da   : > { %v13563_v32 = vpop.eup %13562  ;;  %12935 = vmatpush3.msra.mxu1 %v14237_v4  ;;  %12936 = vmatprep.mubr.msk.f32.mxu1 %vm13845_vm1, %v16748_v26 }
 0x3db   : > { %v3955_v2 = vpop.permute.xlu1 %3954  ;;  %v1876_v19 = vmul.f32 %v13563_v32, %v14357_v53  ;;  %12944 = vmatprep.subr.mxu1 %v16748_v26  ;;  %v4189_v53 = vpop.permute.xlu0 %4188 }
 0x3dc   : > { %13000 = vmatpush3.xpose.msk.msra.mxu0 %vm456_vm2, %v3955_v2 }
 0x3dd   : > { %12937 = vmatmul.mubr.msk.f32.vlgmr.msra.gmra.mrb[40].mxu1 %vm456_vm2, %v1876_v19  ;;  %13009 = vmatprep.subr.mxu0 %v16748_v26 }
 0x3de   : > { %12946 = vmatprep.mubr.msk.f32.mxu1 %vm13845_vm1, %v16748_v26 }
 0x3df   : > { %v3953_v56 = vpop.permute.xlu1 %3952 }
 0x3e0   : > { %13002 = vmatmul.mubr.msk.f32.vlgmr.msra.gmra.mrb[48].mxu0 %vm456_vm2, %v3953_v56 }
 0x3e1   : > { %12945 = vmatpush3.xpose.msk.msra.mxu1 %vm456_vm2, %v14241_v6  ;;  %13011 = vmatprep.mubr.msk.f32.mxu0 %vm13845_vm1, %v16748_v26 }
 0x3e2   : > { %12954 = vmatprep.subr.mxu1 %v16748_v26 }
 0x3e3   : > { %v4111_v4 = vpop.permute.xlu1 %4110 }
 0x3e4   : > { %12947 = vmatmul.mubr.msk.f32.vlgmr.msra.gmra.mrb[42].mxu1 %vm456_vm2, %v14379_v21  ;;  %13010 = vmatpush3.xpose.msk.msra.mxu0 %vm456_vm2, %v4111_v4  ;;  %v4187_v21 = vpop.permute.xlu0 %4186 }
 0x3e5   : > { %12955 = vmatpush3.xpose.msk.msra.mxu1 %vm456_vm2, %v14387_v8  ;;  %12956 = vmatprep.mubr.msk.f32.mxu1 %vm13845_vm1, %v16748_v26 }
 0x3e6   : > { %12964 = vmatprep.subr.mxu1 %v16748_v26  ;;  %13019 = vmatprep.subr.mxu0 %v16748_v26 }
 0x3e7   : > { %v4109_v6 = vpop.permute.xlu1 %4108 }
 0x3e8   : > { %12957 = vmatmul.mubr.msk.f32.vlgmr.msra.gmra.mrb[44].mxu1 %vm456_vm2, %v14395_v7  ;;  %13012 = vmatmul.mubr.msk.f32.vlgmr.msra.gmra.mrb[50].mxu0 %vm456_vm2, %v4109_v6  ;;  %v4611_v33 = vpop.permute.xlu0 %4610 }
 0x3e9   : > { %12965 = vmatpush3.xpose.msk.msra.mxu1 %vm456_vm2, %v14506_v16  ;;  %12966 = vmatprep.mubr.msk.f32.mxu1 %vm13845_vm1, %v16748_v26 }
 0x3ea   : > { %12974 = vmatprep.subr.mxu1 %v16748_v26  ;;  %13021 = vmatprep.mubr.msk.f32.mxu0 %vm13845_vm1, %v16748_v26 }
 0x3eb   : > { %v4267_v8 = vpop.permute.xlu1 %4266 }
 0x3ec   : > { %12967 = vmatmul.mubr.msk.f32.vlgmr.msra.gmra.mrb[46].mxu1 %vm456_vm2, %v14513_v37  ;;  %13020 = vmatpush3.xpose.msk.msra.mxu0 %vm456_vm2, %v4267_v8 }
 0x3ed   : > { %12975 = vmatpush3.xpose.msk.msra.mxu1 %vm456_vm2, %v14525_v23  ;;  %12976 = vmatprep.mubr.msk.f32.mxu1 %vm13845_vm1, %v16748_v26 }
 0x3ee   : > { %12984 = vmatprep.subr.mxu1 %v16748_v26  ;;  %13029 = vmatprep.subr.mxu0 %v16748_v26 }
 0x3ef   : > { %v4265_v7 = vpop.permute.xlu1 %4264 }
 0x3f0   : > { %12977 = vmatmul.mubr.msk.f32.vlgmr.msra.gmra.mrb[48].mxu1 %vm456_vm2, %v14534_v17  ;;  %13022 = vmatmul.mubr.msk.f32.vlgmr.msra.gmra.mrb[52].mxu0 %vm456_vm2, %v4265_v7 }
 0x3f1   : > { %12985 = vmatpush3.xpose.msk.msra.mxu1 %vm456_vm2, %v14543_v1  ;;  %13030 = vmatpush3.msra.mxu0 %v4611_v33 }
 0x3f2   : > { %12986 = vmatprep.mubr.msk.f32.mxu1 %vm13845_vm1, %v16748_v26  ;;  %12994 = vmatprep.subr.mxu1 %v16748_v26 }
 0x3f3   : > { %13031 = vmatprep.mubr.msk.f32.mxu0 %vm13845_vm1, %v16748_v26  ;;  %13039 = vmatprep.subr.mxu0 %v16748_v26  ;;  %v4535_v36 = vpop.permute.xlu1 %4534 }
 0x3f4   : > { %12987 = vmatmul.mubr.msk.f32.vlgmr.msra.gmra.mrb[50].mxu1 %vm456_vm2, %v14545_v39 }
 0x3f5   : > { %12995 = vmatpush3.xpose.msk.msra.mxu1 %vm456_vm2, %v14547_v48  ;;  %12996 = vmatprep.mubr.msk.f32.mxu1 %vm13845_vm1, %v16748_v26 }
 0x3f6   : > { %13004 = vmatprep.subr.mxu1 %v16748_v26 }
 0x3f8   : > { %12997 = vmatmul.mubr.msk.f32.vlgmr.msra.gmra.mrb[52].mxu1 %vm456_vm2, %v14549_v47 }
 0x3f9   : > { %13005 = vmatpush3.xpose.msk.msra.mxu1 %vm456_vm2, %v4033_v13  ;;  %13006 = vmatprep.mubr.msk.f32.mxu1 %vm13845_vm1, %v16748_v26 }
 0x3fa   : > { %13014 = vmatprep.subr.mxu1 %v16748_v26 }
 0x3fc   : > { %13007 = vmatmul.mubr.msk.f32.vlgmr.msra.gmra.mrb[54].mxu1 %vm456_vm2, %v4031_v18 }
 0x3fd   : > { %13015 = vmatpush3.xpose.msk.msra.mxu1 %vm456_vm2, %v4189_v53  ;;  %13016 = vmatprep.mubr.msk.f32.mxu1 %vm13845_vm1, %v16748_v26 }
 0x3fe   : > { %13024 = vmatprep.subr.mxu1 %v16748_v26 }
 0x400   : > { %13017 = vmatmul.mubr.msk.f32.vlgmr.msra.gmra.mrb[56].mxu1 %vm456_vm2, %v4187_v21 }
 0x401   : > { %13025 = vmatpush3.msra.mxu1 %v4535_v36  ;;  %13026 = vmatprep.mubr.msk.f32.mxu1 %vm13845_vm1, %v16748_v26 }
 0x402   : > { %13034 = vmatprep.subr.mxu1 %v16748_v26 }
 0x447   : > { %v14641_v24 = vpop.f32.mrb[26].mxu1 }
 0x448   : > { %16750 = vst [vmem:[#allocation2_spill] sm:$0xff] %v14641_v24  ;;  %v12868_v61 = vpop.f32.mrb[27].mxu1 }
 0x44b   : > { %v14643_v40 = vpop.f32.mrb[22].mxu0 }
 0x44c   : > { %16751 = vst [vmem:[#allocation3_spill] sm:$0xff] %v14643_v40  ;;  %v12873_v62 = vpop.f32.mrb[23].mxu0 }
 0x44f   : > { %v14645_v15 = vpop.f32.mrb[28].mxu1 }
 0x450   : > { %16752 = vst [vmem:[#allocation4_spill] sm:$0xff] %v14645_v15  ;;  %v12878_v63 = vpop.f32.mrb[29].mxu1 }
 0x453   : > { %v14647_v11 = vpop.f32.mrb[24].mxu0 }
 0x454   : > { %16753 = vst [vmem:[#allocation5_spill] sm:$0xff] %v14647_v11  ;;  %v12883_v0 = vpop.f32.mrb[25].mxu0 }
 0x457   : > { %v14649_v14 = vpop.f32.mrb[30].mxu1 }
 0x458   : > { %16754 = vst [vmem:[#allocation6_spill] sm:$0xff] %v14649_v14  ;;  %v12888_v3 = vpop.f32.mrb[31].mxu1 }
 0x45f   : > { %v14651_v28 = vpop.f32.mrb[32].mxu1 }
 0x460   : > { %16755 = vst [vmem:[#allocation7_spill] sm:$0xff] %v14651_v28  ;;  %v12898_v16 = vpop.f32.mrb[33].mxu1 }
 0x461   : > { %v14653_v10 = vpop.f32.mrb[26].mxu0 }
 0x462   : > { %16756 = vst [vmem:[#allocation8_spill] sm:$0xff] %v14653_v10  ;;  %v12893_v30 = vpop.f32.mrb[27].mxu0 }
 0x467   : > { %v14655_v37 = vpop.f32.mrb[34].mxu1 }
 0x468   : > { %16757 = vst [vmem:[#allocation9_spill] sm:$0xff] %v14655_v37  ;;  %v12908_v5 = vpop.f32.mrb[35].mxu1 }
 0x469   : > { %v14657_v23 = vpop.f32.mrb[28].mxu0 }
 0x46a   : > { %16758 = vst [vmem:[#allocation10_spill] sm:$0xff] %v14657_v23  ;;  %v12903_v9 = vpop.f32.mrb[29].mxu0 }
 0x471   : > { %v14659_v17 = vpop.f32.mrb[30].mxu0 }
 0x472   : > { %16759 = vst [vmem:[#allocation11_spill] sm:$0xff] %v14659_v17  ;;  %v12913_v20 = vpop.f32.mrb[31].mxu0 }
 0x475   : > { %v14661_v1 = vpop.f32.mrb[32].mxu0 }
 0x476   : > { %16760 = vst [vmem:[#allocation12_spill] sm:$0xff] %v14661_v1  ;;  %v12923_v39 = vpop.f32.mrb[33].mxu0 }
 0x479   : > { %v14663_v45 = vpop.f32.mrb[34].mxu0 }
 0x47a   : > { %16761 = vst [vmem:[#allocation13_spill] sm:$0xff] %v14663_v45  ;;  %v12933_v25 = vpop.f32.mrb[35].mxu0 }
 0x47d   : > { %v14665_v48 = vpop.f32.mrb[36].mxu0 }
 0x47e   : > { %16762 = vst [vmem:[#allocation14_spill] sm:$0xff] %v14665_v48  ;;  %v12943_v27 = vpop.f32.mrb[37].mxu0 }
 0x484   : > { %v3246_v12 = vpop.f32.mrb[38].mxu0 }
 0x485   : > { %v14667_v47 = vmul.f32 0.35355338, %v3246_v12  ;;  %v12953_v52 = vpop.f32.mrb[39].mxu0 }
 0x487   : > { %v4361_v22 = vsel %vm456_vm2, %v14667_v47, -inf }
 0x488   : > { %4362 = vmax.xlane.f32.xlu1 %v4361_v22  ;;  %v3402_v60 = vpop.f32.mrb[40].mxu0 }
 0x489   : > { %v12963_v44 = vpop.f32.mrb[41].mxu0  ;;  %v14683_v9 = vmul.f32 0.35355338, %v3402_v60 }
 0x48b   : > { %v4367_v52 = vsel %vm456_vm2, %v14683_v9, -inf }
 0x48c   : > { %v3558_v55 = vpop.f32.mrb[42].mxu0 }
 0x48d   : > { %v12973_v13 = vpop.f32.mrb[43].mxu0  ;;  %v14689_v12 = vmul.f32 0.35355338, %v3558_v55 }
 0x48f   : > { %v4373_v55 = vsel %vm456_vm2, %v14689_v12, -inf }
 0x490   : > { %v3714_v32 = vpop.f32.mrb[44].mxu0 }
 0x491   : > { %v12983_v2 = vpop.f32.mrb[45].mxu0 }
 0x4a8   : > { %v14671_v19 = vpop.f32.mrb[36].mxu1 }
 0x4a9   : > { %16763 = vst [vmem:[#allocation15_spill] sm:$0xff] %v14671_v19  ;;  %v12918_v18 = vpop.f32.mrb[37].mxu1 }
 0x4ab   : > { %v3870_v56 = vpop.f32.mrb[46].mxu0 }
 0x4ac   : > { %v14673_v4 = vpop.f32.mrb[38].mxu1  ;;  %v12993_v53 = vpop.f32.mrb[47].mxu0 }
 0x4ad   : > { %16764 = vst [vmem:[#allocation16_spill] sm:$0xff] %v14673_v4  ;;  %v12928_v6 = vpop.f32.mrb[39].mxu1  ;;  %v14697_v53 = vmul.f32 0.35355338, %v3714_v32 }
 0x4b0   : > { %v14675_v21 = vpop.f32.mrb[40].mxu1 }
 0x4b1   : > { %16765 = vst [vmem:[#allocation17_spill] sm:$0xff] %v14675_v21  ;;  %v12938_v8 = vpop.f32.mrb[41].mxu1 }
 0x4b3   : > { %v4026_v7 = vpop.f32.mrb[48].mxu0 }
 0x4b4   : > { %v13003_v33 = vpop.f32.mrb[49].mxu0 }
 0x4b7   : > { %v3168_v36 = vpop.f32.mrb[42].mxu1 }
 0x4b8   : > { %v14677_v61 = vmul.f32 0.35355338, %v3168_v36  ;;  %v12948_v62 = vpop.f32.mrb[43].mxu1 }
 0x4b9   : > { %v14705_v62 = vmul.f32 0.35355338, %v3870_v56 }
 0x4ba   : > { %v4358_v63 = vsel %vm456_vm2, %v14677_v61, -inf }
 0x4bb   : > { %4359 = vmax.xlane.f32.xlu0 %v4358_v63  ;;  %v3324_v0 = vpop.f32.mrb[44].mxu1  ;;  %v4182_v3 = vpop.f32.mrb[50].mxu0  ;;  %v4379_v63 = vsel %vm456_vm2, %v14697_v53, -inf }
 0x4bc   : > { %v14681_v16 = vmul.f32 0.35355338, %v3324_v0  ;;  %v12958_v30 = vpop.f32.mrb[45].mxu1  ;;  %v13013_v5 = vpop.f32.mrb[51].mxu0 }
 0x4be   : > { %v4364_v20 = vsel %vm456_vm2, %v14681_v16, -inf }
 0x4bf   : > { %4365 = vmax.xlane.f32.xlu0 %v4364_v20  ;;  %v3480_v39 = vpop.f32.mrb[46].mxu1  ;;  %v14713_v20 = vmul.f32 0.35355338, %v4026_v7 }
 0x4c0   : > { %v14687_v25 = vmul.f32 0.35355338, %v3480_v39  ;;  %v12968_v27 = vpop.f32.mrb[47].mxu1  ;;  %v4385_v39 = vsel %vm456_vm2, %v14705_v62, -inf }
 0x4c1   : > { %v14719_v27 = vpop.permute.xlu1 %4686  ;;  %v4391_v7 = vsel %vm456_vm2, %v14713_v20, -inf }
 0x4c2   : > { %v4370_v22 = vsel %vm456_vm2, %v14687_v25, -inf }
 0x4c3   : > { %4368 = vmax.xlane.f32.xlu0 %v4367_v52  ;;  %4371 = vmax.xlane.f32.xlu1 %v4370_v22  ;;  %v3636_v60 = vpop.f32.mrb[48].mxu1  ;;  %v4338_v44 = vpop.f32.mrb[52].mxu0 }
 0x4c4   : > { %v14695_v13 = vmul.f32 0.35355338, %v3636_v60  ;;  %v12978_v2 = vpop.f32.mrb[49].mxu1  ;;  %v13023_v18 = vpop.f32.mrb[53].mxu0 }
 0x4c5   : > { %v14723_v2 = vmul.f32 0.35355338, %v4182_v3 }
 0x4c6   : > { %v4376_v6 = vsel %vm456_vm2, %v14695_v13, -inf }
 0x4c7   : > { %4374 = vmax.xlane.f32.xlu0 %v4373_v55  ;;  %4377 = vmax.xlane.f32.xlu1 %v4376_v6  ;;  %v3792_v8 = vpop.f32.mrb[50].mxu1  ;;  %v4397_v3 = vsel %vm456_vm2, %v14723_v2, -inf }
 0x4c8   : > { %v14703_v33 = vmul.f32 0.35355338, %v3792_v8  ;;  %v12988_v36 = vpop.f32.mrb[51].mxu1 }
 0x4c9   : > { %v14731_v36 = vpop.permute.xlu1 %4838 }
 0x4ca   : > { %v4382_v32 = vsel %vm456_vm2, %v14703_v33, -inf }
 0x4cb   : > { %4380 = vmax.xlane.f32.xlu0 %v4379_v63  ;;  %4383 = vmax.xlane.f32.xlu1 %v4382_v32  ;;  %v3948_v0 = vpop.f32.mrb[52].mxu1  ;;  %v14733_v63 = vmul.f32 0.35355338, %v4338_v44 }
 0x4cc   : > { %v14711_v30 = vmul.f32 0.35355338, %v3948_v0  ;;  %v12998_v5 = vpop.f32.mrb[53].mxu1 }
 0x4cd   : > { %v4403_v0 = vsel %vm456_vm2, %v14733_v63, -inf  ;;  %v14741_v5 = vpop.permute.xlu1 %4914 }
 0x4ce   : > { %v4388_v56 = vsel %vm456_vm2, %v14711_v30, -inf }
 0x4cf   : > { %4386 = vmax.xlane.f32.xlu0 %v4385_v39  ;;  %4389 = vmax.xlane.f32.xlu1 %v4388_v56  ;;  %v4104_v52 = vpop.f32.mrb[54].mxu1 }
 0x4d0   : > { %v14721_v22 = vmul.f32 0.35355338, %v4104_v52  ;;  %v13008_v60 = vpop.f32.mrb[55].mxu1 }
 0x4d1   : > { %v14743_v39 = vpop.permute.xlu1 %5066 }
 0x4d2   : > { %v4394_v18 = vsel %vm456_vm2, %v14721_v22, -inf }
 0x4d3   : > { %4392 = vmax.xlane.f32.xlu0 %v4391_v7  ;;  %4395 = vmax.xlane.f32.xlu1 %v4394_v18  ;;  %v4260_v55 = vpop.f32.mrb[56].mxu1 }
 0x4d4   : > { %v14729_v6 = vmul.f32 0.35355338, %v4260_v55  ;;  %v13018_v8 = vpop.f32.mrb[57].mxu1 }
 0x4d5   : > { %v14745_v56 = vpop.permute.xlu1 %5218  ;;  %v14771_v8 = vpop.permute.xlu0 %4762 }
 0x4d6   : > { %v4400_v32 = vsel %vm456_vm2, %v14729_v6, -inf }
 0x4d7   : > { %4398 = vmax.xlane.f32.xlu0 %v4397_v3  ;;  %4401 = vmax.xlane.f32.xlu1 %v4400_v32 }
 0x4d9   : > { %v14751_v44 = vpop.permute.xlu1 %5370  ;;  %v14775_v32 = vpop.permute.xlu0 %4990 }
 0x4db   : > { %4404 = vmax.xlane.f32.xlu0 %v4403_v0 }
 0x4dd   : > { %v14757_v52 = vpop.permute.xlu1 %5522  ;;  %v14778_v45 = vpop.permute.xlu0 %5142 }
 0x4e1   : > { %v14761_v60 = vpop.permute.xlu1 %5674  ;;  %v14780_v21 = vpop.permute.xlu0 %5294 }
 0x4e5   : > { %v14765_v7 = vpop.permute.xlu1 %5830  ;;  %v14786_v17 = vpop.permute.xlu0 %5446 }
 0x4e8   : > { %6142 = vrot.lane.b32.xlu1 %v13977_v42, %s13851_s19 }
 0x4e9   : > { %v14767_v18 = vpop.permute.xlu1 %5828  ;;  %v14788_v19 = vpop.permute.xlu0 %5598 }
 0x4ea   : > { %16766 = vst [vmem:[#allocation18_spill] sm:$0xff] %v14767_v18 }
 0x4ec   : > { %6140 = vrot.lane.b32.xlu1 %v13977_v42, %s13852_s20 }
 0x4ed   : > { %v14769_v55 = vpop.permute.xlu1 %5986  ;;  %v14790_v23 = vpop.permute.xlu0 %5752 }
 0x4ee   : > { %16767 = vst [vmem:[#allocation19_spill] sm:$0xff] %v14769_v55 }
 0x4f0   : > { %6298 = vrot.lane.b32.xlu1 %v13981_v43, %s13851_s19 }
 0x4f1   : > { %6064 = vrot.lane.b32.xlu0 %v13973_v38, %s13851_s19  ;;  %v14773_v3 = vpop.permute.xlu1 %5984  ;;  %v14792_v37 = vpop.permute.xlu0 %5750 }
 0x4f2   : > { %16768 = vst [vmem:[#allocation20_spill] sm:$0xff] %v14773_v3 }
 0x4f5   : > { %6062 = vrot.lane.b32.xlu0 %v13973_v38, %s13852_s20 }
 0x4f9   : > { %6220 = vrot.lane.b32.xlu0 %v13975_v41, %s13851_s19 }
 0x515   : > { %v4363_v0 = vpop.xlane.xlu1 %4362 }
 0x516   : > { %v4407_v26 = vsub.f32 %v14667_v47, %v4363_v0 }
 0x518   : > { %v4424_v48 = vmul.f32 1.442695, %v4407_v26  ;;  %v14794_v26 = vpop.permute.xlu0 %5908 }
 0x51a   : > { %13564 = vpow2.f32 %v4424_v48 }
 0x51c   : > { %v14796_v47 = vpop.permute.xlu0 %5906 }
 0x51d   : > { %16769 = vst [vmem:[#allocation21_spill] sm:$0xff] %v14796_v47 }
 0x524   : > { %v14782_v1 = vpop.eup %13564 }
 0x525   : > { %v4457_v4 = vsel %vm456_vm2, %v14782_v1, 0.0 }
 0x526   : > { %4458 = vadd.xlane.f32.xlu0 %v4457_v4 }
 0x548   : > { %v4360_v48 = vpop.xlane.xlu0 %4359 }
 0x549   : > { %v4406_v0 = vsub.f32 %v14677_v61, %v4360_v48 }
 0x54b   : > { %v4422_v10 = vmul.f32 1.442695, %v4406_v0 }
 0x54c   : > { %v4366_v28 = vpop.xlane.xlu0 %4365 }
 0x54d   : > { %13566 = vpow2.f32 %v4422_v10  ;;  %v4408_v11 = vsub.f32 %v14681_v16, %v4366_v28 }
 0x54f   : > { %v4426_v14 = vmul.f32 1.442695, %v4408_v11 }
 0x550   : > { %v4372_v4 = vpop.xlane.xlu1 %4371  ;;  %v4369_v40 = vpop.xlane.xlu0 %4368 }
 0x551   : > { %13568 = vpow2.f32 %v4426_v14  ;;  %v4410_v15 = vsub.f32 %v14687_v25, %v4372_v4  ;;  %v4409_v24 = vsub.f32 %v14683_v9, %v4369_v40 }
 0x553   : > { %v4430_v3 = vmul.f32 1.442695, %v4410_v15  ;;  %v4428_v55 = vmul.f32 1.442695, %v4409_v24 }
 0x554   : > { %v4378_v18 = vpop.xlane.xlu1 %4377  ;;  %v4375_v47 = vpop.xlane.xlu0 %4374 }
 0x555   : > { %13570 = vpow2.f32 %v4430_v3  ;;  %v4412_v61 = vsub.f32 %v14695_v13, %v4378_v18  ;;  %v4411_v48 = vsub.f32 %v14689_v12, %v4375_v47 }
 0x556   : > { %13572 = vpow2.f32 %v4428_v55 }
 0x557   : > { %v14804_v10 = vpop.eup %13566  ;;  %v4434_v11 = vmul.f32 1.442695, %v4412_v61  ;;  %v4432_v28 = vmul.f32 1.442695, %v4411_v48 }
 0x558   : > { %v4384_v16 = vpop.xlane.xlu1 %4383  ;;  %v4381_v14 = vpop.xlane.xlu0 %4380  ;;  %v4454_v25 = vsel %vm456_vm2, %v14804_v10, 0.0 }
 0x559   : > { %13574 = vpow2.f32 %v4434_v11  ;;  %v4414_v24 = vsub.f32 %v14703_v33, %v4384_v16  ;;  %v4413_v40 = vsub.f32 %v14697_v53, %v4381_v14  ;;  %4455 = vadd.xlane.f32.xlu1 %v4454_v25 }
 0x55a   : > { %13576 = vpow2.f32 %v4432_v28 }
 0x55b   : > { %v14810_v15 = vpop.eup %13568  ;;  %v4438_v9 = vmul.f32 1.442695, %v4414_v24  ;;  %v4436_v12 = vmul.f32 1.442695, %v4413_v40 }
 0x55c   : > { %v4390_v13 = vpop.xlane.xlu1 %4389  ;;  %v4387_v18 = vpop.xlane.xlu0 %4386  ;;  %v4460_v55 = vsel %vm456_vm2, %v14810_v15, 0.0 }
 0x55d   : > { %13578 = vpow2.f32 %v4438_v9  ;;  %v4416_v3 = vsub.f32 %v14711_v30, %v4390_v13  ;;  %v4415_v47 = vsub.f32 %v14705_v62, %v4387_v18  ;;  %4461 = vadd.xlane.f32.xlu1 %v4460_v55 }
 0x55e   : > { %13580 = vpow2.f32 %v4436_v12 }
 0x55f   : > { %v14816_v33 = vpop.eup %13570  ;;  %v4442_v53 = vmul.f32 1.442695, %v4416_v3  ;;  %v4440_v0 = vmul.f32 1.442695, %v4415_v47 }
 0x560   : > { %v14818_v4 = vpop.eup %13572  ;;  %v4396_v61 = vpop.xlane.xlu1 %4395  ;;  %v4466_v11 = vsel %vm456_vm2, %v14816_v33, 0.0 }
 0x561   : > { %v4393_v48 = vpop.xlane.xlu0 %4392  ;;  %13582 = vpow2.f32 %v4442_v53  ;;  %v4418_v28 = vsub.f32 %v14721_v22, %v4396_v61  ;;  %4467 = vadd.xlane.f32.xlu1 %v4466_v11  ;;  %v4463_v62 = vsel %vm456_vm2, %v14818_v4, 0.0 }
 0x562   : > { %v4417_v30 = vsub.f32 %v14713_v20, %v4393_v48  ;;  %13584 = vpow2.f32 %v4440_v0  ;;  %4464 = vadd.xlane.f32.xlu0 %v4463_v62 }
 0x563   : > { %v14826_v16 = vpop.eup %13574  ;;  %v4446_v14 = vmul.f32 1.442695, %v4418_v28 }
 0x564   : > { %v4444_v25 = vmul.f32 1.442695, %v4417_v30  ;;  %v14828_v24 = vpop.eup %13576  ;;  %v4402_v40 = vpop.xlane.xlu1 %4401  ;;  %v4472_v12 = vsel %vm456_vm2, %v14826_v16, 0.0 }
 0x565   : > { %v4399_v9 = vpop.xlane.xlu0 %4398  ;;  %13586 = vpow2.f32 %v4446_v14  ;;  %v4420_v20 = vsub.f32 %v14729_v6, %v4402_v40  ;;  %4473 = vadd.xlane.f32.xlu1 %v4472_v12  ;;  %v4469_v13 = vsel %vm456_vm2, %v14828_v24, 0.0 }
 0x566   : > { %v4419_v22 = vsub.f32 %v14723_v2, %v4399_v9  ;;  %13588 = vpow2.f32 %v4444_v25  ;;  %4470 = vadd.xlane.f32.xlu0 %v4469_v13 }
 0x567   : > { %v14836_v18 = vpop.eup %13578  ;;  %v4450_v55 = vmul.f32 1.442695, %v4420_v20 }
 0x568   : > { %v4448_v3 = vmul.f32 1.442695, %v4419_v22  ;;  %v14838_v47 = vpop.eup %13580  ;;  %v4478_v0 = vsel %vm456_vm2, %v14836_v18, 0.0 }
 0x569   : > { %v4405_v53 = vpop.xlane.xlu0 %4404  ;;  %13590 = vpow2.f32 %v4450_v55  ;;  %4479 = vadd.xlane.f32.xlu1 %v4478_v0  ;;  %v4475_v2 = vsel %vm456_vm2, %v14838_v47, 0.0 }
 0x56a   : > { %v4421_v6 = vsub.f32 %v14733_v63, %v4405_v53  ;;  %13592 = vpow2.f32 %v4448_v3  ;;  %4476 = vadd.xlane.f32.xlu0 %v4475_v2 }
 0x56b   : > { %v14845_v61 = vpop.eup %13582 }
 0x56c   : > { %v4452_v48 = vmul.f32 1.442695, %v4421_v6  ;;  %v14847_v11 = vpop.eup %13584  ;;  %v4484_v28 = vsel %vm456_vm2, %v14845_v61, 0.0 }
 0x56d   : > { %4485 = vadd.xlane.f32.xlu1 %v4484_v28  ;;  %v4481_v30 = vsel %vm456_vm2, %v14847_v11, 0.0  ;;  %v14899_v55 = vpop.permute.xlu0 %6064 }
 0x56e   : > { %13594 = vpow2.f32 %v4452_v48  ;;  %4482 = vadd.xlane.f32.xlu0 %v4481_v30  ;;  %v16770_v48 = vmov 0.0  }
 0x56f   : > { %v14853_v63 = vpop.eup %13586 }
 0x570   : > { %v14855_v62 = vpop.eup %13588  ;;  %v4490_v14 = vsel %vm456_vm2, %v14853_v63, 0.0 }
 0x571   : > { %4491 = vadd.xlane.f32.xlu1 %v4490_v14  ;;  %v4487_v25 = vsel %vm456_vm2, %v14855_v62, 0.0  ;;  %v14907_v3 = vpop.permute.xlu0 %6062 }
 0x572   : > { %4488 = vadd.xlane.f32.xlu0 %v4487_v25 }
 0x573   : > { %v14861_v40 = vpop.eup %13590 }
 0x574   : > { %v14863_v9 = vpop.eup %13592  ;;  %v4496_v12 = vsel %vm456_vm2, %v14861_v40, 0.0 }
 0x575   : > { %4497 = vadd.xlane.f32.xlu1 %v4496_v12  ;;  %v4493_v20 = vsel %vm456_vm2, %v14863_v9, 0.0  ;;  %v14913_v53 = vpop.permute.xlu0 %6220 }
 0x576   : > { %4494 = vadd.xlane.f32.xlu0 %v4493_v20 }
 0x578   : > { %v14869_v22 = vpop.eup %13594 }
 0x579   : > { %v4499_v13 = vsel %vm456_vm2, %v14869_v22, 0.0 }
 0x57a   : > { %4500 = vadd.xlane.f32.xlu0 %v4499_v13 }
 0x586   : > { %6296 = vrot.lane.b32.xlu1 %v13981_v43, %s13852_s20 }
 0x58a   : > { %6454 = vrot.lane.b32.xlu1 %v13993_v50, %s13851_s19 }
 0x58e   : > { %6452 = vrot.lane.b32.xlu1 %v13993_v50, %s13852_s20 }
 0x590   : > { %6218 = vrot.lane.b32.xlu0 %v13975_v41, %s13852_s20 }
 0x592   : > { %6610 = vrot.lane.b32.xlu1 %v13997_v51, %s13851_s19 }
 0x594   : > { %6376 = vrot.lane.b32.xlu0 %v13987_v46, %s13851_s19 }
 0x596   : > { %6608 = vrot.lane.b32.xlu1 %v13997_v51, %s13852_s20 }
 0x598   : > { %6374 = vrot.lane.b32.xlu0 %v13987_v46, %s13852_s20 }
 0x59a   : > { %6766 = vrot.lane.b32.xlu1 %v14009_v58, %s13851_s19 }
 0x59c   : > { %6532 = vrot.lane.b32.xlu0 %v13991_v49, %s13851_s19 }
 0x59e   : > { %6764 = vrot.lane.b32.xlu1 %v14009_v58, %s13852_s20 }
 0x5a0   : > { %6530 = vrot.lane.b32.xlu0 %v13991_v49, %s13852_s20 }
 0x5a2   : > { %6922 = vrot.lane.b32.xlu1 %v14013_v59, %s13851_s19 }
 0x5a4   : > { %6688 = vrot.lane.b32.xlu0 %v14003_v54, %s13851_s19 }
 0x5a6   : > { %6920 = vrot.lane.b32.xlu1 %v14013_v59, %s13852_s20 }
 0x5a8   : > { %6686 = vrot.lane.b32.xlu0 %v14003_v54, %s13852_s20 }
 0x5aa   : > { %7190 = vrot.lane.b32.xlu1 %v13959_v31, %s13853_s21 }
 0x5ac   : > { %6844 = vrot.lane.b32.xlu0 %v14007_v57, %s13851_s19 }
 0x5ae   : > { %7342 = vrot.lane.b32.xlu1 %v13957_v29, %s13853_s21 }
 0x5b0   : > { %6842 = vrot.lane.b32.xlu0 %v14007_v57, %s13852_s20 }
 0x5b2   : > { %7494 = vrot.lane.b32.xlu1 %v13973_v38, %s13853_s21 }
 0x5b3   : > { %v4459_v0 = vpop.xlane.xlu0 %4458 }
 0x5b4   : > { %7266 = vrot.lane.b32.xlu0 %v13967_v35, %s13853_s21  ;;  %13596 = vrcp.f32 %v4459_v0 }
 0x5b6   : > { %7570 = vrot.lane.b32.xlu1 %v13977_v42, %s13853_s21 }
 0x5b8   : > { %7418 = vrot.lane.b32.xlu0 %v13965_v34, %s13853_s21 }
 0x5ba   : > { %7722 = vrot.lane.b32.xlu1 %v13981_v43, %s13853_s21 }
 0x5bc   : > { %7646 = vrot.lane.b32.xlu0 %v13975_v41, %s13853_s21 }
 0x5be   : > { %v13597_v6 = vpop.eup %13596  ;;  %7874 = vrot.lane.b32.xlu1 %v13993_v50, %s13853_s21 }
 0x5bf   : > { %v4519_v2 = vmul.f32 %v13597_v6, %v14782_v1  ;;  %v14945_v1 = vpop.permute.xlu1 %6142 }
 0x5c0   : > { %7798 = vrot.lane.b32.xlu0 %v13987_v46, %s13853_s21 }
 0x5c1   : > { %13032 = vmatmul.mubr.msk.f32.vlgmr.msra.gmra.mrb[54].mxu0 %vm456_vm2, %v4519_v2 }
 0x5c2   : > { %13040 = vmatpush3.msra.mxu0 %v14771_v8  ;;  %8026 = vrot.lane.b32.xlu1 %v13997_v51, %s13853_s21 }
 0x5c3   : > { %13041 = vmatprep.mubr.msk.f32.mxu0 %vm13845_vm1, %v16770_v48  ;;  %13049 = vmatprep.subr.mxu0 %v16770_v48  ;;  %v14953_v8 = vpop.permute.xlu1 %6140 }
 0x5c4   : > { %7950 = vrot.lane.b32.xlu0 %v13991_v49, %s13853_s21 }
 0x5c6   : > { %8178 = vrot.lane.b32.xlu1 %v14009_v58, %s13853_s21 }
 0x5c7   : > { %v14961_v28 = vpop.permute.xlu1 %6298 }
 0x5c8   : > { %8102 = vrot.lane.b32.xlu0 %v14003_v54, %s13853_s21 }
 0x5ca   : > { %8330 = vrot.lane.b32.xlu1 %v14013_v59, %s13853_s21 }
 0x5cc   : > { %8254 = vrot.lane.b32.xlu0 %v14007_v57, %s13853_s21 }
 0x5ce   : > { %8486 = vrot.lane.b32.xlu1 %v13967_v35, %s13854_s22 }
 0x5d0   : > { %8408 = vrot.lane.b32.xlu0 %v13959_v31, %s13854_s22 }
 0x5d2   : > { %8484 = vrot.lane.b32.xlu1 %v13967_v35, %s13855_s23 }
 0x5d4   : > { %8406 = vrot.lane.b32.xlu0 %v13959_v31, %s13855_s23 }
 0x5d6   : > { %8642 = vrot.lane.b32.xlu1 %v13965_v34, %s13854_s22 }
 0x5d8   : > { %8564 = vrot.lane.b32.xlu0 %v13957_v29, %s13854_s22 }
 0x5da   : > { %8640 = vrot.lane.b32.xlu1 %v13965_v34, %s13855_s23 }
 0x5dc   : > { %8562 = vrot.lane.b32.xlu0 %v13957_v29, %s13855_s23 }
 0x5de   : > { %8798 = vrot.lane.b32.xlu1 %v13977_v42, %s13854_s22 }
 0x5e0   : > { %8720 = vrot.lane.b32.xlu0 %v13973_v38, %s13854_s22 }
 0x5e2   : > { %8796 = vrot.lane.b32.xlu1 %v13977_v42, %s13855_s23 }
 0x5e4   : > { %8718 = vrot.lane.b32.xlu0 %v13973_v38, %s13855_s23 }
 0x5e6   : > { %v4456_v30 = vpop.xlane.xlu1 %4455 }
 0x5e7   : > { %13598 = vrcp.f32 %v4456_v30 }
 0x5ea   : > { %v4462_v14 = vpop.xlane.xlu1 %4461 }
 0x5eb   : > { %13600 = vrcp.f32 %v4462_v14 }
 0x5ee   : > { %v4468_v25 = vpop.xlane.xlu1 %4467 }
 0x5ef   : > { %13602 = vrcp.f32 %v4468_v25  ;;  %v4465_v12 = vpop.xlane.xlu0 %4464 }
 0x5f0   : > { %13604 = vrcp.f32 %v4465_v12 }
 0x5f1   : > { %v13599_v20 = vpop.eup %13598 }
 0x5f2   : > { %v4474_v13 = vpop.xlane.xlu1 %4473  ;;  %v4518_v0 = vmul.f32 %v13599_v20, %v14804_v10 }
 0x5f3   : > { %13606 = vrcp.f32 %v4474_v13  ;;  %v4471_v6 = vpop.xlane.xlu0 %4470 }
 0x5f4   : > { %13608 = vrcp.f32 %v4471_v6  ;;  %13027 = vmatmul.mubr.msk.f32.vlgmr.msra.gmra.mrb[58].mxu1 %vm456_vm2, %v4518_v0 }
 0x5f5   : > { %v13601_v2 = vpop.eup %13600  ;;  %13035 = vmatpush3.msra.mxu1 %v14719_v27  ;;  %13036 = vmatprep.mubr.msk.f32.mxu1 %vm13845_vm1, %v16770_v48 }
 0x5f6   : > { %v4480_v30 = vpop.xlane.xlu1 %4479  ;;  %13044 = vmatprep.subr.mxu1 %v16770_v48  ;;  %v4520_v14 = vmul.f32 %v13601_v2, %v14810_v15 }
 0x5f7   : > { %13610 = vrcp.f32 %v4480_v30  ;;  %v4477_v25 = vpop.xlane.xlu0 %4476 }
 0x5f8   : > { %13612 = vrcp.f32 %v4477_v25  ;;  %13037 = vmatmul.mubr.msk.f32.vlgmr.msra.gmra.mrb[60].mxu1 %vm456_vm2, %v4520_v14 }
 0x5f9   : > { %v13603_v10 = vpop.eup %13602  ;;  %13045 = vmatpush3.msra.mxu1 %v14731_v36  ;;  %13046 = vmatprep.mubr.msk.f32.mxu1 %vm13845_vm1, %v16770_v48 }
 0x5fa   : > { %v13605_v27 = vpop.eup %13604  ;;  %v4486_v12 = vpop.xlane.xlu1 %4485  ;;  %13054 = vmatprep.subr.mxu1 %v16770_v48  ;;  %v4522_v20 = vmul.f32 %v13603_v10, %v14816_v33 }
 0x5fb   : > { %13614 = vrcp.f32 %v4486_v12  ;;  %v4483_v13 = vpop.xlane.xlu0 %4482  ;;  %v4521_v15 = vmul.f32 %v13605_v27, %v14818_v4 }
 0x5fc   : > { %13616 = vrcp.f32 %v4483_v13  ;;  %13047 = vmatmul.mubr.msk.f32.vlgmr.msra.gmra.mrb[62].mxu1 %vm456_vm2, %v4522_v20 }
 0x5fd   : > { %v13607_v0 = vpop.eup %13606  ;;  %13042 = vmatmul.mubr.msk.f32.vlgmr.msra.gmra.mrb[56].mxu0 %vm456_vm2, %v4521_v15  ;;  %13055 = vmatpush3.msra.mxu1 %v14775_v32 }
 0x5fe   : > { %v13609_v36 = vpop.eup %13608  ;;  %13050 = vmatpush3.msra.mxu0 %v14741_v5  ;;  %v4492_v6 = vpop.xlane.xlu1 %4491  ;;  %13051 = vmatprep.mubr.msk.f32.mxu0 %vm13845_vm1, %v16770_v48  ;;  %v4524_v33 = vmul.f32 %v13607_v0, %v14826_v16 }
 0x5ff   : > { %13618 = vrcp.f32 %v4492_v6  ;;  %v4489_v2 = vpop.xlane.xlu0 %4488  ;;  %13056 = vmatprep.mubr.msk.f32.mxu1 %vm13845_vm1, %v16770_v48  ;;  %13059 = vmatprep.subr.mxu0 %v16770_v48  ;;  %v4523_v4 = vmul.f32 %v13609_v36, %v14828_v24 }
 0x600   : > { %13620 = vrcp.f32 %v4489_v2  ;;  %13064 = vmatprep.subr.mxu1 %v16770_v48  ;;  %13057 = vmatmul.mubr.msk.f32.vlgmr.msra.gmra.mrb[64].mxu1 %vm456_vm2, %v4524_v33 }
 0x601   : > { %v13611_v5 = vpop.eup %13610  ;;  %13052 = vmatmul.mubr.msk.f32.vlgmr.msra.gmra.mrb[58].mxu0 %vm456_vm2, %v4523_v4  ;;  %13065 = vmatpush3.msra.mxu1 %v14778_v45 }
 0x602   : > { %v13613_v32 = vpop.eup %13612  ;;  %13060 = vmatpush3.msra.mxu0 %v14743_v39  ;;  %v4498_v16 = vpop.xlane.xlu1 %4497  ;;  %13061 = vmatprep.mubr.msk.f32.mxu0 %vm13845_vm1, %v16770_v48  ;;  %v4526_v30 = vmul.f32 %v13611_v5, %v14836_v18 }
 0x603   : > { %13622 = vrcp.f32 %v4498_v16  ;;  %v4495_v24 = vpop.xlane.xlu0 %4494  ;;  %13066 = vmatprep.mubr.msk.f32.mxu1 %vm13845_vm1, %v16770_v48  ;;  %13069 = vmatprep.subr.mxu0 %v16770_v48  ;;  %v4525_v14 = vmul.f32 %v13613_v32, %v14838_v47 }
 0x604   : > { %13624 = vrcp.f32 %v4495_v24  ;;  %13074 = vmatprep.subr.mxu1 %v16770_v48  ;;  %13067 = vmatmul.mubr.msk.f32.vlgmr.msra.gmra.mrb[66].mxu1 %vm456_vm2, %v4526_v30 }
 0x605   : > { %v13615_v45 = vpop.eup %13614  ;;  %13062 = vmatmul.mubr.msk.f32.vlgmr.msra.gmra.mrb[60].mxu0 %vm456_vm2, %v4525_v14  ;;  %13075 = vmatpush3.msra.mxu1 %v14780_v21 }
 0x606   : > { %v13617_v39 = vpop.eup %13616  ;;  %13070 = vmatpush3.msra.mxu0 %v14745_v56  ;;  %v15009_v18 = vpop.permute.xlu1 %6296  ;;  %13071 = vmatprep.mubr.msk.f32.mxu0 %vm13845_vm1, %v16770_v48  ;;  %v4528_v47 = vmul.f32 %v13615_v45, %v14845_v61 }
 0x607   : > { %v4501_v25 = vpop.xlane.xlu0 %4500  ;;  %13076 = vmatprep.mubr.msk.f32.mxu1 %vm13845_vm1, %v16770_v48  ;;  %13079 = vmatprep.subr.mxu0 %v16770_v48  ;;  %v4527_v10 = vmul.f32 %v13617_v39, %v14847_v11 }
 0x608   : > { %13626 = vrcp.f32 %v4501_v25  ;;  %13084 = vmatprep.subr.mxu1 %v16770_v48  ;;  %13077 = vmatmul.mubr.msk.f32.vlgmr.msra.gmra.mrb[68].mxu1 %vm456_vm2, %v4528_v47 }
 0x609   : > { %v13619_v21 = vpop.eup %13618  ;;  %13072 = vmatmul.mubr.msk.f32.vlgmr.msra.gmra.mrb[62].mxu0 %vm456_vm2, %v4527_v10  ;;  %13085 = vmatpush3.msra.mxu1 %v14786_v17 }
 0x60a   : > { %v13621_v56 = vpop.eup %13620  ;;  %13080 = vmatpush3.msra.mxu0 %v14751_v44  ;;  %v15023_v61 = vpop.permute.xlu1 %6454  ;;  %13081 = vmatprep.mubr.msk.f32.mxu0 %vm13845_vm1, %v16770_v48  ;;  %v4530_v11 = vmul.f32 %v13619_v21, %v14853_v63 }
 0x60b   : > { %v6219_v27 = vpop.permute.xlu0 %6218  ;;  %13086 = vmatprep.mubr.msk.f32.mxu1 %vm13845_vm1, %v16770_v48  ;;  %13089 = vmatprep.subr.mxu0 %v16770_v48  ;;  %v4529_v12 = vmul.f32 %v13621_v56, %v14855_v62 }
 0x60c   : > { %13094 = vmatprep.subr.mxu1 %v16770_v48  ;;  %13087 = vmatmul.mubr.msk.f32.vlgmr.msra.gmra.mrb[70].mxu1 %vm456_vm2, %v4530_v11 }
 0x60d   : > { %v13623_v17 = vpop.eup %13622  ;;  %13082 = vmatmul.mubr.msk.f32.vlgmr.msra.gmra.mrb[64].mxu0 %vm456_vm2, %v4529_v12  ;;  %13095 = vmatpush3.msra.mxu1 %v14788_v19 }
 0x60e   : > { %v13625_v44 = vpop.eup %13624  ;;  %13090 = vmatpush3.msra.mxu0 %v14757_v52  ;;  %v15037_v63 = vpop.permute.xlu1 %6452  ;;  %13091 = vmatprep.mubr.msk.f32.mxu0 %vm13845_vm1, %v16770_v48  ;;  %v4532_v20 = vmul.f32 %v13623_v17, %v14861_v40 }
 0x60f   : > { %v6377_v62 = vpop.permute.xlu0 %6376  ;;  %13096 = vmatprep.mubr.msk.f32.mxu1 %vm13845_vm1, %v16770_v48  ;;  %13099 = vmatprep.subr.mxu0 %v16770_v48  ;;  %v4531_v13 = vmul.f32 %v13625_v44, %v14863_v9 }
 0x610   : > { %13097 = vmatmul.mubr.msk.f32.vlgmr.msra.gmra.mrb[72].mxu1 %vm456_vm2, %v4532_v20  ;;  %13104 = vmatprep.subr.mxu1 %v16770_v48 }
 0x611   : > { %13092 = vmatmul.mubr.msk.f32.vlgmr.msra.gmra.mrb[66].mxu0 %vm456_vm2, %v4531_v13  ;;  %13106 = vmatprep.mubr.msk.f32.mxu1 %vm13845_vm1, %v16770_v48 }
 0x612   : > { %v13627_v19 = vpop.eup %13626  ;;  %13100 = vmatpush3.msra.mxu0 %v14761_v60  ;;  %v6611_v52 = vpop.permute.xlu1 %6610  ;;  %13101 = vmatprep.mubr.msk.f32.mxu0 %vm13845_vm1, %v16770_v48 }
 0x613   : > { %v6375_v40 = vpop.permute.xlu0 %6374  ;;  %v4533_v15 = vmul.f32 %v13627_v19, %v14869_v22  ;;  %13109 = vmatprep.subr.mxu0 %v16770_v48 }
 0x614   : > { %13105 = vmatpush3.xpose.msk.msra.mxu1 %vm456_vm2, %v14790_v23  ;;  %v16771_v23 = vld [vmem:[#allocation21_spill] sm:$0xff] }
 0x615   : > { %13102 = vmatmul.mubr.msk.f32.vlgmr.msra.gmra.mrb[68].mxu0 %vm456_vm2, %v4533_v15  ;;  %13114 = vmatprep.subr.mxu1 %v16770_v48 }
 0x616   : > { %v6609_v9 = vpop.permute.xlu1 %6608  ;;  %13111 = vmatprep.mubr.msk.f32.mxu0 %vm13845_vm1, %v16770_v48 }
 0x617   : > { %13107 = vmatmul.mubr.msk.f32.vlgmr.msra.gmra.mrb[74].mxu1 %vm456_vm2, %v14792_v37  ;;  %v6533_v60 = vpop.permute.xlu0 %6532  ;;  %v16772_v37 = vld [vmem:[#allocation18_spill] sm:$0xff] }
 0x618   : > { %13115 = vmatpush3.xpose.msk.msra.mxu1 %vm456_vm2, %v14794_v26  ;;  %13116 = vmatprep.mubr.msk.f32.mxu1 %vm13845_vm1, %v16770_v48  ;;  %v16773_v26 = vld [vmem:[#allocation19_spill] sm:$0xff] }
 0x619   : > { %13110 = vmatpush3.xpose.msk.msra.mxu0 %vm456_vm2, %v14765_v7  ;;  %13124 = vmatprep.subr.mxu1 %v16770_v48  ;;  %v16774_v7 = vld [vmem:[#allocation20_spill] sm:$0xff] }
 0x61a   : > { %13119 = vmatprep.subr.mxu0 %v16770_v48  ;;  %v6767_v22 = vpop.permute.xlu1 %6766 }
 0x61b   : > { %13117 = vmatmul.mubr.msk.f32.vlgmr.msra.gmra.mrb[76].mxu1 %vm456_vm2, %v16771_v23  ;;  %v6531_v0 = vpop.permute.xlu0 %6530 }
 0x61c   : > { %13112 = vmatmul.mubr.msk.f32.vlgmr.msra.gmra.mrb[70].mxu0 %vm456_vm2, %v16772_v37  ;;  %13125 = vmatpush3.xpose.msk.msra.mxu1 %vm456_vm2, %v14899_v55 }
 0x61d   : > { %13120 = vmatpush3.xpose.msk.msra.mxu0 %vm456_vm2, %v16773_v26  ;;  %13121 = vmatprep.mubr.msk.f32.mxu0 %vm13845_vm1, %v16770_v48 }
 0x61e   : > { %13126 = vmatprep.mubr.msk.f32.mxu1 %vm13845_vm1, %v16770_v48  ;;  %13129 = vmatprep.subr.mxu0 %v16770_v48  ;;  %v6765_v36 = vpop.permute.xlu1 %6764 }
 0x61f   : > { %13127 = vmatmul.mubr.msk.f32.vlgmr.msra.gmra.mrb[78].mxu1 %vm456_vm2, %v14907_v3  ;;  %13134 = vmatprep.subr.mxu1 %v16770_v48  ;;  %v6689_v55 = vpop.permute.xlu0 %6688 }
 0x620   : > { %13122 = vmatmul.mubr.msk.f32.vlgmr.msra.gmra.mrb[72].mxu0 %vm456_vm2, %v16774_v7  ;;  %13135 = vmatpush3.xpose.msk.msra.mxu1 %vm456_vm2, %v14913_v53 }
 0x621   : > { %13130 = vmatpush3.xpose.msk.msra.mxu0 %vm456_vm2, %v14945_v1  ;;  %13131 = vmatprep.mubr.msk.f32.mxu0 %vm13845_vm1, %v16770_v48 }
 0x622   : > { %13136 = vmatprep.mubr.msk.f32.mxu1 %vm13845_vm1, %v16770_v48  ;;  %13139 = vmatprep.subr.mxu0 %v16770_v48  ;;  %v6923_v53 = vpop.permute.xlu1 %6922 }
 0x623   : > { %13137 = vmatmul.mubr.msk.f32.vlgmr.msra.gmra.mrb[80].mxu1 %vm456_vm2, %v6219_v27  ;;  %13144 = vmatprep.subr.mxu1 %v16770_v48  ;;  %v6687_v3 = vpop.permute.xlu0 %6686 }
 0x624   : > { %13132 = vmatmul.mubr.msk.f32.vlgmr.msra.gmra.mrb[74].mxu0 %vm456_vm2, %v14953_v8  ;;  %13145 = vmatpush3.xpose.msk.msra.mxu1 %vm456_vm2, %v6377_v62 }
 0x625   : > { %13140 = vmatpush3.xpose.msk.msra.mxu0 %vm456_vm2, %v14961_v28  ;;  %13141 = vmatprep.mubr.msk.f32.mxu0 %vm13845_vm1, %v16770_v48 }
 0x626   : > { %13146 = vmatprep.mubr.msk.f32.mxu1 %vm13845_vm1, %v16770_v48  ;;  %13149 = vmatprep.subr.mxu0 %v16770_v48  ;;  %v6921_v8 = vpop.permute.xlu1 %6920 }
 0x627   : > { %13147 = vmatmul.mubr.msk.f32.vlgmr.msra.gmra.mrb[82].mxu1 %vm456_vm2, %v6375_v40  ;;  %13154 = vmatprep.subr.mxu1 %v16770_v48  ;;  %v6845_v1 = vpop.permute.xlu0 %6844 }
 0x628   : > { %13142 = vmatmul.mubr.msk.f32.vlgmr.msra.gmra.mrb[76].mxu0 %vm456_vm2, %v15009_v18  ;;  %13155 = vmatpush3.xpose.msk.msra.mxu1 %vm456_vm2, %v6533_v60 }
 0x629   : > { %13150 = vmatpush3.xpose.msk.msra.mxu0 %vm456_vm2, %v15023_v61  ;;  %13151 = vmatprep.mubr.msk.f32.mxu0 %vm13845_vm1, %v16770_v48 }
 0x62a   : > { %13156 = vmatprep.mubr.msk.f32.mxu1 %vm13845_vm1, %v16770_v48  ;;  %13159 = vmatprep.subr.mxu0 %v16770_v48  ;;  %v7191_v6 = vpop.permute.xlu1 %7190 }
 0x62b   : > { %13157 = vmatmul.mubr.msk.f32.vlgmr.msra.gmra.mrb[84].mxu1 %vm456_vm2, %v6531_v0  ;;  %13164 = vmatprep.subr.mxu1 %v16770_v48  ;;  %v6843_v28 = vpop.permute.xlu0 %6842 }
 0x62c   : > { %13152 = vmatmul.mubr.msk.f32.vlgmr.msra.gmra.mrb[78].mxu0 %vm456_vm2, %v15037_v63  ;;  %13165 = vmatpush3.xpose.msk.msra.mxu1 %vm456_vm2, %v6689_v55 }
 0x62d   : > { %13160 = vmatpush3.xpose.msk.msra.mxu0 %vm456_vm2, %v6611_v52  ;;  %13161 = vmatprep.mubr.msk.f32.mxu0 %vm13845_vm1, %v16770_v48 }
 0x62e   : > { %13166 = vmatprep.mubr.msk.f32.mxu1 %vm13845_vm1, %v16770_v48  ;;  %13169 = vmatprep.subr.mxu0 %v16770_v48 }
 0x62f   : > { %13167 = vmatmul.mubr.msk.f32.vlgmr.msra.gmra.mrb[86].mxu1 %vm456_vm2, %v6687_v3  ;;  %13174 = vmatprep.subr.mxu1 %v16770_v48  ;;  %v7267_v33 = vpop.permute.xlu0 %7266 }
 0x630   : > { %13162 = vmatmul.mubr.msk.f32.vlgmr.msra.gmra.mrb[80].mxu0 %vm456_vm2, %v6609_v9  ;;  %13175 = vmatpush3.xpose.msk.msra.mxu1 %vm456_vm2, %v6845_v1 }
 0x631   : > { %13170 = vmatpush3.xpose.msk.msra.mxu0 %vm456_vm2, %v6767_v22  ;;  %13171 = vmatprep.mubr.msk.f32.mxu0 %vm13845_vm1, %v16770_v48 }
 0x632   : > { %13176 = vmatprep.mubr.msk.f32.mxu1 %vm13845_vm1, %v16770_v48  ;;  %13179 = vmatprep.subr.mxu0 %v16770_v48 }
 0x633   : > { %13177 = vmatmul.mubr.msk.f32.vlgmr.msra.gmra.mrb[88].mxu1 %vm456_vm2, %v6843_v28  ;;  %13184 = vmatprep.subr.mxu1 %v16770_v48 }
 0x634   : > { %13172 = vmatmul.mubr.msk.f32.vlgmr.msra.gmra.mrb[82].mxu0 %vm456_vm2, %v6765_v36  ;;  %13185 = vmatpush3.msra.mxu1 %v7191_v6 }
 0x635   : > { %13180 = vmatpush3.xpose.msk.msra.mxu0 %vm456_vm2, %v6923_v53  ;;  %13181 = vmatprep.mubr.msk.f32.mxu0 %vm13845_vm1, %v16770_v48 }
 0x636   : > { %13189 = vmatprep.subr.mxu0 %v16770_v48  ;;  %13186 = vmatprep.mubr.msk.f32.mxu1 %vm13845_vm1, %v16770_v48 }
 0x637   : > { %13194 = vmatprep.subr.mxu1 %v16770_v48 }
 0x638   : > { %13182 = vmatmul.mubr.msk.f32.vlgmr.msra.gmra.mrb[84].mxu0 %vm456_vm2, %v6921_v8 }
 0x639   : > { %13190 = vmatpush3.msra.mxu0 %v7267_v33  ;;  %13191 = vmatprep.mubr.msk.f32.mxu0 %vm13845_vm1, %v16770_v48 }
 0x63a   : > { %13199 = vmatprep.subr.mxu0 %v16770_v48 }
 0x694   : > { %v15158_v2 = vpop.f32.mrb[54].mxu0 }
 0x695   : > { %16775 = vst [vmem:[#allocation21_spill] sm:$0xff] %v15158_v2  ;;  %v13033_v4 = vpop.f32.mrb[55].mxu0 }
 0x6c7   : > { %v15160_v5 = vpop.f32.mrb[58].mxu1 }
 0x6c8   : > { %16776 = vst [vmem:[#allocation18_spill] sm:$0xff] %v15160_v5  ;;  %v13028_v32 = vpop.f32.mrb[59].mxu1 }
 0x6cb   : > { %v15162_v16 = vpop.f32.mrb[60].mxu1 }
 0x6cc   : > { %16777 = vst [vmem:[#allocation19_spill] sm:$0xff] %v15162_v16  ;;  %v13038_v30 = vpop.f32.mrb[61].mxu1 }
 0x6cf   : > { %v15164_v24 = vpop.f32.mrb[62].mxu1 }
 0x6d0   : > { %16778 = vst [vmem:[#allocation20_spill] sm:$0xff] %v15164_v24  ;;  %v15166_v14 = vpop.f32.mrb[56].mxu0  ;;  %v13048_v45 = vpop.f32.mrb[63].mxu1 }
 0x6d1   : > { %16779 = vst [vmem:[#allocation22_spill] sm:$0xff] %v15166_v14  ;;  %v13043_v39 = vpop.f32.mrb[57].mxu0 }
 0x6d3   : > { %v15168_v18 = vpop.f32.mrb[64].mxu1 }
 0x6d4   : > { %16780 = vst [vmem:[#allocation23_spill] sm:$0xff] %v15168_v18  ;;  %v15170_v47 = vpop.f32.mrb[58].mxu0  ;;  %v13058_v25 = vpop.f32.mrb[65].mxu1 }
 0x6d5   : > { %16781 = vst [vmem:[#allocation24_spill] sm:$0xff] %v15170_v47  ;;  %v13053_v10 = vpop.f32.mrb[59].mxu0 }
 0x6d7   : > { %v15172_v21 = vpop.f32.mrb[66].mxu1 }
 0x6d8   : > { %16782 = vst [vmem:[#allocation25_spill] sm:$0xff] %v15172_v21  ;;  %v15174_v56 = vpop.f32.mrb[60].mxu0  ;;  %v13068_v61 = vpop.f32.mrb[67].mxu1 }
 0x6d9   : > { %16783 = vst [vmem:[#allocation26_spill] sm:$0xff] %v15174_v56  ;;  %v13063_v11 = vpop.f32.mrb[61].mxu0 }
 0x6db   : > { %v15176_v27 = vpop.f32.mrb[68].mxu1 }
 0x6dc   : > { %16784 = vst [vmem:[#allocation27_spill] sm:$0xff] %v15176_v27  ;;  %v15178_v12 = vpop.f32.mrb[62].mxu0  ;;  %v13078_v17 = vpop.f32.mrb[69].mxu1 }
 0x6dd   : > { %16785 = vst [vmem:[#allocation28_spill] sm:$0xff] %v15178_v12  ;;  %v13073_v44 = vpop.f32.mrb[63].mxu0 }
 0x6df   : > { %v15180_v63 = vpop.f32.mrb[70].mxu1 }
 0x6e0   : > { %16786 = vst [vmem:[#allocation29_spill] sm:$0xff] %v15180_v63  ;;  %v15182_v20 = vpop.f32.mrb[64].mxu0  ;;  %v13088_v62 = vpop.f32.mrb[71].mxu1 }
 0x6e1   : > { %16787 = vst [vmem:[#allocation30_spill] sm:$0xff] %v15182_v20  ;;  %v13083_v13 = vpop.f32.mrb[65].mxu0 }
 0x6e3   : > { %v15184_v19 = vpop.f32.mrb[72].mxu1 }
 0x6e4   : > { %16788 = vst [vmem:[#allocation31_spill] sm:$0xff] %v15184_v19  ;;  %v15186_v52 = vpop.f32.mrb[66].mxu0  ;;  %v13098_v40 = vpop.f32.mrb[73].mxu1 }
 0x6e5   : > { %16789 = vst [vmem:[#allocation32_spill] sm:$0xff] %v15186_v52  ;;  %v13093_v15 = vpop.f32.mrb[67].mxu0 }
 0x6e8   : > { %v15188_v9 = vpop.f32.mrb[68].mxu0 }
 0x6e9   : > { %16790 = vst [vmem:[#allocation33_spill] sm:$0xff] %v15188_v9  ;;  %v13103_v60 = vpop.f32.mrb[69].mxu0 }
 0x6ea   : > { %v5824_v23 = vpop.f32.mrb[74].mxu1 }
 0x6eb   : > { %v15190_v22 = vmul.f32 0.35355338, %v5824_v23  ;;  %v13108_v0 = vpop.f32.mrb[75].mxu1 }
 0x6ed   : > { %v7014_v37 = vsel %vm456_vm2, %v15190_v22, -inf }
 0x6ee   : > { %v5980_v26 = vpop.f32.mrb[76].mxu1  ;;  %7015 = vmax.xlane.f32.xlu0 %v7014_v37 }
 0x6ef   : > { %v15194_v7 = vmul.f32 0.35355338, %v5980_v26  ;;  %v5902_v55 = vpop.f32.mrb[70].mxu0  ;;  %v13118_v36 = vpop.f32.mrb[77].mxu1 }
 0x6f0   : > { %v15196_v3 = vmul.f32 0.35355338, %v5902_v55  ;;  %v13113_v53 = vpop.f32.mrb[71].mxu0 }
 0x6f1   : > { %v7020_v1 = vsel %vm456_vm2, %v15194_v7, -inf }
 0x6f2   : > { %7021 = vmax.xlane.f32.xlu0 %v7020_v1  ;;  %v6136_v8 = vpop.f32.mrb[78].mxu1  ;;  %v7017_v28 = vsel %vm456_vm2, %v15196_v3, -inf }
 0x6f3   : > { %v15202_v6 = vmul.f32 0.35355338, %v6136_v8  ;;  %7018 = vmax.xlane.f32.xlu1 %v7017_v28  ;;  %v6058_v33 = vpop.f32.mrb[72].mxu0  ;;  %v13128_v4 = vpop.f32.mrb[79].mxu1 }
 0x6f4   : > { %v15204_v32 = vmul.f32 0.35355338, %v6058_v33  ;;  %v13123_v30 = vpop.f32.mrb[73].mxu0 }
 0x6f5   : > { %v7026_v45 = vsel %vm456_vm2, %v15202_v6, -inf }
 0x6f6   : > { %v7023_v39 = vsel %vm456_vm2, %v15204_v32, -inf  ;;  %v6292_v25 = vpop.f32.mrb[80].mxu1 }
 0x6f7   : > { %7027 = vmax.xlane.f32.xlu1 %v7026_v45  ;;  %7024 = vmax.xlane.f32.xlu0 %v7023_v39  ;;  %v6214_v10 = vpop.f32.mrb[74].mxu0  ;;  %v15210_v61 = vmul.f32 0.35355338, %v6292_v25  ;;  %v13138_v11 = vpop.f32.mrb[81].mxu1 }
 0x6f8   : > { %v15212_v17 = vmul.f32 0.35355338, %v6214_v10  ;;  %v13133_v44 = vpop.f32.mrb[75].mxu0 }
 0x6f9   : > { %v7032_v62 = vsel %vm456_vm2, %v15210_v61, -inf }
 0x6fa   : > { %v7029_v13 = vsel %vm456_vm2, %v15212_v17, -inf  ;;  %v6448_v40 = vpop.f32.mrb[82].mxu1 }
 0x6fb   : > { %7030 = vmax.xlane.f32.xlu0 %v7029_v13  ;;  %v6370_v15 = vpop.f32.mrb[76].mxu0  ;;  %7033 = vmax.xlane.f32.xlu1 %v7032_v62  ;;  %v15218_v60 = vmul.f32 0.35355338, %v6448_v40  ;;  %v13148_v23 = vpop.f32.mrb[83].mxu1 }
 0x6fc   : > { %v15220_v0 = vmul.f32 0.35355338, %v6370_v15  ;;  %v13143_v37 = vpop.f32.mrb[77].mxu0 }
 0x6fd   : > { %v7038_v26 = vsel %vm456_vm2, %v15218_v60, -inf }
 0x6fe   : > { %v7035_v55 = vsel %vm456_vm2, %v15220_v0, -inf  ;;  %v6604_v36 = vpop.f32.mrb[84].mxu1 }
 0x6ff   : > { %7036 = vmax.xlane.f32.xlu0 %v7035_v55  ;;  %v6526_v53 = vpop.f32.mrb[78].mxu0  ;;  %7039 = vmax.xlane.f32.xlu1 %v7038_v26  ;;  %v15226_v1 = vmul.f32 0.35355338, %v6604_v36  ;;  %v13158_v8 = vpop.f32.mrb[85].mxu1 }
 0x700   : > { %v15228_v28 = vmul.f32 0.35355338, %v6526_v53  ;;  %v13153_v33 = vpop.f32.mrb[79].mxu0 }
 0x701   : > { %v7044_v4 = vsel %vm456_vm2, %v15226_v1, -inf }
 0x702   : > { %v7041_v30 = vsel %vm456_vm2, %v15228_v28, -inf  ;;  %v6760_v45 = vpop.f32.mrb[86].mxu1 }
 0x703   : > { %7042 = vmax.xlane.f32.xlu0 %v7041_v30  ;;  %v6682_v39 = vpop.f32.mrb[80].mxu0  ;;  %7045 = vmax.xlane.f32.xlu1 %v7044_v4  ;;  %v15234_v25 = vmul.f32 0.35355338, %v6760_v45  ;;  %v13168_v10 = vpop.f32.mrb[87].mxu1 }
 0x704   : > { %v15236_v11 = vmul.f32 0.35355338, %v6682_v39  ;;  %v13163_v44 = vpop.f32.mrb[81].mxu0  ;;  %v15258_v45 = vpop.permute.xlu1 %7342 }
 0x705   : > { %v7050_v62 = vsel %vm456_vm2, %v15234_v25, -inf  ;;  %v15262_v10 = vpop.permute.xlu0 %7418 }
 0x706   : > { %v7047_v13 = vsel %vm456_vm2, %v15236_v11, -inf  ;;  %v6916_v40 = vpop.f32.mrb[88].mxu1 }
 0x707   : > { %7048 = vmax.xlane.f32.xlu0 %v7047_v13  ;;  %v6838_v15 = vpop.f32.mrb[82].mxu0  ;;  %7051 = vmax.xlane.f32.xlu1 %v7050_v62  ;;  %v15242_v23 = vmul.f32 0.35355338, %v6916_v40  ;;  %v13178_v37 = vpop.f32.mrb[89].mxu1 }
 0x708   : > { %v15244_v26 = vmul.f32 0.35355338, %v6838_v15  ;;  %v13173_v55 = vpop.f32.mrb[83].mxu0  ;;  %v15260_v39 = vpop.permute.xlu1 %7494 }
 0x709   : > { %v7056_v36 = vsel %vm456_vm2, %v15242_v23, -inf  ;;  %v15266_v62 = vpop.permute.xlu0 %7646 }
 0x70a   : > { %v7053_v53 = vsel %vm456_vm2, %v15244_v26, -inf }
 0x70b   : > { %7054 = vmax.xlane.f32.xlu0 %v7053_v53  ;;  %v6994_v8 = vpop.f32.mrb[84].mxu0  ;;  %7057 = vmax.xlane.f32.xlu1 %v7056_v36 }
 0x70c   : > { %v15250_v33 = vmul.f32 0.35355338, %v6994_v8  ;;  %v13183_v4 = vpop.f32.mrb[85].mxu0  ;;  %v15264_v44 = vpop.permute.xlu1 %7570 }
 0x70d   : > { %v15270_v40 = vpop.permute.xlu0 %7798 }
 0x70e   : > { %v7059_v30 = vsel %vm456_vm2, %v15250_v33, -inf }
 0x70f   : > { %7060 = vmax.xlane.f32.xlu0 %v7059_v30 }
 0x710   : > { %v15268_v13 = vpop.permute.xlu1 %7722 }
 0x711   : > { %v15274_v37 = vpop.permute.xlu0 %7950 }
 0x714   : > { %v15272_v15 = vpop.permute.xlu1 %7874 }
 0x715   : > { %v15278_v36 = vpop.permute.xlu0 %8102 }
 0x718   : > { %v15276_v55 = vpop.permute.xlu1 %8026 }
 0x719   : > { %v15282_v8 = vpop.permute.xlu0 %8254 }
 0x71c   : > { %8954 = vrot.lane.b32.xlu1 %v13981_v43, %s13854_s22  ;;  %v15280_v53 = vpop.permute.xlu1 %8178 }
 0x71d   : > { %v15286_v30 = vpop.permute.xlu0 %8408 }
 0x720   : > { %v15284_v4 = vpop.permute.xlu1 %8330 }
 0x721   : > { %v15290_v63 = vpop.permute.xlu0 %8406 }
 0x724   : > { %v15288_v19 = vpop.permute.xlu1 %8486 }
 0x725   : > { %8876 = vrot.lane.b32.xlu0 %v13975_v41, %s13854_s22  ;;  %16791 = vst [vmem:[#allocation34_spill] sm:$0xff] %v15288_v19  ;;  %v15294_v52 = vpop.permute.xlu0 %8564 }
 0x728   : > { %v15292_v9 = vpop.permute.xlu1 %8484 }
 0x729   : > { %16792 = vst [vmem:[#allocation35_spill] sm:$0xff] %v15292_v9  ;;  %v15298_v21 = vpop.permute.xlu0 %8562 }
 0x72a   : > { %16794 = vst [vmem:[#allocation37_spill] sm:$0xff] %v15298_v21 }
 0x72c   : > { %v15296_v27 = vpop.permute.xlu1 %8642 }
 0x72d   : > { %16793 = vst [vmem:[#allocation36_spill] sm:$0xff] %v15296_v27  ;;  %v15302_v12 = vpop.permute.xlu0 %8720 }
 0x72e   : > { %16796 = vst [vmem:[#allocation39_spill] sm:$0xff] %v15302_v12 }
 0x730   : > { %v15300_v20 = vpop.permute.xlu1 %8640 }
 0x731   : > { %16795 = vst [vmem:[#allocation38_spill] sm:$0xff] %v15300_v20  ;;  %v15306_v24 = vpop.permute.xlu0 %8718 }
 0x732   : > { %16798 = vst [vmem:[#allocation41_spill] sm:$0xff] %v15306_v24 }
 0x734   : > { %v15304_v18 = vpop.permute.xlu1 %8798 }
 0x735   : > { %16797 = vst [vmem:[#allocation40_spill] sm:$0xff] %v15304_v18 }
 0x738   : > { %v15308_v47 = vpop.permute.xlu1 %8796 }
 0x739   : > { %16799 = vst [vmem:[#allocation42_spill] sm:$0xff] %v15308_v47 }
 0x77b   : > { %v7016_v56 = vpop.xlane.xlu0 %7015 }
 0x77c   : > { %v7062_v16 = vsub.f32 %v15190_v22, %v7016_v56 }
 0x77e   : > { %v7078_v5 = vmul.f32 1.442695, %v7062_v16 }
 0x77f   : > { %v7022_v14 = vpop.xlane.xlu0 %7021 }
 0x780   : > { %13628 = vpow2.f32 %v7078_v5  ;;  %v7019_v2 = vpop.xlane.xlu1 %7018  ;;  %v7064_v27 = vsub.f32 %v15194_v7, %v7022_v14 }
 0x781   : > { %v7063_v9 = vsub.f32 %v15196_v3, %v7019_v2 }
 0x782   : > { %v7082_v20 = vmul.f32 1.442695, %v7064_v27 }
 0x783   : > { %v7080_v21 = vmul.f32 1.442695, %v7063_v9 }
 0x784   : > { %13630 = vpow2.f32 %v7082_v20  ;;  %v7028_v12 = vpop.xlane.xlu1 %7027  ;;  %v7025_v18 = vpop.xlane.xlu0 %7024 }
 0x785   : > { %13632 = vpow2.f32 %v7080_v21  ;;  %v7066_v24 = vsub.f32 %v15202_v6, %v7028_v12  ;;  %v7065_v47 = vsub.f32 %v15204_v32, %v7025_v18 }
 0x787   : > { %v7086_v19 = vmul.f32 1.442695, %v7066_v24  ;;  %v7084_v56 = vmul.f32 1.442695, %v7065_v47 }
 0x788   : > { %v7034_v16 = vpop.xlane.xlu1 %7033  ;;  %v7031_v22 = vpop.xlane.xlu0 %7030 }
 0x789   : > { %13634 = vpow2.f32 %v7086_v19  ;;  %v7068_v5 = vsub.f32 %v15210_v61, %v7034_v16  ;;  %v7067_v14 = vsub.f32 %v15212_v17, %v7031_v22 }
 0x78a   : > { %v15317_v2 = vpop.eup %13628  ;;  %13636 = vpow2.f32 %v7084_v56 }
 0x78b   : > { %v7090_v27 = vmul.f32 1.442695, %v7068_v5  ;;  %v7088_v20 = vmul.f32 1.442695, %v7067_v14  ;;  %v7110_v21 = vsel %vm456_vm2, %v15317_v2, 0.0 }
 0x78c   : > { %v7040_v12 = vpop.xlane.xlu1 %7039  ;;  %v7037_v9 = vpop.xlane.xlu0 %7036  ;;  %7111 = vadd.xlane.f32.xlu1 %v7110_v21 }
 0x78d   : > { %13638 = vpow2.f32 %v7090_v27  ;;  %v7070_v24 = vsub.f32 %v15218_v60, %v7040_v12  ;;  %v7069_v18 = vsub.f32 %v15220_v0, %v7037_v9 }
 0x78e   : > { %v15323_v47 = vpop.eup %13630  ;;  %13640 = vpow2.f32 %v7088_v20 }
 0x78f   : > { %v15325_v19 = vpop.eup %13632  ;;  %v7094_v7 = vmul.f32 1.442695, %v7070_v24  ;;  %v7092_v3 = vmul.f32 1.442695, %v7069_v18  ;;  %v7116_v6 = vsel %vm456_vm2, %v15323_v47, 0.0 }
 0x790   : > { %v7046_v32 = vpop.xlane.xlu1 %7045  ;;  %v7043_v61 = vpop.xlane.xlu0 %7042  ;;  %v7113_v17 = vsel %vm456_vm2, %v15325_v19, 0.0  ;;  %7117 = vadd.xlane.f32.xlu1 %v7116_v6 }
 0x791   : > { %13642 = vpow2.f32 %v7094_v7  ;;  %v7072_v60 = vsub.f32 %v15226_v1, %v7046_v32  ;;  %v7071_v0 = vsub.f32 %v15228_v28, %v7043_v61  ;;  %7114 = vadd.xlane.f32.xlu0 %v7113_v17 }
 0x792   : > { %13644 = vpow2.f32 %v7092_v3 }
 0x793   : > { %v15333_v56 = vpop.eup %13634  ;;  %v7098_v16 = vmul.f32 1.442695, %v7072_v60  ;;  %v7096_v22 = vmul.f32 1.442695, %v7071_v0 }
 0x794   : > { %v15335_v5 = vpop.eup %13636  ;;  %v7052_v14 = vpop.xlane.xlu1 %7051  ;;  %v7122_v20 = vsel %vm456_vm2, %v15333_v56, 0.0 }
 0x795   : > { %v7049_v27 = vpop.xlane.xlu0 %7048  ;;  %13646 = vpow2.f32 %v7098_v16  ;;  %v7074_v21 = vsub.f32 %v15234_v25, %v7052_v14  ;;  %7123 = vadd.xlane.f32.xlu1 %v7122_v20  ;;  %v7119_v28 = vsel %vm456_vm2, %v15335_v5, 0.0 }
 0x796   : > { %v7073_v1 = vsub.f32 %v15236_v11, %v7049_v27  ;;  %13648 = vpow2.f32 %v7096_v22  ;;  %7120 = vadd.xlane.f32.xlu0 %v7119_v28 }
 0x797   : > { %v15343_v12 = vpop.eup %13638  ;;  %v7102_v9 = vmul.f32 1.442695, %v7074_v21 }
 0x798   : > { %v7100_v24 = vmul.f32 1.442695, %v7073_v1  ;;  %v15345_v18 = vpop.eup %13640  ;;  %v7128_v3 = vsel %vm456_vm2, %v15343_v12, 0.0 }
 0x799   : > { %v7055_v7 = vpop.xlane.xlu0 %7054  ;;  %13650 = vpow2.f32 %v7102_v9  ;;  %7129 = vadd.xlane.f32.xlu1 %v7128_v3  ;;  %v7125_v11 = vsel %vm456_vm2, %v15345_v18, 0.0  ;;  %v7058_v9 = vpop.xlane.xlu1 %7057 }
 0x79a   : > { %v7075_v25 = vsub.f32 %v15244_v26, %v7055_v7  ;;  %13652 = vpow2.f32 %v7100_v24  ;;  %7126 = vadd.xlane.f32.xlu0 %v7125_v11  ;;  %v7076_v24 = vsub.f32 %v15242_v23, %v7058_v9 }
 0x79b   : > { %v15352_v6 = vpop.eup %13642 }
 0x79c   : > { %v7104_v32 = vmul.f32 1.442695, %v7075_v25  ;;  %v15354_v61 = vpop.eup %13644  ;;  %v7134_v17 = vsel %vm456_vm2, %v15352_v6, 0.0  ;;  %v7106_v3 = vmul.f32 1.442695, %v7076_v24 }
 0x79d   : > { %7135 = vadd.xlane.f32.xlu1 %v7134_v17  ;;  %v7131_v60 = vsel %vm456_vm2, %v15354_v61, 0.0  ;;  %v7061_v7 = vpop.xlane.xlu0 %7060  ;;  %v15432_v23 = vpop.permute.xlu1 %8954 }
 0x79e   : > { %13654 = vpow2.f32 %v7104_v32  ;;  %7132 = vadd.xlane.f32.xlu0 %v7131_v60  ;;  %v7077_v25 = vsub.f32 %v15250_v33, %v7061_v7 }
 0x79f   : > { %v15360_v26 = vpop.eup %13646  ;;  %13656 = vpow2.f32 %v7106_v3 }
 0x7a0   : > { %v15362_v0 = vpop.eup %13648  ;;  %v7140_v16 = vsel %vm456_vm2, %v15360_v26, 0.0  ;;  %v7108_v11 = vmul.f32 1.442695, %v7077_v25 }
 0x7a1   : > { %7141 = vadd.xlane.f32.xlu1 %v7140_v16  ;;  %v7137_v22 = vsel %vm456_vm2, %v15362_v0, 0.0  ;;  %v15440_v33 = vpop.permute.xlu0 %8876 }
 0x7a2   : > { %7138 = vadd.xlane.f32.xlu0 %v7137_v22  ;;  %13658 = vpow2.f32 %v7108_v11 }
 0x7a3   : > { %v15368_v14 = vpop.eup %13650 }
 0x7a4   : > { %v15370_v27 = vpop.eup %13652  ;;  %v7146_v20 = vsel %vm456_vm2, %v15368_v14, 0.0 }
 0x7a5   : > { %7147 = vadd.xlane.f32.xlu1 %v7146_v20  ;;  %v7143_v21 = vsel %vm456_vm2, %v15370_v27, 0.0 }
 0x7a6   : > { %7144 = vadd.xlane.f32.xlu0 %v7143_v21 }
 0x7a8   : > { %v15376_v1 = vpop.eup %13654 }
 0x7a9   : > { %v7149_v28 = vsel %vm456_vm2, %v15376_v1, 0.0  ;;  %v15386_v32 = vpop.eup %13656 }
 0x7aa   : > { %7150 = vadd.xlane.f32.xlu0 %v7149_v28  ;;  %v7152_v17 = vsel %vm456_vm2, %v15386_v32, 0.0 }
 0x7ac   : > { %v15390_v60 = vpop.eup %13658 }
 0x7ad   : > { %v7155_v16 = vsel %vm456_vm2, %v15390_v60, 0.0 }
 0x7b6   : > { %8952 = vrot.lane.b32.xlu1 %v13981_v43, %s13855_s23 }
 0x7c0   : > { %8874 = vrot.lane.b32.xlu0 %v13975_v41, %s13855_s23 }
 0x7da   : > { %7153 = vadd.xlane.f32.xlu1 %v7152_v17 }
 0x7df   : > { %7156 = vadd.xlane.f32.xlu0 %v7155_v16 }
 0x7eb   : > { %9110 = vrot.lane.b32.xlu1 %v13993_v50, %s13854_s22 }
 0x7ef   : > { %9108 = vrot.lane.b32.xlu1 %v13993_v50, %s13855_s23 }
 0x7f3   : > { %9266 = vrot.lane.b32.xlu1 %v13997_v51, %s13854_s22 }
 0x7f5   : > { %9032 = vrot.lane.b32.xlu0 %v13987_v46, %s13854_s22 }
 0x7f7   : > { %9264 = vrot.lane.b32.xlu1 %v13997_v51, %s13855_s23 }
 0x7f9   : > { %9030 = vrot.lane.b32.xlu0 %v13987_v46, %s13855_s23 }
 0x7fb   : > { %9422 = vrot.lane.b32.xlu1 %v14009_v58, %s13854_s22 }
 0x7fd   : > { %9188 = vrot.lane.b32.xlu0 %v13991_v49, %s13854_s22 }
 0x7ff   : > { %9420 = vrot.lane.b32.xlu1 %v14009_v58, %s13855_s23 }
 0x801   : > { %9186 = vrot.lane.b32.xlu0 %v13991_v49, %s13855_s23 }
 0x803   : > { %9578 = vrot.lane.b32.xlu1 %v14013_v59, %s13854_s22 }
 0x805   : > { %9344 = vrot.lane.b32.xlu0 %v14003_v54, %s13854_s22 }
 0x807   : > { %9576 = vrot.lane.b32.xlu1 %v14013_v59, %s13855_s23 }
 0x809   : > { %9342 = vrot.lane.b32.xlu0 %v14003_v54, %s13855_s23 }
 0x80b   : > { %9846 = vrot.lane.b32.xlu1 %v13959_v31, %s13856_s25 }
 0x80d   : > { %9500 = vrot.lane.b32.xlu0 %v14007_v57, %s13854_s22 }
 0x80f   : > { %9998 = vrot.lane.b32.xlu1 %v13957_v29, %s13856_s25 }
 0x811   : > { %9498 = vrot.lane.b32.xlu0 %v14007_v57, %s13855_s23 }
 0x813   : > { %10150 = vrot.lane.b32.xlu1 %v13973_v38, %s13856_s25 }
 0x815   : > { %9922 = vrot.lane.b32.xlu0 %v13967_v35, %s13856_s25 }
 0x817   : > { %10226 = vrot.lane.b32.xlu1 %v13977_v42, %s13856_s25 }
 0x819   : > { %10074 = vrot.lane.b32.xlu0 %v13965_v34, %s13856_s25  ;;  %v7112_v31 = vpop.xlane.xlu1 %7111 }
 0x81a   : > { %13660 = vrcp.f32 %v7112_v31 }
 0x81b   : > { %10378 = vrot.lane.b32.xlu1 %v13981_v43, %s13856_s25 }
 0x81d   : > { %10302 = vrot.lane.b32.xlu0 %v13975_v41, %s13856_s25  ;;  %v7118_v29 = vpop.xlane.xlu1 %7117 }
 0x81e   : > { %13662 = vrcp.f32 %v7118_v29  ;;  %v7115_v38 = vpop.xlane.xlu0 %7114 }
 0x81f   : > { %13664 = vrcp.f32 %v7115_v38  ;;  %10530 = vrot.lane.b32.xlu1 %v13993_v50, %s13856_s25 }
 0x821   : > { %10454 = vrot.lane.b32.xlu0 %v13987_v46, %s13856_s25 }
 0x822   : > { %v7124_v34 = vpop.xlane.xlu1 %7123 }
 0x823   : > { %13666 = vrcp.f32 %v7124_v34  ;;  %v7121_v35 = vpop.xlane.xlu0 %7120 }
 0x824   : > { %v13661_v42 = vpop.eup %13660  ;;  %13668 = vrcp.f32 %v7121_v35 }
 0x825   : > { %v7174_v43 = vmul.f32 %v13661_v42, %v15317_v2 }
 0x826   : > { %v7130_v22 = vpop.xlane.xlu1 %7129 }
 0x827   : > { %13670 = vrcp.f32 %v7130_v22  ;;  %v7127_v41 = vpop.xlane.xlu0 %7126  ;;  %13187 = vmatmul.mubr.msk.f32.vlgmr.msra.gmra.mrb[90].mxu1 %vm456_vm2, %v7174_v43  ;;  %v16802_v22 = vld [vmem:[#allocation35_spill] sm:$0xff] }
 0x828   : > { %v13663_v20 = vpop.eup %13662  ;;  %13672 = vrcp.f32 %v7127_v41  ;;  %13195 = vmatpush3.msra.mxu1 %v15258_v45  ;;  %13196 = vmatprep.mubr.msk.f32.mxu1 %vm13845_vm1, %v16770_v48  ;;  %v16804_v41 = vld [vmem:[#allocation36_spill] sm:$0xff] }
 0x829   : > { %v13665_v46 = vpop.eup %13664  ;;  %13204 = vmatprep.subr.mxu1 %v16770_v48  ;;  %v7176_v50 = vmul.f32 %v13663_v20, %v15323_v47  ;;  %v16805_v20 = vld [vmem:[#allocation41_spill] sm:$0xff] }
 0x82a   : > { %v7136_v21 = vpop.xlane.xlu1 %7135  ;;  %v7175_v2 = vmul.f32 %v13665_v46, %v15325_v19 }
 0x82b   : > { %13674 = vrcp.f32 %v7136_v21  ;;  %v7133_v28 = vpop.xlane.xlu0 %7132  ;;  %13197 = vmatmul.mubr.msk.f32.vlgmr.msra.gmra.mrb[92].mxu1 %vm456_vm2, %v7176_v50  ;;  %v16806_v50 = vld [vmem:[#allocation38_spill] sm:$0xff] }
 0x82c   : > { %13676 = vrcp.f32 %v7133_v28  ;;  %13192 = vmatmul.mubr.msk.f32.vlgmr.msra.gmra.mrb[86].mxu0 %vm456_vm2, %v7175_v2  ;;  %13205 = vmatpush3.msra.mxu1 %v15260_v39  ;;  %v16807_v2 = vld [vmem:[#allocation40_spill] sm:$0xff]  ;;  %v16808_v28 = vld [vmem:[#allocation42_spill] sm:$0xff] }
 0x82d   : > { %v13667_v45 = vpop.eup %13666  ;;  %13200 = vmatpush3.msra.mxu0 %v15262_v10  ;;  %13201 = vmatprep.mubr.msk.f32.mxu0 %vm13845_vm1, %v16770_v48 }
 0x82e   : > { %v13669_v9 = vpop.eup %13668  ;;  %v7142_v47 = vpop.xlane.xlu1 %7141  ;;  %13206 = vmatprep.mubr.msk.f32.mxu1 %vm13845_vm1, %v16770_v48  ;;  %13209 = vmatprep.subr.mxu0 %v16770_v48  ;;  %v7178_v19 = vmul.f32 %v13667_v45, %v15333_v56 }
 0x82f   : > { %13678 = vrcp.f32 %v7142_v47  ;;  %v7139_v24 = vpop.xlane.xlu0 %7138  ;;  %13214 = vmatprep.subr.mxu1 %v16770_v48  ;;  %v7177_v39 = vmul.f32 %v13669_v9, %v15335_v5 }
 0x830   : > { %13680 = vrcp.f32 %v7139_v24  ;;  %13207 = vmatmul.mubr.msk.f32.vlgmr.msra.gmra.mrb[94].mxu1 %vm456_vm2, %v7178_v19 }
 0x831   : > { %v13671_v10 = vpop.eup %13670  ;;  %13202 = vmatmul.mubr.msk.f32.vlgmr.msra.gmra.mrb[88].mxu0 %vm456_vm2, %v7177_v39  ;;  %13215 = vmatpush3.msra.mxu1 %v15266_v62 }
 0x832   : > { %v13673_v7 = vpop.eup %13672  ;;  %13210 = vmatpush3.msra.mxu0 %v15264_v44  ;;  %v7148_v3 = vpop.xlane.xlu1 %7147  ;;  %13211 = vmatprep.mubr.msk.f32.mxu0 %vm13845_vm1, %v16770_v48  ;;  %v7180_v56 = vmul.f32 %v13671_v10, %v15343_v12 }
 0x833   : > { %13682 = vrcp.f32 %v7148_v3  ;;  %v7145_v25 = vpop.xlane.xlu0 %7144  ;;  %13216 = vmatprep.mubr.msk.f32.mxu1 %vm13845_vm1, %v16770_v48  ;;  %13219 = vmatprep.subr.mxu0 %v16770_v48  ;;  %v7179_v5 = vmul.f32 %v13673_v7, %v15345_v18 }
 0x834   : > { %13684 = vrcp.f32 %v7145_v25  ;;  %13224 = vmatprep.subr.mxu1 %v16770_v48  ;;  %13217 = vmatmul.mubr.msk.f32.vlgmr.msra.gmra.mrb[96].mxu1 %vm456_vm2, %v7180_v56 }
 0x835   : > { %v13675_v44 = vpop.eup %13674  ;;  %13212 = vmatmul.mubr.msk.f32.vlgmr.msra.gmra.mrb[90].mxu0 %vm456_vm2, %v7179_v5  ;;  %13225 = vmatpush3.msra.mxu1 %v15270_v40 }
 0x836   : > { %v13677_v62 = vpop.eup %13676  ;;  %13220 = vmatpush3.msra.mxu0 %v15268_v13  ;;  %13221 = vmatprep.mubr.msk.f32.mxu0 %vm13845_vm1, %v16770_v48  ;;  %v7182_v12 = vmul.f32 %v13675_v44, %v15352_v6 }
 0x837   : > { %v7151_v11 = vpop.xlane.xlu0 %7150  ;;  %13226 = vmatprep.mubr.msk.f32.mxu1 %vm13845_vm1, %v16770_v48  ;;  %13229 = vmatprep.subr.mxu0 %v16770_v48  ;;  %v7181_v18 = vmul.f32 %v13677_v62, %v15354_v61 }
 0x838   : > { %13686 = vrcp.f32 %v7151_v11  ;;  %13234 = vmatprep.subr.mxu1 %v16770_v48  ;;  %13227 = vmatmul.mubr.msk.f32.vlgmr.msra.gmra.mrb[98].mxu1 %vm456_vm2, %v7182_v12 }
 0x839   : > { %v13679_v40 = vpop.eup %13678  ;;  %13222 = vmatmul.mubr.msk.f32.vlgmr.msra.gmra.mrb[92].mxu0 %vm456_vm2, %v7181_v18  ;;  %13235 = vmatpush3.msra.mxu1 %v15274_v37 }
 0x83a   : > { %v13681_v13 = vpop.eup %13680  ;;  %13230 = vmatpush3.msra.mxu0 %v15272_v15  ;;  %13231 = vmatprep.mubr.msk.f32.mxu0 %vm13845_vm1, %v16770_v48  ;;  %v7184_v6 = vmul.f32 %v13679_v40, %v15360_v26 }
 0x83b   : > { %13236 = vmatprep.mubr.msk.f32.mxu1 %vm13845_vm1, %v16770_v48  ;;  %13239 = vmatprep.subr.mxu0 %v16770_v48  ;;  %v7183_v61 = vmul.f32 %v13681_v13, %v15362_v0 }
 0x83c   : > { %13244 = vmatprep.subr.mxu1 %v16770_v48  ;;  %13237 = vmatmul.mubr.msk.f32.vlgmr.msra.gmra.mrb[100].mxu1 %vm456_vm2, %v7184_v6 }
 0x83d   : > { %v13683_v37 = vpop.eup %13682  ;;  %13232 = vmatmul.mubr.msk.f32.vlgmr.msra.gmra.mrb[94].mxu0 %vm456_vm2, %v7183_v61  ;;  %13245 = vmatpush3.msra.mxu1 %v15278_v36 }
 0x83e   : > { %v13685_v15 = vpop.eup %13684  ;;  %13240 = vmatpush3.msra.mxu0 %v15276_v55  ;;  %13241 = vmatprep.mubr.msk.f32.mxu0 %vm13845_vm1, %v16770_v48  ;;  %v7186_v26 = vmul.f32 %v13683_v37, %v15368_v14  ;;  %v8875_v14 = vpop.permute.xlu0 %8874 }
 0x83f   : > { %13246 = vmatprep.mubr.msk.f32.mxu1 %vm13845_vm1, %v16770_v48  ;;  %13249 = vmatprep.subr.mxu0 %v16770_v48  ;;  %v7185_v0 = vmul.f32 %v13685_v15, %v15370_v27 }
 0x840   : > { %13254 = vmatprep.subr.mxu1 %v16770_v48  ;;  %13247 = vmatmul.mubr.msk.f32.vlgmr.msra.gmra.mrb[102].mxu1 %vm456_vm2, %v7186_v26 }
 0x841   : > { %13242 = vmatmul.mubr.msk.f32.vlgmr.msra.gmra.mrb[96].mxu0 %vm456_vm2, %v7185_v0  ;;  %13255 = vmatpush3.msra.mxu1 %v15282_v8 }
 0x842   : > { %v13687_v55 = vpop.eup %13686  ;;  %13250 = vmatpush3.msra.mxu0 %v15280_v53  ;;  %13251 = vmatprep.mubr.msk.f32.mxu0 %vm13845_vm1, %v16770_v48  ;;  %v8953_v53 = vpop.permute.xlu1 %8952 }
 0x843   : > { %13259 = vmatprep.subr.mxu0 %v16770_v48  ;;  %v7187_v36 = vmul.f32 %v13687_v55, %v15376_v1  ;;  %13256 = vmatprep.mubr.msk.f32.mxu1 %vm13845_vm1, %v16770_v48 }
 0x844   : > { %13264 = vmatprep.subr.mxu1 %v16770_v48 }
 0x845   : > { %13252 = vmatmul.mubr.msk.f32.vlgmr.msra.gmra.mrb[98].mxu0 %vm456_vm2, %v7187_v36 }
 0x846   : > { %13260 = vmatpush3.msra.mxu0 %v15284_v4  ;;  %13261 = vmatprep.mubr.msk.f32.mxu0 %vm13845_vm1, %v16770_v48 }
 0x847   : > { %13269 = vmatprep.subr.mxu0 %v16770_v48 }
 0x867   : > { %v7154_v8 = vpop.xlane.xlu1 %7153 }
 0x868   : > { %13688 = vrcp.f32 %v7154_v8 }
 0x86b   : > { %v9111_v27 = vpop.permute.xlu1 %9110 }
 0x86c   : > { %v7157_v1 = vpop.xlane.xlu0 %7156 }
 0x86d   : > { %13690 = vrcp.f32 %v7157_v1 }
 0x86f   : > { %v9109_v17 = vpop.permute.xlu1 %9108 }
 0x870   : > { %v9033_v16 = vpop.permute.xlu0 %9032 }
 0x872   : > { %v13689_v31 = vpop.eup %13688 }
 0x873   : > { %v9267_v29 = vpop.permute.xlu1 %9266  ;;  %v7188_v38 = vmul.f32 %v13689_v31, %v15386_v32  ;;  %v16800_v32 = vld [vmem:[#allocation34_spill] sm:$0xff] }
 0x874   : > { %v9031_v34 = vpop.permute.xlu0 %9030 }
 0x875   : > { %13257 = vmatmul.mubr.msk.f32.vlgmr.msra.gmra.mrb[104].mxu1 %vm456_vm2, %v7188_v38 }
 0x876   : > { %13265 = vmatpush3.xpose.msk.msra.mxu1 %vm456_vm2, %v15286_v30  ;;  %13266 = vmatprep.mubr.msk.f32.mxu1 %vm13845_vm1, %v16770_v48 }
 0x877   : > { %v13691_v4 = vpop.eup %13690  ;;  %v9265_v35 = vpop.permute.xlu1 %9264  ;;  %13274 = vmatprep.subr.mxu1 %v16770_v48 }
 0x878   : > { %v9189_v42 = vpop.permute.xlu0 %9188  ;;  %v7189_v43 = vmul.f32 %v13691_v4, %v15390_v60 }
 0x879   : > { %13267 = vmatmul.mubr.msk.f32.vlgmr.msra.gmra.mrb[106].mxu1 %vm456_vm2, %v15290_v63  ;;  %v16801_v63 = vld [vmem:[#allocation37_spill] sm:$0xff] }
 0x87a   : > { %13262 = vmatmul.mubr.msk.f32.vlgmr.msra.gmra.mrb[100].mxu0 %vm456_vm2, %v7189_v43  ;;  %13275 = vmatpush3.xpose.msk.msra.mxu1 %vm456_vm2, %v15294_v52  ;;  %v16803_v52 = vld [vmem:[#allocation39_spill] sm:$0xff] }
 0x87b   : > { %13270 = vmatpush3.xpose.msk.msra.mxu0 %vm456_vm2, %v16800_v32  ;;  %13271 = vmatprep.mubr.msk.f32.mxu0 %vm13845_vm1, %v16770_v48  ;;  %v9423_v60 = vpop.permute.xlu1 %9422 }
 0x87c   : > { %v9187_v30 = vpop.permute.xlu0 %9186  ;;  %13276 = vmatprep.mubr.msk.f32.mxu1 %vm13845_vm1, %v16770_v48  ;;  %13279 = vmatprep.subr.mxu0 %v16770_v48 }
 0x87d   : > { %13284 = vmatprep.subr.mxu1 %v16770_v48  ;;  %13277 = vmatmul.mubr.msk.f32.vlgmr.msra.gmra.mrb[108].mxu1 %vm456_vm2, %v16801_v63 }
 0x87e   : > { %13272 = vmatmul.mubr.msk.f32.vlgmr.msra.gmra.mrb[102].mxu0 %vm456_vm2, %v16802_v22  ;;  %13285 = vmatpush3.xpose.msk.msra.mxu1 %vm456_vm2, %v16803_v52 }
 0x87f   : > { %13280 = vmatpush3.xpose.msk.msra.mxu0 %vm456_vm2, %v16804_v41  ;;  %13281 = vmatprep.mubr.msk.f32.mxu0 %vm13845_vm1, %v16770_v48  ;;  %v9421_v21 = vpop.permute.xlu1 %9420 }
 0x880   : > { %13286 = vmatprep.mubr.msk.f32.mxu1 %vm13845_vm1, %v16770_v48  ;;  %13289 = vmatprep.subr.mxu0 %v16770_v48  ;;  %v9345_v46 = vpop.permute.xlu0 %9344 }
 0x881   : > { %13294 = vmatprep.subr.mxu1 %v16770_v48  ;;  %13287 = vmatmul.mubr.msk.f32.vlgmr.msra.gmra.mrb[110].mxu1 %vm456_vm2, %v16805_v20 }
 0x882   : > { %13282 = vmatmul.mubr.msk.f32.vlgmr.msra.gmra.mrb[104].mxu0 %vm456_vm2, %v16806_v50  ;;  %13295 = vmatpush3.xpose.msk.msra.mxu1 %vm456_vm2, %v15440_v33 }
 0x883   : > { %13290 = vmatpush3.xpose.msk.msra.mxu0 %vm456_vm2, %v16807_v2  ;;  %13291 = vmatprep.mubr.msk.f32.mxu0 %vm13845_vm1, %v16770_v48  ;;  %v9579_v45 = vpop.permute.xlu1 %9578 }
 0x884   : > { %13296 = vmatprep.mubr.msk.f32.mxu1 %vm13845_vm1, %v16770_v48  ;;  %13299 = vmatprep.subr.mxu0 %v16770_v48  ;;  %v9343_v33 = vpop.permute.xlu0 %9342 }
 0x885   : > { %13304 = vmatprep.subr.mxu1 %v16770_v48  ;;  %13297 = vmatmul.mubr.msk.f32.vlgmr.msra.gmra.mrb[112].mxu1 %vm456_vm2, %v8875_v14 }
 0x886   : > { %13292 = vmatmul.mubr.msk.f32.vlgmr.msra.gmra.mrb[106].mxu0 %vm456_vm2, %v16808_v28  ;;  %13305 = vmatpush3.xpose.msk.msra.mxu1 %vm456_vm2, %v9033_v16 }
 0x887   : > { %13300 = vmatpush3.xpose.msk.msra.mxu0 %vm456_vm2, %v15432_v23  ;;  %13301 = vmatprep.mubr.msk.f32.mxu0 %vm13845_vm1, %v16770_v48  ;;  %v9577_v9 = vpop.permute.xlu1 %9576 }
 0x888   : > { %13306 = vmatprep.mubr.msk.f32.mxu1 %vm13845_vm1, %v16770_v48  ;;  %13309 = vmatprep.subr.mxu0 %v16770_v48  ;;  %v9501_v23 = vpop.permute.xlu0 %9500 }
 0x889   : > { %13314 = vmatprep.subr.mxu1 %v16770_v48  ;;  %13307 = vmatmul.mubr.msk.f32.vlgmr.msra.gmra.mrb[114].mxu1 %vm456_vm2, %v9031_v34 }
 0x88a   : > { %13302 = vmatmul.mubr.msk.f32.vlgmr.msra.gmra.mrb[108].mxu0 %vm456_vm2, %v8953_v53  ;;  %13315 = vmatpush3.xpose.msk.msra.mxu1 %vm456_vm2, %v9189_v42 }
 0x88b   : > { %13310 = vmatpush3.xpose.msk.msra.mxu0 %vm456_vm2, %v9111_v27  ;;  %13311 = vmatprep.mubr.msk.f32.mxu0 %vm13845_vm1, %v16770_v48  ;;  %v9847_v19 = vpop.permute.xlu1 %9846 }
 0x88c   : > { %13316 = vmatprep.mubr.msk.f32.mxu1 %vm13845_vm1, %v16770_v48  ;;  %13319 = vmatprep.subr.mxu0 %v16770_v48  ;;  %v9499_v47 = vpop.permute.xlu0 %9498 }
 0x88d   : > { %13324 = vmatprep.subr.mxu1 %v16770_v48  ;;  %13317 = vmatmul.mubr.msk.f32.vlgmr.msra.gmra.mrb[116].mxu1 %vm456_vm2, %v9187_v30 }
 0x88e   : > { %13312 = vmatmul.mubr.msk.f32.vlgmr.msra.gmra.mrb[110].mxu0 %vm456_vm2, %v9109_v17  ;;  %13325 = vmatpush3.xpose.msk.msra.mxu1 %vm456_vm2, %v9345_v46 }
 0x88f   : > { %13320 = vmatpush3.xpose.msk.msra.mxu0 %vm456_vm2, %v9267_v29  ;;  %13321 = vmatprep.mubr.msk.f32.mxu0 %vm13845_vm1, %v16770_v48 }
 0x890   : > { %13326 = vmatprep.mubr.msk.f32.mxu1 %vm13845_vm1, %v16770_v48  ;;  %13329 = vmatprep.subr.mxu0 %v16770_v48  ;;  %v9923_v24 = vpop.permute.xlu0 %9922 }
 0x891   : > { %13334 = vmatprep.subr.mxu1 %v16770_v48  ;;  %13327 = vmatmul.mubr.msk.f32.vlgmr.msra.gmra.mrb[118].mxu1 %vm456_vm2, %v9343_v33 }
 0x892   : > { %13322 = vmatmul.mubr.msk.f32.vlgmr.msra.gmra.mrb[112].mxu0 %vm456_vm2, %v9265_v35  ;;  %13335 = vmatpush3.xpose.msk.msra.mxu1 %vm456_vm2, %v9501_v23 }
 0x893   : > { %13330 = vmatpush3.xpose.msk.msra.mxu0 %vm456_vm2, %v9423_v60  ;;  %13331 = vmatprep.mubr.msk.f32.mxu0 %vm13845_vm1, %v16770_v48 }
 0x894   : > { %13336 = vmatprep.mubr.msk.f32.mxu1 %vm13845_vm1, %v16770_v48  ;;  %13339 = vmatprep.subr.mxu0 %v16770_v48 }
 0x895   : > { %13344 = vmatprep.subr.mxu1 %v16770_v48  ;;  %13337 = vmatmul.mubr.msk.f32.vlgmr.msra.gmra.mrb[120].mxu1 %vm456_vm2, %v9499_v47 }
 0x896   : > { %13332 = vmatmul.mubr.msk.f32.vlgmr.msra.gmra.mrb[114].mxu0 %vm456_vm2, %v9421_v21  ;;  %13345 = vmatpush3.msra.mxu1 %v9847_v19 }
 0x897   : > { %13340 = vmatpush3.xpose.msk.msra.mxu0 %vm456_vm2, %v9579_v45  ;;  %13341 = vmatprep.mubr.msk.f32.mxu0 %vm13845_vm1, %v16770_v48 }
 0x898   : > { %13349 = vmatprep.subr.mxu0 %v16770_v48  ;;  %13346 = vmatprep.mubr.msk.f32.mxu1 %vm13845_vm1, %v16770_v48 }
 0x899   : > { %13354 = vmatprep.subr.mxu1 %v16770_v48 }
 0x89a   : > { %13342 = vmatmul.mubr.msk.f32.vlgmr.msra.gmra.mrb[116].mxu0 %vm456_vm2, %v9577_v9 }
 0x89b   : > { %13350 = vmatpush3.msra.mxu0 %v9923_v24  ;;  %13351 = vmatprep.mubr.msk.f32.mxu0 %vm13845_vm1, %v16770_v48 }
 0x89c   : > { %13359 = vmatprep.subr.mxu0 %v16770_v48 }
 0x8fa   : > { %v15638_v39 = vpop.f32.mrb[90].mxu1 }
 0x8fb   : > { %v13188_v10 = vpop.f32.mrb[91].mxu1 }
 0x8fe   : > { %v15640_v7 = vpop.f32.mrb[92].mxu1 }
 0x8ff   : > { %v15642_v3 = vpop.f32.mrb[86].mxu0  ;;  %v13198_v56 = vpop.f32.mrb[93].mxu1 }
 0x900   : > { %v13193_v25 = vpop.f32.mrb[87].mxu0 }
 0x903   : > { %v15644_v5 = vpop.f32.mrb[94].mxu1 }
 0x904   : > { %v15646_v44 = vpop.f32.mrb[88].mxu0  ;;  %v13208_v62 = vpop.f32.mrb[95].mxu1 }
 0x905   : > { %v13203_v12 = vpop.f32.mrb[89].mxu0 }
 0x907   : > { %v15648_v11 = vpop.f32.mrb[96].mxu1 }
 0x908   : > { %v15650_v18 = vpop.f32.mrb[90].mxu0  ;;  %v13218_v40 = vpop.f32.mrb[97].mxu1 }
 0x909   : > { %v13213_v13 = vpop.f32.mrb[91].mxu0 }
 0x90b   : > { %v15652_v6 = vpop.f32.mrb[98].mxu1 }
 0x90c   : > { %v15654_v61 = vpop.f32.mrb[92].mxu0  ;;  %v13228_v37 = vpop.f32.mrb[99].mxu1 }
 0x90d   : > { %v13223_v15 = vpop.f32.mrb[93].mxu0 }
 0x90f   : > { %v15656_v26 = vpop.f32.mrb[100].mxu1 }
 0x910   : > { %v15658_v0 = vpop.f32.mrb[94].mxu0  ;;  %v13238_v55 = vpop.f32.mrb[101].mxu1 }
 0x911   : > { %v13233_v36 = vpop.f32.mrb[95].mxu0 }
 0x913   : > { %v15660_v53 = vpop.f32.mrb[102].mxu1 }
 0x914   : > { %v15662_v8 = vpop.f32.mrb[96].mxu0  ;;  %v13248_v14 = vpop.f32.mrb[103].mxu1 }
 0x915   : > { %v13243_v27 = vpop.f32.mrb[97].mxu0 }
 0x918   : > { %v15664_v1 = vpop.f32.mrb[98].mxu0 }
 0x919   : > { %v13253_v17 = vpop.f32.mrb[99].mxu0 }
 0x948   : > { %v15666_v16 = vpop.f32.mrb[104].mxu1 }
 0x949   : > { %v13258_v31 = vpop.f32.mrb[105].mxu1 }
 0x94c   : > { %v8480_v29 = vpop.f32.mrb[106].mxu1 }
 0x94d   : > { %v15668_v38 = vpop.f32.mrb[100].mxu0  ;;  %v15670_v34 = vmul.f32 0.35355338, %v8480_v29  ;;  %v13268_v4 = vpop.f32.mrb[107].mxu1 }
 0x94e   : > { %v13263_v35 = vpop.f32.mrb[101].mxu0 }
 0x94f   : > { %v9670_v42 = vsel %vm456_vm2, %v15670_v34, -inf }
 0x950   : > { %v8636_v43 = vpop.f32.mrb[108].mxu1  ;;  %9671 = vmax.xlane.f32.xlu0 %v9670_v42 }
 0x951   : > { %v15674_v32 = vmul.f32 0.35355338, %v8636_v43  ;;  %v8558_v30 = vpop.f32.mrb[102].mxu0  ;;  %v13278_v60 = vpop.f32.mrb[109].mxu1 }
 0x952   : > { %v15676_v63 = vmul.f32 0.35355338, %v8558_v30  ;;  %v13273_v22 = vpop.f32.mrb[103].mxu0 }
 0x953   : > { %v9676_v52 = vsel %vm456_vm2, %v15674_v32, -inf }
 0x954   : > { %v8792_v41 = vpop.f32.mrb[110].mxu1  ;;  %9677 = vmax.xlane.f32.xlu0 %v9676_v52  ;;  %v9673_v20 = vsel %vm456_vm2, %v15676_v63, -inf }
 0x955   : > { %v15682_v46 = vmul.f32 0.35355338, %v8792_v41  ;;  %9674 = vmax.xlane.f32.xlu1 %v9673_v20  ;;  %v8714_v50 = vpop.f32.mrb[104].mxu0  ;;  %v13288_v21 = vpop.f32.mrb[111].mxu1 }
 0x956   : > { %v15684_v2 = vmul.f32 0.35355338, %v8714_v50  ;;  %v13283_v28 = vpop.f32.mrb[105].mxu0 }
 0x957   : > { %v9682_v33 = vsel %vm456_vm2, %v15682_v46, -inf }
 0x958   : > { %v8948_v45 = vpop.f32.mrb[112].mxu1  ;;  %v9679_v23 = vsel %vm456_vm2, %v15684_v2, -inf }
 0x959   : > { %v15690_v9 = vmul.f32 0.35355338, %v8948_v45  ;;  %9683 = vmax.xlane.f32.xlu1 %v9682_v33  ;;  %9680 = vmax.xlane.f32.xlu0 %v9679_v23  ;;  %v8870_v47 = vpop.f32.mrb[106].mxu0  ;;  %v13298_v19 = vpop.f32.mrb[113].mxu1 }
 0x95a   : > { %v15692_v24 = vmul.f32 0.35355338, %v8870_v47  ;;  %v13293_v10 = vpop.f32.mrb[107].mxu0 }
 0x95b   : > { %v9688_v56 = vsel %vm456_vm2, %v15690_v9, -inf }
 0x95c   : > { %v9685_v25 = vsel %vm456_vm2, %v15692_v24, -inf  ;;  %v9104_v62 = vpop.f32.mrb[114].mxu1 }
 0x95d   : > { %9689 = vmax.xlane.f32.xlu1 %v9688_v56  ;;  %9686 = vmax.xlane.f32.xlu0 %v9685_v25  ;;  %v9026_v12 = vpop.f32.mrb[108].mxu0  ;;  %v15698_v40 = vmul.f32 0.35355338, %v9104_v62  ;;  %v13308_v13 = vpop.f32.mrb[115].mxu1 }
 0x95e   : > { %v15700_v37 = vmul.f32 0.35355338, %v9026_v12  ;;  %v13303_v15 = vpop.f32.mrb[109].mxu0  ;;  %v15742_v13 = vpop.permute.xlu1 %9998 }
 0x95f   : > { %v9694_v55 = vsel %vm456_vm2, %v15698_v40, -inf }
 0x960   : > { %v9691_v36 = vsel %vm456_vm2, %v15700_v37, -inf  ;;  %v9260_v14 = vpop.f32.mrb[116].mxu1 }
 0x961   : > { %9692 = vmax.xlane.f32.xlu0 %v9691_v36  ;;  %v9182_v27 = vpop.f32.mrb[110].mxu0  ;;  %9695 = vmax.xlane.f32.xlu1 %v9694_v55  ;;  %v15706_v17 = vmul.f32 0.35355338, %v9260_v14  ;;  %v13318_v31 = vpop.f32.mrb[117].mxu1 }
 0x962   : > { %v15708_v29 = vmul.f32 0.35355338, %v9182_v27  ;;  %v13313_v4 = vpop.f32.mrb[111].mxu0  ;;  %v15744_v15 = vpop.permute.xlu1 %10150 }
 0x963   : > { %v9700_v35 = vsel %vm456_vm2, %v15706_v17, -inf  ;;  %v15746_v55 = vpop.permute.xlu0 %10074 }
 0x964   : > { %v9697_v42 = vsel %vm456_vm2, %v15708_v29, -inf  ;;  %v9416_v43 = vpop.f32.mrb[118].mxu1 }
 0x965   : > { %9698 = vmax.xlane.f32.xlu0 %v9697_v42  ;;  %v9338_v30 = vpop.f32.mrb[112].mxu0  ;;  %9701 = vmax.xlane.f32.xlu1 %v9700_v35  ;;  %v15714_v60 = vmul.f32 0.35355338, %v9416_v43  ;;  %v13328_v22 = vpop.f32.mrb[119].mxu1 }
 0x966   : > { %v15716_v52 = vmul.f32 0.35355338, %v9338_v30  ;;  %v13323_v41 = vpop.f32.mrb[113].mxu0  ;;  %v15748_v36 = vpop.permute.xlu1 %10226 }
 0x967   : > { %v9706_v20 = vsel %vm456_vm2, %v15714_v60, -inf  ;;  %v15750_v14 = vpop.permute.xlu0 %10302 }
 0x968   : > { %v9703_v50 = vsel %vm456_vm2, %v15716_v52, -inf  ;;  %v9572_v21 = vpop.f32.mrb[120].mxu1 }
 0x969   : > { %9704 = vmax.xlane.f32.xlu0 %v9703_v50  ;;  %v9494_v28 = vpop.f32.mrb[114].mxu0  ;;  %9707 = vmax.xlane.f32.xlu1 %v9706_v20  ;;  %v15722_v33 = vmul.f32 0.35355338, %v9572_v21  ;;  %v13338_v45 = vpop.f32.mrb[121].mxu1 }
 0x96a   : > { %v15724_v23 = vmul.f32 0.35355338, %v9494_v28  ;;  %v13333_v47 = vpop.f32.mrb[115].mxu0 }
 0x96b   : > { %v9712_v19 = vsel %vm456_vm2, %v15722_v33, -inf  ;;  %v15754_v27 = vpop.permute.xlu0 %10454 }
 0x96c   : > { %v9709_v10 = vsel %vm456_vm2, %v15724_v23, -inf }
 0x96d   : > { %9710 = vmax.xlane.f32.xlu0 %v9709_v10  ;;  %v9650_v56 = vpop.f32.mrb[116].mxu0  ;;  %9713 = vmax.xlane.f32.xlu1 %v9712_v19 }
 0x96e   : > { %v15730_v25 = vmul.f32 0.35355338, %v9650_v56  ;;  %v13343_v62 = vpop.f32.mrb[117].mxu0 }
 0x970   : > { %v9715_v12 = vsel %vm456_vm2, %v15730_v25, -inf }
 0x971   : > { %9716 = vmax.xlane.f32.xlu0 %v9715_v12 }
 0x97e   : > { %10682 = vrot.lane.b32.xlu1 %v13997_v51, %s13856_s25  ;;  %v15752_v51 = vpop.permute.xlu1 %10378 }
 0x982   : > { %10834 = vrot.lane.b32.xlu1 %v14009_v58, %s13856_s25  ;;  %v15756_v31 = vpop.permute.xlu1 %10530 }
 0x987   : > { %10606 = vrot.lane.b32.xlu0 %v13991_v49, %s13856_s25 }
 0x98b   : > { %10758 = vrot.lane.b32.xlu0 %v14003_v54, %s13856_s25 }
 0x9dd   : > { %v9672_v58 = vpop.xlane.xlu0 %9671 }
 0x9de   : > { %v9718_v49 = vsub.f32 %v15670_v34, %v9672_v58 }
 0x9e0   : > { %v9734_v54 = vmul.f32 1.442695, %v9718_v49 }
 0x9e1   : > { %v9678_v4 = vpop.xlane.xlu0 %9677 }
 0x9e2   : > { %13692 = vpow2.f32 %v9734_v54  ;;  %v9675_v35 = vpop.xlane.xlu1 %9674  ;;  %v9720_v42 = vsub.f32 %v15674_v32, %v9678_v4 }
 0x9e3   : > { %v9719_v43 = vsub.f32 %v15676_v63, %v9675_v35 }
 0x9e4   : > { %v9738_v30 = vmul.f32 1.442695, %v9720_v42 }
 0x9e5   : > { %v9736_v22 = vmul.f32 1.442695, %v9719_v43 }
 0x9e6   : > { %13694 = vpow2.f32 %v9738_v30  ;;  %v9684_v41 = vpop.xlane.xlu1 %9683  ;;  %v9681_v20 = vpop.xlane.xlu0 %9680 }
 0x9e7   : > { %13696 = vpow2.f32 %v9736_v22  ;;  %v9722_v50 = vsub.f32 %v15682_v46, %v9684_v41  ;;  %v9721_v21 = vsub.f32 %v15684_v2, %v9681_v20 }
 0x9e9   : > { %v9742_v28 = vmul.f32 1.442695, %v9722_v50  ;;  %v9740_v34 = vmul.f32 1.442695, %v9721_v21 }
 0x9ea   : > { %v9690_v45 = vpop.xlane.xlu1 %9689  ;;  %v9687_v47 = vpop.xlane.xlu0 %9686 }
 0x9eb   : > { %13698 = vpow2.f32 %v9742_v28  ;;  %v9724_v19 = vsub.f32 %v15690_v9, %v9690_v45  ;;  %v9723_v32 = vsub.f32 %v15692_v24, %v9687_v47 }
 0x9ec   : > { %v15765_v63 = vpop.eup %13692  ;;  %13700 = vpow2.f32 %v9740_v34 }
 0x9ed   : > { %v9746_v10 = vmul.f32 1.442695, %v9724_v19  ;;  %v9744_v56 = vmul.f32 1.442695, %v9723_v32  ;;  %v9766_v62 = vsel %vm456_vm2, %v15765_v63, 0.0 }
 0x9ee   : > { %v9696_v46 = vpop.xlane.xlu1 %9695  ;;  %v9693_v12 = vpop.xlane.xlu0 %9692  ;;  %9767 = vadd.xlane.f32.xlu1 %v9766_v62 }
 0x9ef   : > { %13702 = vpow2.f32 %v9746_v10  ;;  %v9726_v2 = vsub.f32 %v15698_v40, %v9696_v46  ;;  %v9725_v58 = vsub.f32 %v15700_v37, %v9693_v12 }
 0x9f0   : > { %v15771_v49 = vpop.eup %13694  ;;  %13704 = vpow2.f32 %v9744_v56 }
 0x9f1   : > { %v15773_v9 = vpop.eup %13696  ;;  %v9750_v24 = vmul.f32 1.442695, %v9726_v2  ;;  %v9748_v54 = vmul.f32 1.442695, %v9725_v58  ;;  %v9772_v4 = vsel %vm456_vm2, %v15771_v49, 0.0 }
 0x9f2   : > { %v9702_v35 = vpop.xlane.xlu1 %9701  ;;  %v9699_v42 = vpop.xlane.xlu0 %9698  ;;  %v9769_v43 = vsel %vm456_vm2, %v15773_v9, 0.0  ;;  %9773 = vadd.xlane.f32.xlu1 %v9772_v4 }
 0x9f3   : > { %13706 = vpow2.f32 %v9750_v24  ;;  %v9728_v40 = vsub.f32 %v15706_v17, %v9702_v35  ;;  %v9727_v37 = vsub.f32 %v15708_v29, %v9699_v42  ;;  %9770 = vadd.xlane.f32.xlu0 %v9769_v43 }
 0x9f4   : > { %13708 = vpow2.f32 %v9748_v54 }
 0x9f5   : > { %v15781_v30 = vpop.eup %13698  ;;  %v9754_v22 = vmul.f32 1.442695, %v9728_v40  ;;  %v9752_v41 = vmul.f32 1.442695, %v9727_v37 }
 0x9f6   : > { %v15783_v20 = vpop.eup %13700  ;;  %v9708_v50 = vpop.xlane.xlu1 %9707  ;;  %v9778_v28 = vsel %vm456_vm2, %v15781_v30, 0.0 }
 0x9f7   : > { %v9705_v21 = vpop.xlane.xlu0 %9704  ;;  %13710 = vpow2.f32 %v9754_v22  ;;  %v9730_v34 = vsub.f32 %v15714_v60, %v9708_v50  ;;  %9779 = vadd.xlane.f32.xlu1 %v9778_v28  ;;  %v9775_v29 = vsel %vm456_vm2, %v15783_v20, 0.0 }
 0x9f8   : > { %v9729_v17 = vsub.f32 %v15716_v52, %v9705_v21  ;;  %13712 = vpow2.f32 %v9752_v41  ;;  %9776 = vadd.xlane.f32.xlu0 %v9775_v29 }
 0x9f9   : > { %v15791_v45 = vpop.eup %13702  ;;  %v9758_v47 = vmul.f32 1.442695, %v9730_v34 }
 0x9fa   : > { %v9756_v19 = vmul.f32 1.442695, %v9729_v17  ;;  %v15793_v32 = vpop.eup %13704  ;;  %v9714_v10 = vpop.xlane.xlu1 %9713  ;;  %v9784_v62 = vsel %vm456_vm2, %v15791_v45, 0.0 }
 0x9fb   : > { %v9711_v56 = vpop.xlane.xlu0 %9710  ;;  %13714 = vpow2.f32 %v9758_v47  ;;  %v9732_v60 = vsub.f32 %v15722_v33, %v9714_v10  ;;  %9785 = vadd.xlane.f32.xlu1 %v9784_v62  ;;  %v9781_v46 = vsel %vm456_vm2, %v15793_v32, 0.0  ;;  %v16810_v10 = vld [vmem:[#allocation22_spill] sm:$0xff]  ;;  %v16813_v62 = vld [vmem:[#allocation24_spill] sm:$0xff] }
 0x9fc   : > { %v9731_v52 = vsub.f32 %v15724_v23, %v9711_v56  ;;  %13716 = vpow2.f32 %v9756_v19  ;;  %9782 = vadd.xlane.f32.xlu0 %v9781_v46  ;;  %v16809_v19 = vld [vmem:[#allocation21_spill] sm:$0xff]  ;;  %v16811_v56 = vld [vmem:[#allocation18_spill] sm:$0xff] }
 0x9fd   : > { %v15801_v12 = vpop.eup %13706  ;;  %v9762_v2 = vmul.f32 1.442695, %v9732_v60  ;;  %v16814_v60 = vld [vmem:[#allocation26_spill] sm:$0xff] }
 0x9fe   : > { %v9760_v58 = vmul.f32 1.442695, %v9731_v52  ;;  %v15803_v24 = vpop.eup %13708  ;;  %v9790_v4 = vsel %vm456_vm2, %v15801_v12, 0.0 }
 0x9ff   : > { %v9717_v54 = vpop.xlane.xlu0 %9716  ;;  %13718 = vpow2.f32 %v9762_v2  ;;  %9791 = vadd.xlane.f32.xlu1 %v9790_v4  ;;  %v9787_v23 = vsel %vm456_vm2, %v15803_v24, 0.0 }
 0xa00   : > { %v9733_v33 = vsub.f32 %v15730_v25, %v9717_v54  ;;  %13720 = vpow2.f32 %v9760_v58  ;;  %9788 = vadd.xlane.f32.xlu0 %v9787_v23 }
 0xa01   : > { %v15810_v35 = vpop.eup %13710 }
 0xa02   : > { %v9764_v42 = vmul.f32 1.442695, %v9733_v33  ;;  %v15812_v43 = vpop.eup %13712  ;;  %v9796_v40 = vsel %vm456_vm2, %v15810_v35, 0.0 }
 0xa03   : > { %9797 = vadd.xlane.f32.xlu1 %v9796_v40  ;;  %v9793_v37 = vsel %vm456_vm2, %v15812_v43, 0.0 }
 0xa04   : > { %13722 = vpow2.f32 %v9764_v42  ;;  %9794 = vadd.xlane.f32.xlu0 %v9793_v37 }
 0xa05   : > { %v15818_v25 = vpop.eup %13714 }
 0xa06   : > { %v15820_v22 = vpop.eup %13716  ;;  %v9802_v41 = vsel %vm456_vm2, %v15818_v25, 0.0 }
 0xa07   : > { %9803 = vadd.xlane.f32.xlu1 %v9802_v41  ;;  %v9799_v50 = vsel %vm456_vm2, %v15820_v22, 0.0 }
 0xa08   : > { %9800 = vadd.xlane.f32.xlu0 %v9799_v50 }
 0xa09   : > { %v15826_v21 = vpop.eup %13718 }
 0xa0a   : > { %v15828_v28 = vpop.eup %13720  ;;  %v9808_v34 = vsel %vm456_vm2, %v15826_v21, 0.0 }
 0xa0b   : > { %9809 = vadd.xlane.f32.xlu1 %v9808_v34  ;;  %v9805_v17 = vsel %vm456_vm2, %v15828_v28, 0.0 }
 0xa0c   : > { %9806 = vadd.xlane.f32.xlu0 %v9805_v17 }
 0xa0e   : > { %v15834_v29 = vpop.eup %13722 }
 0xa0f   : > { %v9811_v47 = vsel %vm456_vm2, %v15834_v29, 0.0 }
 0xa10   : > { %9812 = vadd.xlane.f32.xlu0 %v9811_v47 }
 0xa1c   : > { %10986 = vrot.lane.b32.xlu1 %v14013_v59, %s13856_s25  ;;  %v16812_v59 = vld [vmem:[#allocation19_spill] sm:$0xff] }
 0xa20   : > { %11080 = vrot.lane.b32.xlu1 %v16809_v19, %s13857_s26 }
 0xa24   : > { %11084 = vrot.lane.b32.xlu1 %v16810_v10, %s13857_s26 }
 0xa26   : > { %10910 = vrot.lane.b32.xlu0 %v14007_v57, %s13856_s25  ;;  %v16815_v57 = vld [vmem:[#allocation20_spill] sm:$0xff] }
 0xa28   : > { %11144 = vrot.lane.b32.xlu1 %v15642_v3, %s13858_s27  ;;  %v16816_v3 = vld [vmem:[#allocation23_spill] sm:$0xff] }
 0xa2a   : > { %11078 = vrot.lane.b32.xlu0 %v16811_v56, %s13857_s26 }
 0xa2c   : > { %11148 = vrot.lane.b32.xlu1 %v15646_v44, %s13858_s27  ;;  %v16817_v44 = vld [vmem:[#allocation28_spill] sm:$0xff] }
 0xa2e   : > { %11082 = vrot.lane.b32.xlu0 %v16812_v59, %s13857_s26 }
 0xa30   : > { %11088 = vrot.lane.b32.xlu1 %v16813_v62, %s13857_s26 }
 0xa32   : > { %11142 = vrot.lane.b32.xlu0 %v15638_v39, %s13858_s27  ;;  %v16818_v39 = vld [vmem:[#allocation30_spill] sm:$0xff] }
 0xa34   : > { %11092 = vrot.lane.b32.xlu1 %v16814_v60, %s13857_s26 }
 0xa36   : > { %11146 = vrot.lane.b32.xlu0 %v15640_v7, %s13858_s27  ;;  %v16819_v7 = vld [vmem:[#allocation25_spill] sm:$0xff] }
 0xa38   : > { %11152 = vrot.lane.b32.xlu1 %v15650_v18, %s13858_s27  ;;  %v16820_v18 = vld [vmem:[#allocation27_spill] sm:$0xff] }
 0xa3a   : > { %11086 = vrot.lane.b32.xlu0 %v16815_v57, %s13857_s26 }
 0xa3c   : > { %11156 = vrot.lane.b32.xlu1 %v15654_v61, %s13858_s27  ;;  %v16821_v61 = vld [vmem:[#allocation32_spill] sm:$0xff] }
 0xa3e   : > { %11090 = vrot.lane.b32.xlu0 %v16816_v3, %s13857_s26 }
 0xa40   : > { %11096 = vrot.lane.b32.xlu1 %v16817_v44, %s13857_s26 }
 0xa42   : > { %11150 = vrot.lane.b32.xlu0 %v15644_v5, %s13858_s27  ;;  %v16822_v5 = vld [vmem:[#allocation33_spill] sm:$0xff] }
 0xa44   : > { %11100 = vrot.lane.b32.xlu1 %v16818_v39, %s13857_s26 }
 0xa46   : > { %11154 = vrot.lane.b32.xlu0 %v15648_v11, %s13858_s27  ;;  %v16823_v11 = vld [vmem:[#allocation29_spill] sm:$0xff] }
 0xa48   : > { %11160 = vrot.lane.b32.xlu1 %v15658_v0, %s13858_s27  ;;  %v16824_v0 = vld [vmem:[#allocation31_spill] sm:$0xff] }
 0xa4a   : > { %11094 = vrot.lane.b32.xlu0 %v16819_v7, %s13857_s26 }
 0xa4c   : > { %11164 = vrot.lane.b32.xlu1 %v15662_v8, %s13858_s27  ;;  %v15892_v8 = vpop.permute.xlu0 %10606 }
 0xa4e   : > { %11098 = vrot.lane.b32.xlu0 %v16820_v18, %s13857_s26 }
 0xa50   : > { %11104 = vrot.lane.b32.xlu1 %v16821_v61, %s13857_s26 }
 0xa52   : > { %11158 = vrot.lane.b32.xlu0 %v15652_v6, %s13858_s27  ;;  %v15890_v6 = vpop.permute.xlu1 %10682 }
 0xa54   : > { %11108 = vrot.lane.b32.xlu1 %v16822_v5, %s13857_s26 }
 0xa56   : > { %11162 = vrot.lane.b32.xlu0 %v15656_v26, %s13858_s27  ;;  %v15894_v52 = vpop.permute.xlu1 %10834 }
 0xa58   : > { %11168 = vrot.lane.b32.xlu1 %v15664_v1, %s13858_s27  ;;  %v15896_v1 = vpop.permute.xlu0 %10758 }
 0xa5a   : > { %11102 = vrot.lane.b32.xlu0 %v16823_v11, %s13857_s26 }
 0xa5c   : > { %11172 = vrot.lane.b32.xlu1 %v15668_v38, %s13858_s27 }
 0xa5e   : > { %11106 = vrot.lane.b32.xlu0 %v16824_v0, %s13857_s26 }
 0xa62   : > { %11166 = vrot.lane.b32.xlu0 %v15660_v53, %s13858_s27 }
 0xa66   : > { %11170 = vrot.lane.b32.xlu0 %v15666_v16, %s13858_s27  ;;  %s16658_s27 = scalar_lea.vmem %s16747_s7, %s12245_s8 }
 0xa7b   : > { %v9768_v26 = vpop.xlane.xlu1 %9767 }
 0xa7c   : > { %13724 = vrcp.f32 %v9768_v26 }
 0xa7f   : > { %v9774_v46 = vpop.xlane.xlu1 %9773 }
 0xa80   : > { %13726 = vrcp.f32 %v9774_v46  ;;  %v9771_v38 = vpop.xlane.xlu0 %9770 }
 0xa81   : > { %13728 = vrcp.f32 %v9771_v38 }
 0xa84   : > { %v9780_v2 = vpop.xlane.xlu1 %9779 }
 0xa85   : > { %13730 = vrcp.f32 %v9780_v2  ;;  %v9777_v58 = vpop.xlane.xlu0 %9776 }
 0xa86   : > { %v13725_v53 = vpop.eup %13724  ;;  %13732 = vrcp.f32 %v9777_v58 }
 0xa87   : > { %v9830_v16 = vmul.f32 %v13725_v53, %v15765_v63 }
 0xa88   : > { %v9786_v54 = vpop.xlane.xlu1 %9785 }
 0xa89   : > { %13734 = vrcp.f32 %v9786_v54  ;;  %v9783_v4 = vpop.xlane.xlu0 %9782  ;;  %13347 = vmatmul.mubr.msk.f32.vlgmr.msra.gmra.mrb[122].mxu1 %vm456_vm2, %v9830_v16 }
 0xa8a   : > { %v13727_v33 = vpop.eup %13726  ;;  %13736 = vrcp.f32 %v9783_v4  ;;  %13355 = vmatpush3.msra.mxu1 %v15742_v13  ;;  %13356 = vmatprep.mubr.msk.f32.mxu1 %vm13845_vm1, %v16770_v48 }
 0xa8b   : > { %v13729_v23 = vpop.eup %13728  ;;  %13364 = vmatprep.subr.mxu1 %v16770_v48  ;;  %v9832_v42 = vmul.f32 %v13727_v33, %v15771_v49 }
 0xa8c   : > { %v9792_v40 = vpop.xlane.xlu1 %9791  ;;  %v9831_v63 = vmul.f32 %v13729_v23, %v15773_v9 }
 0xa8d   : > { %13738 = vrcp.f32 %v9792_v40  ;;  %v9789_v37 = vpop.xlane.xlu0 %9788  ;;  %13357 = vmatmul.mubr.msk.f32.vlgmr.msra.gmra.mrb[124].mxu1 %vm456_vm2, %v9832_v42 }
 0xa8e   : > { %13740 = vrcp.f32 %v9789_v37  ;;  %13352 = vmatmul.mubr.msk.f32.vlgmr.msra.gmra.mrb[118].mxu0 %vm456_vm2, %v9831_v63  ;;  %13365 = vmatpush3.msra.mxu1 %v15744_v15 }
 0xa8f   : > { %v13731_v13 = vpop.eup %13730  ;;  %13360 = vmatpush3.msra.mxu0 %v15746_v55  ;;  %13361 = vmatprep.mubr.msk.f32.mxu0 %vm13845_vm1, %v16770_v48 }
 0xa90   : > { %v13733_v41 = vpop.eup %13732  ;;  %v9798_v49 = vpop.xlane.xlu1 %9797  ;;  %13366 = vmatprep.mubr.msk.f32.mxu1 %vm13845_vm1, %v16770_v48  ;;  %13369 = vmatprep.subr.mxu0 %v16770_v48  ;;  %v9834_v9 = vmul.f32 %v13731_v13, %v15781_v30 }
 0xa91   : > { %13742 = vrcp.f32 %v9798_v49  ;;  %v9795_v50 = vpop.xlane.xlu0 %9794  ;;  %13374 = vmatprep.subr.mxu1 %v16770_v48  ;;  %v9833_v15 = vmul.f32 %v13733_v41, %v15783_v20 }
 0xa92   : > { %13744 = vrcp.f32 %v9795_v50  ;;  %13367 = vmatmul.mubr.msk.f32.vlgmr.msra.gmra.mrb[126].mxu1 %vm456_vm2, %v9834_v9 }
 0xa93   : > { %v13735_v55 = vpop.eup %13734  ;;  %13362 = vmatmul.mubr.msk.f32.vlgmr.msra.gmra.mrb[120].mxu0 %vm456_vm2, %v9833_v15  ;;  %13375 = vmatpush3.msra.mxu1 %v15750_v14 }
 0xa94   : > { %v13737_v34 = vpop.eup %13736  ;;  %13370 = vmatpush3.msra.mxu0 %v15748_v36  ;;  %v9804_v17 = vpop.xlane.xlu1 %9803  ;;  %13371 = vmatprep.mubr.msk.f32.mxu0 %vm13845_vm1, %v16770_v48  ;;  %v9836_v30 = vmul.f32 %v13735_v55, %v15791_v45 }
 0xa95   : > { %13746 = vrcp.f32 %v9804_v17  ;;  %v9801_v47 = vpop.xlane.xlu0 %9800  ;;  %13376 = vmatprep.mubr.msk.f32.mxu1 %vm13845_vm1, %v16770_v48  ;;  %13379 = vmatprep.subr.mxu0 %v16770_v48  ;;  %v9835_v20 = vmul.f32 %v13737_v34, %v15793_v32 }
 0xa96   : > { %13748 = vrcp.f32 %v9801_v47  ;;  %13384 = vmatprep.subr.mxu1 %v16770_v48  ;;  %13377 = vmatmul.mubr.msk.f32.vlgmr.msra.gmra.mrb[128].mxu1 %vm456_vm2, %v9836_v30 }
 0xa97   : > { %v13739_v36 = vpop.eup %13738  ;;  %13372 = vmatmul.mubr.msk.f32.vlgmr.msra.gmra.mrb[122].mxu0 %vm456_vm2, %v9835_v20  ;;  %13385 = vmatpush3.msra.mxu1 %v15754_v27 }
 0xa98   : > { %v13741_v14 = vpop.eup %13740  ;;  %13380 = vmatpush3.msra.mxu0 %v15752_v51  ;;  %v9810_v45 = vpop.xlane.xlu1 %9809  ;;  %13381 = vmatprep.mubr.msk.f32.mxu0 %vm13845_vm1, %v16770_v48  ;;  %v9838_v19 = vmul.f32 %v13739_v36, %v15801_v12 }
 0xa99   : > { %13750 = vrcp.f32 %v9810_v45  ;;  %v9807_v32 = vpop.xlane.xlu0 %9806  ;;  %13386 = vmatprep.mubr.msk.f32.mxu1 %vm13845_vm1, %v16770_v48  ;;  %13389 = vmatprep.subr.mxu0 %v16770_v48  ;;  %v9837_v10 = vmul.f32 %v13741_v14, %v15803_v24 }
 0xa9a   : > { %13752 = vrcp.f32 %v9807_v32  ;;  %13394 = vmatprep.subr.mxu1 %v16770_v48  ;;  %13387 = vmatmul.mubr.msk.f32.vlgmr.msra.gmra.mrb[130].mxu1 %vm456_vm2, %v9838_v19 }
 0xa9b   : > { %v13743_v51 = vpop.eup %13742  ;;  %13382 = vmatmul.mubr.msk.f32.vlgmr.msra.gmra.mrb[124].mxu0 %vm456_vm2, %v9837_v10  ;;  %13395 = vmatpush3.msra.mxu1 %v15892_v8 }
 0xa9c   : > { %v13745_v27 = vpop.eup %13744  ;;  %13390 = vmatpush3.msra.mxu0 %v15756_v31  ;;  %13391 = vmatprep.mubr.msk.f32.mxu0 %vm13845_vm1, %v16770_v48  ;;  %v9840_v12 = vmul.f32 %v13743_v51, %v15810_v35  ;;  %v10987_v3 = vpop.permute.xlu1 %10986 }
 0xa9d   : > { %v9813_v56 = vpop.xlane.xlu0 %9812  ;;  %13396 = vmatprep.mubr.msk.f32.mxu1 %vm13845_vm1, %v16770_v48  ;;  %13399 = vmatprep.subr.mxu0 %v16770_v48  ;;  %v9839_v24 = vmul.f32 %v13745_v27, %v15812_v43 }
 0xa9e   : > { %13754 = vrcp.f32 %v9813_v56  ;;  %13404 = vmatprep.subr.mxu1 %v16770_v48  ;;  %13397 = vmatmul.mubr.msk.f32.vlgmr.msra.gmra.mrb[132].mxu1 %vm456_vm2, %v9840_v12 }
 0xa9f   : > { %v13747_v59 = vpop.eup %13746  ;;  %13392 = vmatmul.mubr.msk.f32.vlgmr.msra.gmra.mrb[126].mxu0 %vm456_vm2, %v9839_v24  ;;  %13405 = vmatpush3.msra.mxu1 %v15896_v1 }
 0xaa0   : > { %v13749_v31 = vpop.eup %13748  ;;  %13400 = vmatpush3.msra.mxu0 %v15890_v6  ;;  %13401 = vmatprep.mubr.msk.f32.mxu0 %vm13845_vm1, %v16770_v48  ;;  %v9842_v35 = vmul.f32 %v13747_v59, %v15818_v25  ;;  %v11081_v33 = vpop.permute.xlu1 %11080 }
 0xaa1   : > { %v10911_v62 = vpop.permute.xlu0 %10910  ;;  %13406 = vmatprep.mubr.msk.f32.mxu1 %vm13845_vm1, %v16770_v48  ;;  %13409 = vmatprep.subr.mxu0 %v16770_v48  ;;  %v9841_v43 = vmul.f32 %v13749_v31, %v15820_v22 }
 0xaa2   : > { %13414 = vmatprep.subr.mxu1 %v16770_v48  ;;  %13407 = vmatmul.mubr.msk.f32.vlgmr.msra.gmra.mrb[134].mxu1 %vm456_vm2, %v9842_v35 }
 0xaa3   : > { %v13751_v60 = vpop.eup %13750  ;;  %13402 = vmatmul.mubr.msk.f32.vlgmr.msra.gmra.mrb[128].mxu0 %vm456_vm2, %v9841_v43  ;;  %13415 = vmatpush3.msra.mxu1 %v10911_v62 }
 0xaa4   : > { %v13753_v57 = vpop.eup %13752  ;;  %13410 = vmatpush3.msra.mxu0 %v15894_v52  ;;  %13411 = vmatprep.mubr.msk.f32.mxu0 %vm13845_vm1, %v16770_v48  ;;  %v9844_v25 = vmul.f32 %v13751_v60, %v15826_v21  ;;  %v11085_v50 = vpop.permute.xlu1 %11084 }
 0xaa5   : > { %13416 = vmatprep.mubr.msk.f32.mxu1 %vm13845_vm1, %v16770_v48  ;;  %13419 = vmatprep.subr.mxu0 %v16770_v48  ;;  %v9843_v22 = vmul.f32 %v13753_v57, %v15828_v28  ;;  %v11079_v58 = vpop.permute.xlu0 %11078 }
 0xaa6   : > { %13417 = vmatmul.mubr.msk.f32.vlgmr.msra.gmra.mrb[136].mxu1 %vm456_vm2, %v9844_v25 }
 0xaa7   : > { %13412 = vmatmul.mubr.msk.f32.vlgmr.msra.gmra.mrb[130].mxu0 %vm456_vm2, %v9843_v22 }
 0xaa8   : > { %v13755_v44 = vpop.eup %13754  ;;  %13420 = vmatpush3.msra.mxu0 %v10987_v3  ;;  %13421 = vmatprep.mubr.msk.f32.mxu0 %vm13845_vm1, %v16770_v48  ;;  %v11145_v17 = vpop.permute.xlu1 %11144 }
 0xaa9   : > { %v9845_v39 = vmul.f32 %v13755_v44, %v15834_v29  ;;  %v11083_v63 = vpop.permute.xlu0 %11082 }
 0xaab   : > { %13422 = vmatmul.mubr.msk.f32.vlgmr.msra.gmra.mrb[132].mxu0 %vm456_vm2, %v9845_v39  ;;  %v16825_v39 = vld [vmem:[#allocation2_spill] sm:$0xff] }
 0xaac   : > { %v11149_v47 = vpop.permute.xlu1 %11148 }
 0xaad   : > { %v11143_v15 = vpop.permute.xlu0 %11142 }
 0xab0   : > { %v15998_v36 = vpop.permute.xlu1 %11088 }
 0xab1   : > { %v11147_v30 = vpop.permute.xlu0 %11146 }
 0xab4   : > { %v16000_v45 = vpop.permute.xlu1 %11092 }
 0xab5   : > { %v11087_v20 = vpop.permute.xlu0 %11086 }
 0xab8   : > { %v16002_v32 = vpop.permute.xlu1 %11152 }
 0xab9   : > { %v11091_v14 = vpop.permute.xlu0 %11090 }
 0xabc   : > { %v16004_v51 = vpop.permute.xlu1 %11156 }
 0xabd   : > { %v11151_v19 = vpop.permute.xlu0 %11150 }
 0xac0   : > { %v16008_v12 = vpop.permute.xlu1 %11096 }
 0xac1   : > { %v11155_v10 = vpop.permute.xlu0 %11154 }
 0xac4   : > { %v16012_v24 = vpop.permute.xlu1 %11100 }
 0xac5   : > { %v16006_v27 = vpop.permute.xlu0 %11094 }
 0xac8   : > { %v16016_v31 = vpop.permute.xlu1 %11160 }
 0xac9   : > { %v16010_v56 = vpop.permute.xlu0 %11098 }
 0xacc   : > { %v16020_v62 = vpop.permute.xlu1 %11164 }
 0xacd   : > { %v16014_v59 = vpop.permute.xlu0 %11158 }
 0xad0   : > { %v16024_v60 = vpop.permute.xlu1 %11104 }
 0xad1   : > { %v16018_v35 = vpop.permute.xlu0 %11162 }
 0xad4   : > { %v16028_v25 = vpop.permute.xlu1 %11108 }
 0xad5   : > { %v16022_v43 = vpop.permute.xlu0 %11102 }
 0xad8   : > { %v16032_v3 = vpop.permute.xlu1 %11168 }
 0xad9   : > { %v16026_v57 = vpop.permute.xlu0 %11106 }
 0xadd   : > { %v16030_v22 = vpop.permute.xlu0 %11166 }
 0xae1   : > { %v16034_v44 = vpop.permute.xlu0 %11170 }
 0xb5c   : > { %v9918_v21 = vpop.f32.mrb[122].mxu1 }
 0xb5d   : > { %v13348_v7 = vpop.f32.mrb[123].mxu1  ;;  %11206 = vrot.lane.b32.xlu0 %v9918_v21, %s13859_s29  ;;  %v11254_v21 = vsel %vm456_vm2, %v16825_v39, %v11079_v58  ;;  %v13821_v58 = vld [vmem:[%s13922_s11 + $0x10] sm:$0xff] }
 0xb5e   : > { %v11271_v7 = vsel %vm11270_vm4, %v11254_v21, %v11143_v15 }
 0xb60   : > { %v10070_v28 = vpop.f32.mrb[124].mxu1 }
 0xb61   : > { %v9994_v18 = vpop.f32.mrb[118].mxu0  ;;  %v13358_v61 = vpop.f32.mrb[125].mxu1  ;;  %11210 = vrot.lane.b32.xlu0 %v10070_v28, %s13859_s29 }
 0xb62   : > { %11208 = vrot.lane.b32.xlu1 %v9994_v18, %s13859_s29  ;;  %v13353_v5 = vpop.f32.mrb[119].mxu0  ;;  %v16039_v18 = vpop.permute.xlu1 %11172 }
 0xb63   : > { %v13820_v5 = vld [vmem:[%s13922_s11] sm:$0xff] }
 0xb65   : > { %v10222_v11 = vpop.f32.mrb[126].mxu1 }
 0xb66   : > { %v10146_v0 = vpop.f32.mrb[120].mxu0  ;;  %v13368_v48 = vpop.f32.mrb[127].mxu1  ;;  %11214 = vrot.lane.b32.xlu0 %v10222_v11, %s13859_s29 }
 0xb67   : > { %11212 = vrot.lane.b32.xlu1 %v10146_v0, %s13859_s29  ;;  %v13363_v29 = vpop.f32.mrb[121].mxu0  ;;  %v16826_v0 = vld [vmem:[#allocation4_spill] sm:$0xff] }
 0xb68   : > { %v11256_v48 = vsel %vm456_vm2, %v16826_v0, %v11083_v63  ;;  %v16827_v29 = vld [vmem:[#allocation3_spill] sm:$0xff] }
 0xb69   : > { %v10374_v6 = vpop.f32.mrb[128].mxu1 }
 0xb6a   : > { %v10298_v8 = vpop.f32.mrb[122].mxu0  ;;  %v13378_v52 = vpop.f32.mrb[129].mxu1  ;;  %11218 = vrot.lane.b32.xlu0 %v10374_v6, %s13859_s29  ;;  %v11255_v6 = vsel %vm456_vm2, %v16827_v29, %v11081_v33 }
 0xb6b   : > { %11216 = vrot.lane.b32.xlu1 %v10298_v8, %s13859_s29  ;;  %v13373_v26 = vpop.f32.mrb[123].mxu0  ;;  %v11273_v8 = vsel %vm11270_vm4, %v11256_v48, %v11147_v30  ;;  %v13824_v30 = vld [vmem:[%s13922_s11 + $0x18] sm:$0xff]  ;;  %v13825_v48 = vld [vmem:[%s13922_s11 + $0x30] sm:$0xff] }
 0xb6d   : > { %v10526_v1 = vpop.f32.mrb[130].mxu1 }
 0xb6e   : > { %v10450_v46 = vpop.f32.mrb[124].mxu0  ;;  %v13388_v38 = vpop.f32.mrb[131].mxu1  ;;  %11222 = vrot.lane.b32.xlu0 %v10526_v1, %s13859_s29  ;;  %v11272_v1 = vsel %vm11270_vm4, %v11255_v6, %v11145_v17  ;;  %v13826_v6 = vld [vmem:[%s13922_s11 + $0x28] sm:$0xff] }
 0xb6f   : > { %11220 = vrot.lane.b32.xlu1 %v10450_v46, %s13859_s29  ;;  %v13383_v2 = vpop.f32.mrb[125].mxu0 }
 0xb71   : > { %v10678_v53 = vpop.f32.mrb[132].mxu1 }
 0xb72   : > { %v10602_v16 = vpop.f32.mrb[126].mxu0  ;;  %11226 = vrot.lane.b32.xlu0 %v10678_v53, %s13859_s29  ;;  %v13398_v54 = vpop.f32.mrb[133].mxu1 }
 0xb73   : > { %11224 = vrot.lane.b32.xlu1 %v10602_v16, %s13859_s29  ;;  %v13393_v4 = vpop.f32.mrb[127].mxu0  ;;  %v13822_v16 = vld [vmem:[%s13922_s11 + $0x8] sm:$0xff] }
 0xb74   : > { %v16828_v4 = vld [vmem:[#allocation6_spill] sm:$0xff] }
 0xb75   : > { %v10830_v23 = vpop.f32.mrb[134].mxu1  ;;  %v11258_v33 = vsel %vm456_vm2, %v16828_v4, %v11087_v20 }
 0xb76   : > { %v10754_v42 = vpop.f32.mrb[128].mxu0  ;;  %11230 = vrot.lane.b32.xlu0 %v10830_v23, %s13859_s29  ;;  %v13408_v40 = vpop.f32.mrb[135].mxu1  ;;  %v11275_v63 = vsel %vm11270_vm4, %v11258_v33, %v11151_v19  ;;  %v16831_v19 = vld [vmem:[#allocation8_spill] sm:$0xff] }
 0xb77   : > { %11228 = vrot.lane.b32.xlu1 %v10754_v42, %s13859_s29  ;;  %v13403_v37 = vpop.f32.mrb[129].mxu0  ;;  %v16829_v42 = vld [vmem:[#allocation5_spill] sm:$0xff] }
 0xb78   : > { %v11257_v40 = vsel %vm456_vm2, %v16829_v42, %v11085_v50  ;;  %v16830_v50 = vld [vmem:[#allocation7_spill] sm:$0xff] }
 0xb79   : > { %v10982_v13 = vpop.f32.mrb[136].mxu1  ;;  %v11260_v17 = vsel %vm456_vm2, %v16830_v50, %v11091_v14  ;;  %v16835_v42 = vld [vmem:[#allocation11_spill] sm:$0xff] }
 0xb7a   : > { %v10906_v41 = vpop.f32.mrb[130].mxu0  ;;  %11234 = vrot.lane.b32.xlu0 %v10982_v13, %s13859_s29  ;;  %v13418_v49 = vpop.f32.mrb[137].mxu1  ;;  %v11277_v39 = vsel %vm11270_vm4, %v11260_v17, %v11155_v10  ;;  %v16832_v10 = vld [vmem:[#allocation9_spill] sm:$0xff]  ;;  %v13830_v17 = vld [vmem:[%s13922_s11 + $0x48] sm:$0xff] }
 0xb7b   : > { %11232 = vrot.lane.b32.xlu1 %v10906_v41, %s13859_s29  ;;  %v13413_v9 = vpop.f32.mrb[131].mxu0  ;;  %v11274_v41 = vsel %vm11270_vm4, %v11257_v40, %v11149_v47  ;;  %v11259_v47 = vsel %vm456_vm2, %v16831_v19, %v15998_v36  ;;  %v11262_v29 = vsel %vm456_vm2, %v16832_v10, %v16006_v27  ;;  %v11263_v40 = vsel %vm456_vm2, %v16835_v42, %v16008_v12  ;;  %v13829_v12 = vld [vmem:[%s13922_s11 + $0x50] sm:$0xff]  ;;  %v16839_v10 = vld [vmem:[#allocation13_spill] sm:$0xff] }
 0xb7c   : > { %v13835_v42 = vld [vmem:[%s13922_s11 + $0x78] sm:$0xff] }
 0xb7e   : > { %v11058_v55 = vpop.f32.mrb[132].mxu0 }
 0xb7f   : > { %11236 = vrot.lane.b32.xlu1 %v11058_v55, %s13859_s29  ;;  %v13423_v34 = vpop.f32.mrb[133].mxu0  ;;  %v13823_v55 = vld [vmem:[%s13922_s11 + $0x20] sm:$0xff] }
 0xbcf   : > { %v11207_v28 = vpop.permute.xlu0 %11206 }
 0xbd0   : > { %v11288_v61 = vsel %vm11287_vm3, %v11271_v7, %v11207_v28  ;;  %v11276_v28 = vsel %vm11270_vm4, %v11259_v47, %v16002_v32 }
 0xbd1   : > { %v16043_v11 = vadd.f32 %v13820_v5, %v11288_v61 }
 0xbd3   : > { %v11211_v52 = vpop.permute.xlu0 %11210  ;;  %v11320_v26 = vsel %vm331_vm0, %v16043_v11, 0.0 }
 0xbd4   : > { %v11209_v46 = vpop.permute.xlu1 %11208  ;;  %v11290_v38 = vsel %vm11287_vm3, %v11273_v8, %v11211_v52  ;;  %11321 = vadd.xlane.f32.xlu0 %v11320_v26  ;;  %v16833_v8 = vld [vmem:[#allocation10_spill] sm:$0xff]  ;;  %v11279_v26 = vsel %vm11270_vm4, %v11262_v29, %v16014_v59  ;;  %v16834_v59 = vld [vmem:[#allocation15_spill] sm:$0xff]  ;;  %v11267_v29 = vsel %vm456_vm2, %v16839_v10, %v16024_v60 }
 0xbd5   : > { %v11289_v2 = vsel %vm11287_vm3, %v11272_v1, %v11209_v46  ;;  %v16056_v53 = vadd.f32 %v13821_v58, %v11290_v38  ;;  %v11261_v52 = vsel %vm456_vm2, %v16833_v8, %v16000_v45  ;;  %v13827_v45 = vld [vmem:[%s13922_s11 + $0x40] sm:$0xff]  ;;  %v11264_v33 = vsel %vm456_vm2, %v16834_v59, %v16010_v56 }
 0xbd6   : > { %v16059_v54 = vadd.f32 %v13822_v16, %v11289_v2  ;;  %v11278_v38 = vsel %vm11270_vm4, %v11261_v52, %v16004_v51 }
 0xbd7   : > { %v11326_v23 = vsel %vm331_vm0, %v16056_v53, 0.0 }
 0xbd8   : > { %v11215_v37 = vpop.permute.xlu0 %11214  ;;  %v11323_v13 = vsel %vm331_vm0, %v16059_v54, 0.0  ;;  %11327 = vadd.xlane.f32.xlu0 %v11326_v23  ;;  %v13828_v23 = vld [vmem:[%s13922_s11 + $0x38] sm:$0xff] }
 0xbd9   : > { %v11213_v49 = vpop.permute.xlu1 %11212  ;;  %v11292_v9 = vsel %vm11287_vm3, %v11275_v63, %v11215_v37  ;;  %11324 = vadd.xlane.f32.xlu1 %v11323_v13  ;;  %v11281_v63 = vsel %vm11270_vm4, %v11264_v33, %v16018_v35  ;;  %v16836_v35 = vld [vmem:[#allocation16_spill] sm:$0xff] }
 0xbda   : > { %v11291_v15 = vsel %vm11287_vm3, %v11274_v41, %v11213_v49  ;;  %v16074_v34 = vadd.f32 %v13823_v55, %v11292_v9  ;;  %v11280_v41 = vsel %vm11270_vm4, %v11263_v40, %v16016_v31  ;;  %v11266_v50 = vsel %vm456_vm2, %v16836_v35, %v16022_v43 }
 0xbdb   : > { %v16079_v20 = vadd.f32 %v13824_v30, %v11291_v15  ;;  %v16837_v30 = vld [vmem:[#allocation12_spill] sm:$0xff]  ;;  %v11283_v47 = vsel %vm11270_vm4, %v11266_v50, %v16030_v22  ;;  %v16838_v22 = vld [vmem:[#allocation17_spill] sm:$0xff] }
 0xbdc   : > { %v11219_v21 = vpop.permute.xlu0 %11218  ;;  %v11332_v7 = vsel %vm331_vm0, %v16074_v34, 0.0  ;;  %v11265_v19 = vsel %vm456_vm2, %v16837_v30, %v16012_v24  ;;  %v13831_v24 = vld [vmem:[%s13922_s11 + $0x60] sm:$0xff] }
 0xbdd   : > { %v11217_v61 = vpop.permute.xlu1 %11216  ;;  %v11294_v14 = vsel %vm11287_vm3, %v11277_v39, %v11219_v21  ;;  %v11329_v5 = vsel %vm331_vm0, %v16079_v20, 0.0  ;;  %11333 = vadd.xlane.f32.xlu1 %v11332_v7  ;;  %v11282_v7 = vsel %vm11270_vm4, %v11265_v19, %v16020_v62  ;;  %v13832_v62 = vld [vmem:[%s13922_s11 + $0x58] sm:$0xff] }
 0xbde   : > { %v11293_v0 = vsel %vm11287_vm3, %v11276_v28, %v11217_v61  ;;  %v16094_v36 = vadd.f32 %v13825_v48, %v11294_v14  ;;  %11330 = vadd.xlane.f32.xlu0 %v11329_v5 }
 0xbdf   : > { %v16100_v32 = vadd.f32 %v13826_v6, %v11293_v0  ;;  %v11268_v0 = vsel %vm456_vm2, %v16838_v22, %v16026_v57 }
 0xbe0   : > { %v11223_v1 = vpop.permute.xlu0 %11222  ;;  %v11338_v46 = vsel %vm331_vm0, %v16094_v36, 0.0  ;;  %v11285_v6 = vsel %vm11270_vm4, %v11268_v0, %v16034_v44  ;;  %v13834_v44 = vld [vmem:[%s13922_s11 + $0x68] sm:$0xff] }
 0xbe1   : > { %v11221_v2 = vpop.permute.xlu1 %11220  ;;  %v11296_v27 = vsel %vm11287_vm3, %v11279_v26, %v11223_v1  ;;  %v11335_v58 = vsel %vm331_vm0, %v16100_v32, 0.0  ;;  %11339 = vadd.xlane.f32.xlu1 %v11338_v46  ;;  %v11284_v26 = vsel %vm11270_vm4, %v11267_v29, %v16032_v3 }
 0xbe2   : > { %v11295_v16 = vsel %vm11287_vm3, %v11278_v38, %v11221_v2  ;;  %v16116_v4 = vadd.f32 %v13827_v45, %v11296_v27  ;;  %11336 = vadd.xlane.f32.xlu0 %v11335_v58  ;;  %v13833_v38 = vld [vmem:[%s13922_s11 + $0x70] sm:$0xff]  ;;  %v16840_v58 = vld [vmem:[#allocation14_spill] sm:$0xff] }
 0xbe3   : > { %v16122_v51 = vadd.f32 %v13828_v23, %v11295_v16  ;;  %v11269_v3 = vsel %vm456_vm2, %v16840_v58, %v16028_v25 }
 0xbe4   : > { %v11227_v37 = vpop.permute.xlu0 %11226  ;;  %v11344_v13 = vsel %vm331_vm0, %v16116_v4, 0.0  ;;  %v11286_v45 = vsel %vm11270_vm4, %v11269_v3, %v16039_v18 }
 0xbe5   : > { %v11225_v49 = vpop.permute.xlu1 %11224  ;;  %v11298_v56 = vsel %vm11287_vm3, %v11281_v63, %v11227_v37  ;;  %v11341_v9 = vsel %vm331_vm0, %v16122_v51, 0.0  ;;  %11345 = vadd.xlane.f32.xlu1 %v11344_v13 }
 0xbe6   : > { %v11297_v15 = vsel %vm11287_vm3, %v11280_v41, %v11225_v49  ;;  %v16138_v55 = vadd.f32 %v13829_v12, %v11298_v56  ;;  %11342 = vadd.xlane.f32.xlu0 %v11341_v9 }
 0xbe7   : > { %v16144_v31 = vadd.f32 %v13830_v17, %v11297_v15 }
 0xbe8   : > { %v11231_v39 = vpop.permute.xlu0 %11230  ;;  %v11350_v21 = vsel %vm331_vm0, %v16138_v55, 0.0 }
 0xbe9   : > { %v11229_v28 = vpop.permute.xlu1 %11228  ;;  %v11300_v43 = vsel %vm11287_vm3, %v11283_v47, %v11231_v39  ;;  %v11347_v61 = vsel %vm331_vm0, %v16144_v31, 0.0  ;;  %11351 = vadd.xlane.f32.xlu1 %v11350_v21 }
 0xbea   : > { %v11299_v14 = vsel %vm11287_vm3, %v11282_v7, %v11229_v28  ;;  %v16160_v5 = vadd.f32 %v13831_v24, %v11300_v43  ;;  %11348 = vadd.xlane.f32.xlu0 %v11347_v61 }
 0xbeb   : > { %v16166_v48 = vadd.f32 %v13832_v62, %v11299_v14 }
 0xbec   : > { %v11235_v8 = vpop.permute.xlu0 %11234  ;;  %v11356_v52 = vsel %vm331_vm0, %v16160_v5, 0.0 }
 0xbed   : > { %v11233_v1 = vpop.permute.xlu1 %11232  ;;  %v11302_v57 = vsel %vm11287_vm3, %v11285_v6, %v11235_v8  ;;  %v11353_v46 = vsel %vm331_vm0, %v16166_v48, 0.0  ;;  %11357 = vadd.xlane.f32.xlu1 %v11356_v52 }
 0xbee   : > { %v11301_v60 = vsel %vm11287_vm3, %v11284_v26, %v11233_v1  ;;  %v16182_v2 = vadd.f32 %v13833_v38, %v11302_v57  ;;  %11354 = vadd.xlane.f32.xlu0 %v11353_v46 }
 0xbef   : > { %v16185_v27 = vadd.f32 %v13834_v44, %v11301_v60 }
 0xbf0   : > { %v11362_v16 = vsel %vm331_vm0, %v16182_v2, 0.0 }
 0xbf1   : > { %v11237_v59 = vpop.permute.xlu1 %11236  ;;  %v11359_v33 = vsel %vm331_vm0, %v16185_v27, 0.0  ;;  %11363 = vadd.xlane.f32.xlu1 %v11362_v16 }
 0xbf2   : > { %v11303_v23 = vsel %vm11287_vm3, %v11286_v45, %v11237_v59  ;;  %11360 = vadd.xlane.f32.xlu0 %v11359_v33 }
 0xbf3   : > { %v16198_v40 = vadd.f32 %v13835_v42, %v11303_v23 }
 0xbf5   : > { %v11365_v25 = vsel %vm331_vm0, %v16198_v40, 0.0 }
 0xbf6   : > { %11366 = vadd.xlane.f32.xlu0 %v11365_v25 }
 0xc61   : > { %v11322_v63 = vpop.xlane.xlu0 %11321 }
 0xc62   : > { %v11369_v37 = vmul.f32 0.03125, %v11322_v63 }
 0xc64   : > { %v16203_v13 = vsub.f32 %v16043_v11, %v11369_v37 }
 0xc65   : > { %v11328_v18 = vpop.xlane.xlu0 %11327 }
 0xc66   : > { %v11325_v41 = vpop.xlane.xlu1 %11324  ;;  %v11371_v49 = vmul.f32 0.03125, %v11328_v18  ;;  %v11401_v56 = vmul.f32 %v16203_v13, %v16203_v13 }
 0xc67   : > { %v11370_v9 = vmul.f32 0.03125, %v11325_v41 }
 0xc68   : > { %v16208_v15 = vsub.f32 %v16056_v53, %v11371_v49  ;;  %v11417_v12 = vsel %vm331_vm0, %v11401_v56, 0.0 }
 0xc69   : > { %v16212_v35 = vsub.f32 %v16059_v54, %v11370_v9  ;;  %11418 = vadd.xlane.f32.xlu1 %v11417_v12 }
 0xc6a   : > { %v11334_v50 = vpop.xlane.xlu1 %11333  ;;  %v11403_v11 = vmul.f32 %v16208_v15, %v16208_v15 }
 0xc6b   : > { %v11373_v17 = vmul.f32 0.03125, %v11334_v50  ;;  %v11331_v30 = vpop.xlane.xlu0 %11330  ;;  %v11402_v19 = vmul.f32 %v16212_v35, %v16212_v35 }
 0xc6c   : > { %v11372_v47 = vmul.f32 0.03125, %v11331_v30  ;;  %v11423_v39 = vsel %vm331_vm0, %v11403_v11, 0.0 }
 0xc6d   : > { %v16220_v53 = vsub.f32 %v16074_v34, %v11373_v17  ;;  %v11420_v21 = vsel %vm331_vm0, %v11402_v19, 0.0  ;;  %11424 = vadd.xlane.f32.xlu1 %v11423_v39 }
 0xc6e   : > { %v16224_v54 = vsub.f32 %v16079_v20, %v11372_v47  ;;  %11421 = vadd.xlane.f32.xlu0 %v11420_v21  ;;  %v11340_v7 = vpop.xlane.xlu1 %11339 }
 0xc6f   : > { %v11375_v28 = vmul.f32 0.03125, %v11340_v7  ;;  %v11337_v43 = vpop.xlane.xlu0 %11336  ;;  %v11405_v61 = vmul.f32 %v16220_v53, %v16220_v53 }
 0xc70   : > { %v11374_v14 = vmul.f32 0.03125, %v11337_v43  ;;  %v11404_v24 = vmul.f32 %v16224_v54, %v16224_v54  ;;  %v13496_v43 = vld [vmem:[%s16745_s5] sm:$0xff]  }
 0xc71   : > { %v16231_v34 = vsub.f32 %v16094_v36, %v11375_v28  ;;  %v11429_v22 = vsel %vm331_vm0, %v11405_v61, 0.0  ;;  %v13494_v28 = vld [vmem:[%s16743_s3] sm:$0xff]   ;;  %v13497_v61 = vld [vmem:[%s16745_s5 + $0x8] sm:$0xff]   ;;  %13444 = vmatprep.subr.bf16.mxu0 %v13496_v43 }
 0xc72   : > { %v16235_v0 = vsub.f32 %v16100_v32, %v11374_v14  ;;  %v11346_v20 = vpop.xlane.xlu1 %11345  ;;  %11430 = vadd.xlane.f32.xlu1 %v11429_v22  ;;  %v11426_v62 = vsel %vm331_vm0, %v11404_v24, 0.0  ;;  %13424 = vmatprep.subr.bf16.mxu1 %v13494_v28 }
 0xc73   : > { %v11377_v10 = vmul.f32 0.03125, %v11346_v20  ;;  %11427 = vadd.xlane.f32.xlu0 %v11426_v62  ;;  %v11343_v29 = vpop.xlane.xlu0 %11342  ;;  %v11407_v6 = vmul.f32 %v16231_v34, %v16231_v34  ;;  %13425 = vmatpush3.bf16.msra.mxu1 %v13494_v28  ;;  %v11529_v20 = vlaneseq }
 0xc74   : > { %v11376_v8 = vmul.f32 0.03125, %v11343_v29  ;;  %v11406_v36 = vmul.f32 %v16235_v0, %v16235_v0  ;;  %13445 = vmatpush3.bf16.msra.mxu0 %v13496_v43 }
 0xc75   : > { %v16243_v52 = vsub.f32 %v16116_v4, %v11377_v10  ;;  %v11435_v32 = vsel %vm331_vm0, %v11407_v6, 0.0  ;;  %13446 = vmatprep.subr.bf16.mxu0 %v13497_v61 }
 0xc76   : > { %v16247_v26 = vsub.f32 %v16122_v51, %v11376_v8  ;;  %v11352_v1 = vpop.xlane.xlu1 %11351  ;;  %11436 = vadd.xlane.f32.xlu1 %v11435_v32  ;;  %v11432_v57 = vsel %vm331_vm0, %v11406_v36, 0.0  ;;  %v16310_v36 = vshrl.u32 %v11529_v20, 7 }
 0xc77   : > { %v11379_v46 = vmul.f32 0.03125, %v11352_v1  ;;  %11433 = vadd.xlane.f32.xlu0 %v11432_v57  ;;  %v11349_v60 = vpop.xlane.xlu0 %11348  ;;  %v11409_v38 = vmul.f32 %v16243_v52, %v16243_v52 }
 0xc78   : > { %v11378_v44 = vmul.f32 0.03125, %v11349_v60  ;;  %v11408_v4 = vmul.f32 %v16247_v26, %v16247_v26  ;;  %13447 = vmatpush3.bf16.msra.mxu0 %v13497_v61 }
 0xc79   : > { %v16255_v58 = vsub.f32 %v16138_v55, %v11379_v46  ;;  %v11441_v51 = vsel %vm331_vm0, %v11409_v38, 0.0  ;;  %v11531_v38 = vsub.s32 0, %v16310_v36 }
 0xc7a   : > { %v16259_v3 = vsub.f32 %v16144_v31, %v11378_v44  ;;  %v11358_v16 = vpop.xlane.xlu1 %11357  ;;  %11442 = vadd.xlane.f32.xlu1 %v11441_v51  ;;  %v11438_v45 = vsel %vm331_vm0, %v11408_v4, 0.0  ;;  %v16316_v4 = vld [vmem:[%s16746_s6] sm:$0x1f] }
 0xc7b   : > { %v11381_v59 = vmul.f32 0.03125, %v11358_v16  ;;  %11439 = vadd.xlane.f32.xlu0 %v11438_v45  ;;  %v11355_v33 = vpop.xlane.xlu0 %11354  ;;  %v11411_v23 = vmul.f32 %v16255_v58, %v16255_v58 }
 0xc7c   : > { %v11380_v42 = vmul.f32 0.03125, %v11355_v33  ;;  %v11410_v55 = vmul.f32 %v16259_v3, %v16259_v3 }
 0xc7d   : > { %v16267_v25 = vsub.f32 %v16160_v5, %v11381_v59  ;;  %v11447_v31 = vsel %vm331_vm0, %v11411_v23, 0.0 }
 0xc7e   : > { %v16271_v63 = vsub.f32 %v16166_v48, %v11380_v42  ;;  %v11364_v37 = vpop.xlane.xlu1 %11363  ;;  %11448 = vadd.xlane.f32.xlu1 %v11447_v31  ;;  %v11444_v18 = vsel %vm331_vm0, %v11410_v55, 0.0  ;;  %v16320_v55 = vrot.slane %v16316_v4, %v11531_v38 }
 0xc7f   : > { %v11383_v41 = vmul.f32 0.03125, %v11364_v37  ;;  %11445 = vadd.xlane.f32.xlu0 %v11444_v18  ;;  %v11361_v49 = vpop.xlane.xlu0 %11360  ;;  %v11413_v56 = vmul.f32 %v16267_v25, %v16267_v25  ;;  %v11551_v37 = vsub.s32 1, %v16310_v36 }
 0xc80   : > { %v11382_v9 = vmul.f32 0.03125, %v11361_v49  ;;  %v11412_v5 = vmul.f32 %v16271_v63, %v16271_v63 }
 0xc81   : > { %v16279_v12 = vsub.f32 %v16182_v2, %v11383_v41  ;;  %v11453_v48 = vsel %vm331_vm0, %v11413_v56, 0.0 }
 0xc82   : > { %v16283_v50 = vsub.f32 %v16185_v27, %v11382_v9  ;;  %11454 = vadd.xlane.f32.xlu1 %v11453_v48  ;;  %v11450_v11 = vsel %vm331_vm0, %v11412_v5, 0.0 }
 0xc83   : > { %11451 = vadd.xlane.f32.xlu0 %v11450_v11  ;;  %v11367_v17 = vpop.xlane.xlu0 %11366  ;;  %v11415_v30 = vmul.f32 %v16279_v12, %v16279_v12 }
 0xc84   : > { %v11384_v19 = vmul.f32 0.03125, %v11367_v17  ;;  %v11414_v47 = vmul.f32 %v16283_v50, %v16283_v50 }
 0xc85   : > { %v11459_v2 = vsel %vm331_vm0, %v11415_v30, 0.0 }
 0xc86   : > { %v16292_v39 = vsub.f32 %v16198_v40, %v11384_v19  ;;  %11460 = vadd.xlane.f32.xlu1 %v11459_v2  ;;  %v11456_v27 = vsel %vm331_vm0, %v11414_v47, 0.0  ;;  %v13495_v40 = vld [vmem:[%s16743_s3 + $0x8] sm:$0xff]  }
 0xc87   : > { %11457 = vadd.xlane.f32.xlu0 %v11456_v27  ;;  %13426 = vmatprep.subr.bf16.mxu1 %v13495_v40 }
 0xc88   : > { %v11416_v21 = vmul.f32 %v16292_v39, %v16292_v39  ;;  %13427 = vmatpush3.bf16.msra.mxu1 %v13495_v40 }
 0xc8a   : > { %v11462_v7 = vsel %vm331_vm0, %v11416_v21, 0.0 }
 0xc8b   : > { %11463 = vadd.xlane.f32.xlu0 %v11462_v7 }
 0xcf6   : > { %v11419_v14 = vpop.xlane.xlu1 %11418 }
 0xcf7   : > { %v11465_v24 = vmul.f32 0.03125, %v11419_v14 }
 0xcf9   : > { %v11481_v22 = vadd.f32 1e-05, %v11465_v24 }
 0xcfa   : > { %v11425_v62 = vpop.xlane.xlu1 %11424 }
 0xcfb   : > { %13756 = vrsqrt.f32 %v11481_v22  ;;  %v11467_v10 = vmul.f32 0.03125, %v11425_v62  ;;  %v11422_v29 = vpop.xlane.xlu0 %11421 }
 0xcfc   : > { %v11466_v6 = vmul.f32 0.03125, %v11422_v29 }
 0xcfd   : > { %v11483_v8 = vadd.f32 1e-05, %v11467_v10 }
 0xcfe   : > { %v11482_v32 = vadd.f32 1e-05, %v11466_v6 }
 0xcff   : > { %13758 = vrsqrt.f32 %v11483_v8  ;;  %v11431_v1 = vpop.xlane.xlu1 %11430 }
 0xd00   : > { %13760 = vrsqrt.f32 %v11482_v32  ;;  %v11469_v57 = vmul.f32 0.03125, %v11431_v1  ;;  %v11428_v46 = vpop.xlane.xlu0 %11427 }
 0xd01   : > { %v11468_v60 = vmul.f32 0.03125, %v11428_v46 }
 0xd02   : > { %v11485_v44 = vadd.f32 1e-05, %v11469_v57 }
 0xd03   : > { %v11484_v51 = vadd.f32 1e-05, %v11468_v60  ;;  %v11437_v16 = vpop.xlane.xlu1 %11436 }
 0xd04   : > { %13762 = vrsqrt.f32 %v11485_v44  ;;  %v11471_v45 = vmul.f32 0.03125, %v11437_v16  ;;  %v11434_v59 = vpop.xlane.xlu0 %11433 }
 0xd05   : > { %v13757_v33 = vpop.eup %13756  ;;  %13764 = vrsqrt.f32 %v11484_v51  ;;  %v11470_v23 = vmul.f32 0.03125, %v11434_v59 }
 0xd06   : > { %v11513_v42 = vmul.f32 %v13757_v33, %v16203_v13  ;;  %v11487_v31 = vadd.f32 1e-05, %v11471_v45  ;;  %v16325_v13 = vrot.slane %v16316_v4, %v11551_v37 }
 0xd07   : > { %v11486_v18 = vadd.f32 1e-05, %v11470_v23  ;;  %v11443_v41 = vpop.xlane.xlu1 %11442 }
 0xd08   : > { %13766 = vrsqrt.f32 %v11487_v31  ;;  %v11473_v49 = vmul.f32 0.03125, %v11443_v41  ;;  %v11440_v56 = vpop.xlane.xlu0 %11439  ;;  %v11533_v17 = vmul.f32 %v16320_v55, %v11513_v42 }
 0xd09   : > { %v13759_v9 = vpop.eup %13758  ;;  %13768 = vrsqrt.f32 %v11486_v18  ;;  %v11472_v5 = vmul.f32 0.03125, %v11440_v56 }
 0xd0a   : > { %v13761_v48 = vpop.eup %13760  ;;  %v11489_v11 = vadd.f32 1e-05, %v11473_v49  ;;  %v11515_v30 = vmul.f32 %v13759_v9, %v16208_v15  ;;  %v16331_v61 = vadd.f32 %v16325_v13, %v11533_v17 }
 0xd0b   : > { %v11514_v19 = vmul.f32 %v13761_v48, %v16212_v35  ;;  %v11488_v47 = vadd.f32 1e-05, %v11472_v5  ;;  %v11449_v2 = vpop.xlane.xlu1 %11448 }
 0xd0c   : > { %13770 = vrsqrt.f32 %v11489_v11  ;;  %v11475_v27 = vmul.f32 0.03125, %v11449_v2  ;;  %v11446_v21 = vpop.xlane.xlu0 %11445  ;;  %v11535_v24 = vmul.f32 %v16320_v55, %v11515_v30 }
 0xd0d   : > { %13772 = vrsqrt.f32 %v11488_v47  ;;  %v11474_v7 = vmul.f32 0.03125, %v11446_v21  ;;  %v11534_v28 = vmul.f32 %v16320_v55, %v11514_v19 }
 0xd0e   : > { %v13763_v40 = vpop.eup %13762  ;;  %v11491_v43 = vadd.f32 1e-05, %v11475_v27 }
 0xd0f   : > { %v13765_v14 = vpop.eup %13764  ;;  %v11517_v15 = vmul.f32 %v13763_v40, %v16220_v53  ;;  %v11490_v35 = vadd.f32 1e-05, %v11474_v7  ;;  %v11455_v22 = vpop.xlane.xlu1 %11454  ;;  %v16336_v20 = vadd.f32 %v16325_v13, %v11534_v28 }
 0xd10   : > { %v11516_v62 = vmul.f32 %v13765_v14, %v16224_v54  ;;  %13774 = vrsqrt.f32 %v11491_v43  ;;  %v11477_v10 = vmul.f32 0.03125, %v11455_v22  ;;  %v11452_v29 = vpop.xlane.xlu0 %11451  ;;  %v16345_v54 = vadd.f32 %v16325_v13, %v11535_v24 }
 0xd11   : > { %13776 = vrsqrt.f32 %v11490_v35  ;;  %v11476_v6 = vmul.f32 0.03125, %v11452_v29  ;;  %v11569_v8 = vpack.c.bf16 %v16336_v20, %v16331_v61  ;;  %v11537_v44 = vmul.f32 %v16320_v55, %v11517_v15 }
 0xd12   : > { %v13767_v32 = vpop.eup %13766  ;;  %v11536_v1 = vmul.f32 %v16320_v55, %v11516_v62  ;;  %v11493_v57 = vadd.f32 1e-05, %v11477_v10 }
 0xd13   : > { %v13769_v53 = vpop.eup %13768  ;;  %v11519_v46 = vmul.f32 %v13767_v32, %v16231_v34  ;;  %v11492_v60 = vadd.f32 1e-05, %v11476_v6  ;;  %v11461_v38 = vpop.xlane.xlu1 %11460  ;;  %13428 = vmatprep.mubr.msk.bf16.mxu1 %vm331_vm0, %v11569_v8  ;;  %v16356_v41 = vadd.f32 %v16325_v13, %v11537_v44 }
 0xd14   : > { %v11518_v51 = vmul.f32 %v13769_v53, %v16235_v0  ;;  %13778 = vrsqrt.f32 %v11493_v57  ;;  %v11479_v16 = vmul.f32 0.03125, %v11461_v38  ;;  %v11458_v45 = vpop.xlane.xlu0 %11457  ;;  %v16350_v59 = vadd.f32 %v16325_v13, %v11536_v1 }
 0xd15   : > { %13780 = vrsqrt.f32 %v11492_v60  ;;  %v11478_v33 = vmul.f32 0.03125, %v11458_v45  ;;  %v11539_v0 = vmul.f32 %v16320_v55, %v11519_v46 }
 0xd16   : > { %v13771_v34 = vpop.eup %13770  ;;  %v11495_v23 = vadd.f32 1e-05, %v11479_v16  ;;  %v11570_v42 = vpack.c.bf16 %v16350_v59, %v16345_v54  ;;  %v11538_v31 = vmul.f32 %v16320_v55, %v11518_v51  ;;  %v13498_v16 = vld [vmem:[%s16745_s5 + $0x10] sm:$0xff]  }
 0xd17   : > { %v13773_v37 = vpop.eup %13772  ;;  %v11494_v18 = vadd.f32 1e-05, %v11478_v33  ;;  %v11521_v49 = vmul.f32 %v13771_v34, %v16243_v52  ;;  %v16372_v2 = vadd.f32 %v16325_v13, %v11539_v0  ;;  %13448 = vmatprep.subr.bf16.mxu0 %v13498_v16 }
 0xd18   : > { %v11520_v56 = vmul.f32 %v13773_v37, %v16247_v26  ;;  %13782 = vrsqrt.f32 %v11495_v23  ;;  %13429 = vmatmul.mubr.msk.bf16.vlgmr.msra.gmra.mrb[140].mxu1 %vm331_vm0, %v11570_v42  ;;  %v11464_v9 = vpop.xlane.xlu0 %11463  ;;  %v16363_v5 = vadd.f32 %v16325_v13, %v11538_v31  ;;  %13449 = vmatpush3.bf16.msra.mxu0 %v13498_v16 }
 0xd19   : > { %13784 = vrsqrt.f32 %v11494_v18  ;;  %v11480_v48 = vmul.f32 0.03125, %v11464_v9  ;;  %v11541_v21 = vmul.f32 %v16320_v55, %v11521_v49 }
 0xd1a   : > { %v13775_v11 = vpop.eup %13774  ;;  %v11571_v17 = vpack.c.bf16 %v16363_v5, %v16356_v41  ;;  %v11540_v30 = vmul.f32 %v16320_v55, %v11520_v56 }
 0xd1b   : > { %v13777_v19 = vpop.eup %13776  ;;  %v11523_v52 = vmul.f32 %v13775_v11, %v16255_v58  ;;  %v11496_v47 = vadd.f32 1e-05, %v11480_v48  ;;  %v16386_v24 = vadd.f32 %v16325_v13, %v11541_v21 }
 0xd1c   : > { %v11522_v26 = vmul.f32 %v13777_v19, %v16259_v3  ;;  %13432 = vmatprep.mubr.msk.bf16.mxu1 %vm331_vm0, %v11571_v17  ;;  %v16375_v27 = vadd.f32 %v16325_v13, %v11540_v30 }
 0xd1d   : > { %13786 = vrsqrt.f32 %v11496_v47  ;;  %v11543_v3 = vmul.f32 %v16320_v55, %v11523_v52 }
 0xd1e   : > { %v13779_v7 = vpop.eup %13778  ;;  %v11572_v28 = vpack.c.bf16 %v16375_v27, %v16372_v2  ;;  %v11542_v58 = vmul.f32 %v16320_v55, %v11522_v26 }
 0xd1f   : > { %v13781_v40 = vpop.eup %13780  ;;  %v11525_v43 = vmul.f32 %v13779_v7, %v16267_v25  ;;  %v16395_v29 = vadd.f32 %v16325_v13, %v11543_v3 }
 0xd20   : > { %v11524_v14 = vmul.f32 %v13781_v40, %v16271_v63  ;;  %13433 = vmatmul.mubr.msk.bf16.gmra.mrb[144].mxu1 %vm331_vm0, %v11572_v28  ;;  %v16389_v15 = vadd.f32 %v16325_v13, %v11542_v58 }
 0xd21   : > { %v11545_v8 = vmul.f32 %v16320_v55, %v11525_v43 }
 0xd22   : > { %v13783_v35 = vpop.eup %13782  ;;  %v11573_v22 = vpack.c.bf16 %v16389_v15, %v16386_v24  ;;  %v11544_v62 = vmul.f32 %v16320_v55, %v11524_v14 }
 0xd23   : > { %v13785_v10 = vpop.eup %13784  ;;  %v11527_v25 = vmul.f32 %v13783_v35, %v16279_v12  ;;  %v16410_v12 = vadd.f32 %v16325_v13, %v11545_v8 }
 0xd24   : > { %v11526_v63 = vmul.f32 %v13785_v10, %v16283_v50  ;;  %13436 = vmatprep.mubr.msk.bf16.mxu1 %vm331_vm0, %v11573_v22  ;;  %v16401_v6 = vadd.f32 %v16325_v13, %v11544_v62 }
 0xd25   : > { %v11547_v46 = vmul.f32 %v16320_v55, %v11527_v25 }
 0xd26   : > { %v11574_v32 = vpack.c.bf16 %v16401_v6, %v16395_v29  ;;  %v11546_v1 = vmul.f32 %v16320_v55, %v11526_v63 }
 0xd27   : > { %v13787_v57 = vpop.eup %13786  ;;  %v16421_v44 = vadd.f32 %v16325_v13, %v11547_v46 }
 0xd28   : > { %v11528_v53 = vmul.f32 %v13787_v57, %v16292_v39  ;;  %13437 = vmatmul.mubr.msk.bf16.gmra.mrb[148].mxu1 %vm331_vm0, %v11574_v32  ;;  %v16413_v50 = vadd.f32 %v16325_v13, %v11546_v1 }
 0xd2a   : > { %v11575_v60 = vpack.c.bf16 %v16413_v50, %v16410_v12  ;;  %v11548_v38 = vmul.f32 %v16320_v55, %v11528_v53  ;;  %v13499_v55 = vld [vmem:[%s16745_s5 + $0x18] sm:$0xff]  }
 0xd2b   : > { %13450 = vmatprep.subr.bf16.mxu0 %v13499_v55 }
 0xd2c   : > { %13440 = vmatprep.mubr.msk.bf16.mxu1 %vm331_vm0, %v11575_v60  ;;  %v16424_v39 = vadd.f32 %v16325_v13, %v11548_v38  ;;  %13451 = vmatpush3.bf16.msra.mxu0 %v13499_v55  ;;  %v12451_v13 = vld [vmem:[%s16744_s4] ss:$0 sm:$0xff] }
 0xd2e   : > { %v11576_v51 = vpack.c.bf16 %v16424_v39, %v16421_v44 }
 0xd30   : > { %13441 = vmatmul.mubr.msk.bf16.gmra.mrb[152].mxu1 %vm331_vm0, %v11576_v51 }
 0xdeb   : > { %v13430_v45 = vpop.f32.mrb[140].mxu1 }
 0xdec   : > { %v11667_v33 = vadd.f32 %v13430_v45, %v12451_v13  ;;  %v11658_v34 = vpop.f32.mrb[141].mxu1 }
 0xded   : > { %v11659_v23 = vadd.f32 %v12451_v13, %v11658_v34  ;;  %v13431_v42 = vpop.f32.mrb[142].mxu1 }
 0xdee   : > { %v11670_v31 = vadd.f32 %v13431_v42, %v12451_v13  ;;  %v11661_v37 = vpop.f32.mrb[143].mxu1  ;;  %v11723_v0 = vmax.f32 %v11667_v33, 0.0 }
 0xdef   : > { %v11662_v18 = vadd.f32 %v12451_v13, %v11661_v37  ;;  %v11721_v56 = vmax.f32 %v11659_v23, 0.0 }
 0xdf0   : > { %v11724_v49 = vmax.f32 %v11670_v31, 0.0 }
 0xdf1   : > { %v11722_v9 = vmax.f32 %v11662_v18, 0.0 }
 0xdf2   : > { %v11738_v48 = vpack.c.bf16 %v11724_v49, %v11723_v0 }
 0xdf3   : > { %v11737_v11 = vpack.c.bf16 %v11722_v9, %v11721_v56  ;;  %v13434_v17 = vpop.f32.mrb[144].mxu1  ;;  %v11755_v9 = vsub.s32 2, %v16310_v36 }
 0xdf4   : > { %v11683_v30 = vadd.f32 %v13434_v17, %v12451_v13  ;;  %v11674_v19 = vpop.f32.mrb[145].mxu1 }
 0xdf5   : > { %v11675_v52 = vadd.f32 %v12451_v13, %v11674_v19  ;;  %v13435_v47 = vpop.f32.mrb[146].mxu1  ;;  %13452 = vmatprep.mubr.msk.bf16.mxu0 %vm11781_vm5, %v11737_v11 }
 0xdf6   : > { %v11686_v26 = vadd.f32 %v13435_v47, %v12451_v13  ;;  %v11677_v21 = vpop.f32.mrb[147].mxu1  ;;  %13453 = vmatmul.mubr.msk.bf16.vlgmr.msra.gmra.mrb[136].mxu0 %vm11781_vm5, %v11738_v48  ;;  %v11727_v28 = vmax.f32 %v11683_v30, 0.0  ;;  %v16448_v48 = vrot.slane %v16316_v4, %v11755_v9 }
 0xdf7   : > { %v11678_v7 = vadd.f32 %v12451_v13, %v11677_v21  ;;  %v11725_v40 = vmax.f32 %v11675_v52, 0.0 }
 0xdf8   : > { %v11728_v58 = vmax.f32 %v11686_v26, 0.0 }
 0xdf9   : > { %v11726_v3 = vmax.f32 %v11678_v7, 0.0 }
 0xdfa   : > { %v11740_v43 = vpack.c.bf16 %v11728_v58, %v11727_v28 }
 0xdfb   : > { %v11739_v14 = vpack.c.bf16 %v11726_v3, %v11725_v40  ;;  %v13438_v35 = vpop.f32.mrb[148].mxu1 }
 0xdfc   : > { %v11699_v22 = vadd.f32 %v13438_v35, %v12451_v13  ;;  %v11690_v62 = vpop.f32.mrb[149].mxu1 }
 0xdfd   : > { %v11691_v10 = vadd.f32 %v12451_v13, %v11690_v62  ;;  %v13439_v25 = vpop.f32.mrb[150].mxu1  ;;  %13456 = vmatprep.mubr.msk.bf16.mxu0 %vm11781_vm5, %v11739_v14 }
 0xdfe   : > { %v11702_v63 = vadd.f32 %v13439_v25, %v12451_v13  ;;  %v11693_v8 = vpop.f32.mrb[151].mxu1  ;;  %13457 = vmatmul.mubr.msk.bf16.gmra.mrb[140].mxu0 %vm11781_vm5, %v11740_v43  ;;  %v11731_v1 = vmax.f32 %v11699_v22, 0.0 }
 0xdff   : > { %v11694_v32 = vadd.f32 %v12451_v13, %v11693_v8  ;;  %v11729_v53 = vmax.f32 %v11691_v10, 0.0 }
 0xe00   : > { %v11732_v57 = vmax.f32 %v11702_v63, 0.0 }
 0xe01   : > { %v11730_v46 = vmax.f32 %v11694_v32, 0.0 }
 0xe02   : > { %v11742_v60 = vpack.c.bf16 %v11732_v57, %v11731_v1 }
 0xe03   : > { %v11741_v38 = vpack.c.bf16 %v11730_v46, %v11729_v53  ;;  %v13442_v51 = vpop.f32.mrb[152].mxu1 }
 0xe04   : > { %v11715_v16 = vadd.f32 %v13442_v51, %v12451_v13  ;;  %v11706_v55 = vpop.f32.mrb[153].mxu1 }
 0xe05   : > { %v11707_v45 = vadd.f32 %v12451_v13, %v11706_v55  ;;  %v13443_v33 = vpop.f32.mrb[154].mxu1  ;;  %13460 = vmatprep.mubr.msk.bf16.mxu0 %vm11781_vm5, %v11741_v38 }
 0xe06   : > { %v11718_v34 = vadd.f32 %v13443_v33, %v12451_v13  ;;  %v11709_v23 = vpop.f32.mrb[155].mxu1  ;;  %13461 = vmatmul.mubr.msk.bf16.gmra.mrb[144].mxu0 %vm11781_vm5, %v11742_v60  ;;  %v11735_v31 = vmax.f32 %v11715_v16, 0.0 }
 0xe07   : > { %v11710_v42 = vadd.f32 %v12451_v13, %v11709_v23  ;;  %v11733_v18 = vmax.f32 %v11707_v45, 0.0 }
 0xe08   : > { %v11736_v37 = vmax.f32 %v11718_v34, 0.0 }
 0xe09   : > { %v11734_v0 = vmax.f32 %v11710_v42, 0.0 }
 0xe0a   : > { %v11744_v49 = vpack.c.bf16 %v11736_v37, %v11735_v31 }
 0xe0b   : > { %v11743_v56 = vpack.c.bf16 %v11734_v0, %v11733_v18 }
 0xe0d   : > { %13464 = vmatprep.mubr.msk.bf16.mxu0 %vm11781_vm5, %v11743_v56 }
 0xe0e   : > { %13465 = vmatmul.mubr.msk.bf16.gmra.mrb[148].mxu0 %vm11781_vm5, %v11744_v49 }
 0xec9   : > { %v13454_v11 = vpop.f32.mrb[136].mxu0 }
 0xeca   : > { %v11849_v17 = vadd.f32 %v13454_v11, %v16448_v48  ;;  %v11840_v30 = vpop.f32.mrb[137].mxu0 }
 0xecb   : > { %v11841_v13 = vadd.f32 %v11840_v30, %v16448_v48  ;;  %v13455_v19 = vpop.f32.mrb[138].mxu0 }
 0xecc   : > { %v16453_v52 = vadd.f32 %v11849_v17, %v16345_v54  ;;  %v11852_v47 = vadd.f32 %v13455_v19, %v16448_v48  ;;  %v11843_v26 = vpop.f32.mrb[139].mxu0 }
 0xecd   : > { %v11844_v21 = vadd.f32 %v11843_v26, %v16448_v48  ;;  %v16458_v7 = vadd.f32 %v11841_v13, %v16331_v61 }
 0xece   : > { %v16461_v28 = vadd.f32 %v11852_v47, %v16350_v59  ;;  %v11925_v58 = vsel %vm331_vm0, %v16453_v52, 0.0 }
 0xecf   : > { %11926 = vadd.xlane.f32.xlu1 %v11925_v58  ;;  %v16466_v40 = vadd.f32 %v11844_v21, %v16336_v20  ;;  %v11919_v61 = vsel %vm331_vm0, %v16458_v7, 0.0 }
 0xed0   : > { %v11928_v54 = vsel %vm331_vm0, %v16461_v28, 0.0 }
 0xed1   : > { %11929 = vadd.xlane.f32.xlu0 %v11928_v54  ;;  %v13458_v3 = vpop.f32.mrb[140].mxu0  ;;  %v11922_v10 = vsel %vm331_vm0, %v16466_v40, 0.0 }
 0xed2   : > { %v11865_v43 = vadd.f32 %v13458_v3, %v16448_v48  ;;  %v11856_v14 = vpop.f32.mrb[141].mxu0 }
 0xed3   : > { %v11857_v59 = vadd.f32 %v11856_v14, %v16448_v48  ;;  %11920 = vadd.xlane.f32.xlu1 %v11919_v61  ;;  %v13459_v35 = vpop.f32.mrb[142].mxu0 }
 0xed4   : > { %v16475_v22 = vadd.f32 %v11865_v43, %v16372_v2  ;;  %v11868_v20 = vadd.f32 %v13459_v35, %v16448_v48  ;;  %v11859_v62 = vpop.f32.mrb[143].mxu0 }
 0xed5   : > { %v11860_v25 = vadd.f32 %v11859_v62, %v16448_v48  ;;  %11923 = vadd.xlane.f32.xlu0 %v11922_v10  ;;  %v16482_v63 = vadd.f32 %v11857_v59, %v16356_v41 }
 0xed6   : > { %v16485_v8 = vadd.f32 %v11868_v20, %v16375_v27  ;;  %v11937_v32 = vsel %vm331_vm0, %v16475_v22, 0.0 }
 0xed7   : > { %11938 = vadd.xlane.f32.xlu1 %v11937_v32  ;;  %v16490_v2 = vadd.f32 %v11860_v25, %v16363_v5  ;;  %v11931_v41 = vsel %vm331_vm0, %v16482_v63, 0.0 }
 0xed8   : > { %v11940_v1 = vsel %vm331_vm0, %v16485_v8, 0.0 }
 0xed9   : > { %11941 = vadd.xlane.f32.xlu0 %v11940_v1  ;;  %v13462_v57 = vpop.f32.mrb[144].mxu0  ;;  %v11934_v16 = vsel %vm331_vm0, %v16490_v2, 0.0 }
 0xeda   : > { %v11881_v53 = vadd.f32 %v13462_v57, %v16448_v48  ;;  %v11872_v46 = vpop.f32.mrb[145].mxu0 }
 0xedb   : > { %v11873_v27 = vadd.f32 %v11872_v46, %v16448_v48  ;;  %11932 = vadd.xlane.f32.xlu1 %v11931_v41  ;;  %v13463_v60 = vpop.f32.mrb[146].mxu0 }
 0xedc   : > { %v16499_v38 = vadd.f32 %v11881_v53, %v16395_v29  ;;  %v11884_v5 = vadd.f32 %v13463_v60, %v16448_v48  ;;  %v11875_v51 = vpop.f32.mrb[147].mxu0 }
 0xedd   : > { %v11876_v55 = vadd.f32 %v11875_v51, %v16448_v48  ;;  %11935 = vadd.xlane.f32.xlu0 %v11934_v16  ;;  %v16506_v45 = vadd.f32 %v11873_v27, %v16386_v24 }
 0xede   : > { %v16509_v33 = vadd.f32 %v11884_v5, %v16401_v6  ;;  %v11949_v34 = vsel %vm331_vm0, %v16499_v38, 0.0 }
 0xedf   : > { %11950 = vadd.xlane.f32.xlu1 %v11949_v34  ;;  %v16514_v29 = vadd.f32 %v11876_v55, %v16389_v15  ;;  %v11943_v24 = vsel %vm331_vm0, %v16506_v45, 0.0 }
 0xee0   : > { %v11952_v23 = vsel %vm331_vm0, %v16509_v33, 0.0 }
 0xee1   : > { %11953 = vadd.xlane.f32.xlu0 %v11952_v23  ;;  %v13466_v42 = vpop.f32.mrb[148].mxu0  ;;  %v11946_v15 = vsel %vm331_vm0, %v16514_v29, 0.0 }
 0xee2   : > { %v11888_v31 = vpop.f32.mrb[149].mxu0  ;;  %v11897_v37 = vadd.f32 %v13466_v42, %v16448_v48 }
 0xee3   : > { %v11889_v6 = vadd.f32 %v11888_v31, %v16448_v48  ;;  %11944 = vadd.xlane.f32.xlu1 %v11943_v24  ;;  %v13467_v18 = vpop.f32.mrb[150].mxu0 }
 0xee4   : > { %v11891_v0 = vpop.f32.mrb[151].mxu0  ;;  %v11900_v56 = vadd.f32 %v13467_v18, %v16448_v48  ;;  %v16530_v11 = vadd.f32 %v11897_v37, %v16421_v44 }
 0xee5   : > { %v16525_v49 = vadd.f32 %v11889_v6, %v16410_v12  ;;  %v11892_v9 = vadd.f32 %v11891_v0, %v16448_v48  ;;  %11947 = vadd.xlane.f32.xlu0 %v11946_v15 }
 0xee6   : > { %v16538_v13 = vadd.f32 %v11900_v56, %v16424_v39  ;;  %v11961_v48 = vsel %vm331_vm0, %v16530_v11, 0.0 }
 0xee7   : > { %v16533_v17 = vadd.f32 %v11892_v9, %v16413_v50  ;;  %v11955_v30 = vsel %vm331_vm0, %v16525_v49, 0.0 }
 0xee8   : > { %11956 = vadd.xlane.f32.xlu1 %v11955_v30  ;;  %v11964_v44 = vsel %vm331_vm0, %v16538_v13, 0.0 }
 0xee9   : > { %v11958_v12 = vsel %vm331_vm0, %v16533_v17, 0.0 }
 0xeea   : > { %11959 = vadd.xlane.f32.xlu0 %v11958_v12 }
 0xeec   : > { %11962 = vadd.xlane.f32.xlu1 %v11961_v48 }
 0xeee   : > { %11965 = vadd.xlane.f32.xlu0 %v11964_v44 }
 0xf5c   : > { %v11927_v50 = vpop.xlane.xlu1 %11926 }
 0xf5d   : > { %v11969_v19 = vmul.f32 0.03125, %v11927_v50 }
 0xf5e   : > { %v11930_v47 = vpop.xlane.xlu0 %11929 }
 0xf5f   : > { %v16547_v26 = vsub.f32 %v16453_v52, %v11969_v19  ;;  %v11970_v39 = vmul.f32 0.03125, %v11930_v47 }
 0xf60   : > { %v11921_v21 = vpop.xlane.xlu1 %11920 }
 0xf61   : > { %v16550_v58 = vsub.f32 %v16461_v28, %v11970_v39  ;;  %v11967_v54 = vmul.f32 0.03125, %v11921_v21  ;;  %v12001_v3 = vmul.f32 %v16547_v26, %v16547_v26 }
 0xf62   : > { %v11924_v43 = vpop.xlane.xlu0 %11923 }
 0xf63   : > { %v16555_v14 = vsub.f32 %v16458_v7, %v11967_v54  ;;  %v11968_v61 = vmul.f32 0.03125, %v11924_v43  ;;  %v12021_v59 = vsel %vm331_vm0, %v12001_v3, 0.0  ;;  %v12002_v52 = vmul.f32 %v16550_v58, %v16550_v58 }
 0xf64   : > { %v11939_v35 = vpop.xlane.xlu1 %11938  ;;  %12022 = vadd.xlane.f32.xlu1 %v12021_v59 }
 0xf65   : > { %v16561_v20 = vsub.f32 %v16466_v40, %v11968_v61  ;;  %v11973_v28 = vmul.f32 0.03125, %v11939_v35  ;;  %v12024_v62 = vsel %vm331_vm0, %v12002_v52, 0.0  ;;  %v11999_v10 = vmul.f32 %v16555_v14, %v16555_v14 }
 0xf66   : > { %12025 = vadd.xlane.f32.xlu0 %v12024_v62  ;;  %v11942_v7 = vpop.xlane.xlu0 %11941 }
 0xf67   : > { %v16567_v25 = vsub.f32 %v16475_v22, %v11973_v28  ;;  %v11974_v32 = vmul.f32 0.03125, %v11942_v7  ;;  %v12015_v1 = vsel %vm331_vm0, %v11999_v10, 0.0  ;;  %v12000_v57 = vmul.f32 %v16561_v20, %v16561_v20 }
 0xf68   : > { %v11933_v53 = vpop.xlane.xlu1 %11932  ;;  %12016 = vadd.xlane.f32.xlu1 %v12015_v1 }
 0xf69   : > { %v16573_v40 = vsub.f32 %v16485_v8, %v11974_v32  ;;  %v11971_v46 = vmul.f32 0.03125, %v11933_v53  ;;  %v12018_v41 = vsel %vm331_vm0, %v12000_v57, 0.0  ;;  %v12005_v27 = vmul.f32 %v16567_v25, %v16567_v25 }
 0xf6a   : > { %12019 = vadd.xlane.f32.xlu0 %v12018_v41  ;;  %v11936_v22 = vpop.xlane.xlu0 %11935 }
 0xf6b   : > { %v16579_v60 = vsub.f32 %v16482_v63, %v11971_v46  ;;  %v11972_v5 = vmul.f32 0.03125, %v11936_v22  ;;  %v12033_v51 = vsel %vm331_vm0, %v12005_v27, 0.0  ;;  %v12006_v16 = vmul.f32 %v16573_v40, %v16573_v40 }
 0xf6c   : > { %v11951_v55 = vpop.xlane.xlu1 %11950  ;;  %12034 = vadd.xlane.f32.xlu1 %v12033_v51 }
 0xf6d   : > { %v16585_v8 = vsub.f32 %v16490_v2, %v11972_v5  ;;  %v11977_v34 = vmul.f32 0.03125, %v11951_v55  ;;  %v12036_v23 = vsel %vm331_vm0, %v12006_v16, 0.0  ;;  %v12003_v42 = vmul.f32 %v16579_v60, %v16579_v60 }
 0xf6e   : > { %12037 = vadd.xlane.f32.xlu0 %v12036_v23  ;;  %v11954_v63 = vpop.xlane.xlu0 %11953 }
 0xf6f   : > { %v16591_v31 = vsub.f32 %v16499_v38, %v11977_v34  ;;  %v11978_v24 = vmul.f32 0.03125, %v11954_v63  ;;  %v12027_v37 = vsel %vm331_vm0, %v12003_v42, 0.0  ;;  %v12004_v6 = vmul.f32 %v16585_v8, %v16585_v8 }
 0xf70   : > { %v11945_v18 = vpop.xlane.xlu1 %11944  ;;  %12028 = vadd.xlane.f32.xlu1 %v12027_v37 }
 0xf71   : > { %v16597_v2 = vsub.f32 %v16509_v33, %v11978_v24  ;;  %v11975_v0 = vmul.f32 0.03125, %v11945_v18  ;;  %v12030_v15 = vsel %vm331_vm0, %v12004_v6, 0.0  ;;  %v12009_v56 = vmul.f32 %v16591_v31, %v16591_v31 }
 0xf72   : > { %12031 = vadd.xlane.f32.xlu0 %v12030_v15  ;;  %v11948_v38 = vpop.xlane.xlu0 %11947  ;;  %v12129_v24 = vsub.s32 3, %v16310_v36 }
 0xf73   : > { %v16603_v9 = vsub.f32 %v16506_v45, %v11975_v0  ;;  %v11976_v30 = vmul.f32 0.03125, %v11948_v38  ;;  %v12045_v12 = vsel %vm331_vm0, %v12009_v56, 0.0  ;;  %v12010_v48 = vmul.f32 %v16597_v2, %v16597_v2 }
 0xf74   : > { %12046 = vadd.xlane.f32.xlu1 %v12045_v12  ;;  %v12149_v0 = vsub.s32 4, %v16310_v36 }
 0xf75   : > { %v16609_v33 = vsub.f32 %v16514_v29, %v11976_v30  ;;  %v11957_v44 = vpop.xlane.xlu1 %11956  ;;  %v12048_v50 = vsel %vm331_vm0, %v12010_v48, 0.0  ;;  %v12007_v19 = vmul.f32 %v16603_v9, %v16603_v9  ;;  %v16645_v30 = vrot.slane %v16316_v4, %v12129_v24 }
 0xf76   : > { %v11979_v47 = vmul.f32 0.03125, %v11957_v44  ;;  %12049 = vadd.xlane.f32.xlu0 %v12048_v50 }
 0xf77   : > { %v11960_v45 = vpop.xlane.xlu0 %11959  ;;  %v12039_v39 = vsel %vm331_vm0, %v12007_v19, 0.0  ;;  %v12008_v21 = vmul.f32 %v16609_v33, %v16609_v33  ;;  %v16648_v19 = vrot.slane %v16316_v4, %v12149_v0 }
 0xf78   : > { %v16618_v54 = vsub.f32 %v16525_v49, %v11979_v47  ;;  %v11980_v3 = vmul.f32 0.03125, %v11960_v45  ;;  %12040 = vadd.xlane.f32.xlu1 %v12039_v39 }
 0xf79   : > { %v11963_v29 = vpop.xlane.xlu1 %11962  ;;  %v12042_v43 = vsel %vm331_vm0, %v12008_v21, 0.0 }
 0xf7a   : > { %v16622_v61 = vsub.f32 %v16533_v17, %v11980_v3  ;;  %v11981_v59 = vmul.f32 0.03125, %v11963_v29  ;;  %12043 = vadd.xlane.f32.xlu0 %v12042_v43  ;;  %v12011_v52 = vmul.f32 %v16618_v54, %v16618_v54 }
 0xf7b   : > { %v11966_v35 = vpop.xlane.xlu0 %11965 }
 0xf7c   : > { %v16627_v28 = vsub.f32 %v16530_v11, %v11981_v59  ;;  %v11982_v62 = vmul.f32 0.03125, %v11966_v35  ;;  %v12051_v49 = vsel %vm331_vm0, %v12011_v52, 0.0  ;;  %v12012_v10 = vmul.f32 %v16622_v61, %v16622_v61 }
 0xf7d   : > { %12052 = vadd.xlane.f32.xlu1 %v12051_v49 }
 0xf7e   : > { %v16633_v7 = vsub.f32 %v16538_v13, %v11982_v62  ;;  %v12054_v17 = vsel %vm331_vm0, %v12012_v10, 0.0  ;;  %v12013_v32 = vmul.f32 %v16627_v28, %v16627_v28 }
 0xf7f   : > { %12055 = vadd.xlane.f32.xlu0 %v12054_v17 }
 0xf80   : > { %v12057_v1 = vsel %vm331_vm0, %v12013_v32, 0.0  ;;  %v12014_v11 = vmul.f32 %v16633_v7, %v16633_v7 }
 0xf81   : > { %12058 = vadd.xlane.f32.xlu1 %v12057_v1 }
 0xf82   : > { %v12060_v57 = vsel %vm331_vm0, %v12014_v11, 0.0 }
 0xf83   : > { %12061 = vadd.xlane.f32.xlu0 %v12060_v57 }
 0xff1   : > { %v12023_v53 = vpop.xlane.xlu1 %12022 }
 0xff2   : > { %v12065_v46 = vmul.f32 0.03125, %v12023_v53 }
 0xff3   : > { %v12026_v41 = vpop.xlane.xlu0 %12025 }
 0xff4   : > { %v12081_v13 = vadd.f32 1e-05, %v12065_v46  ;;  %v12066_v27 = vmul.f32 0.03125, %v12026_v41 }
 0xff5   : > { %v12017_v22 = vpop.xlane.xlu1 %12016 }
 0xff6   : > { %13788 = vrsqrt.f32 %v12081_v13  ;;  %v12082_v5 = vadd.f32 1e-05, %v12066_v27  ;;  %v12063_v51 = vmul.f32 0.03125, %v12017_v22 }
 0xff7   : > { %v12020_v16 = vpop.xlane.xlu0 %12019 }
 0xff8   : > { %13790 = vrsqrt.f32 %v12082_v5  ;;  %v12079_v55 = vadd.f32 1e-05, %v12063_v51  ;;  %v12064_v34 = vmul.f32 0.03125, %v12020_v16 }
 0xff9   : > { %v12035_v23 = vpop.xlane.xlu1 %12034 }
 0xffa   : > { %13792 = vrsqrt.f32 %v12079_v55  ;;  %v12080_v42 = vadd.f32 1e-05, %v12064_v34  ;;  %v12069_v63 = vmul.f32 0.03125, %v12035_v23 }
 0xffb   : > { %v12038_v37 = vpop.xlane.xlu0 %12037 }
 0xffc   : > { %13794 = vrsqrt.f32 %v12080_v42  ;;  %v12085_v6 = vadd.f32 1e-05, %v12069_v63  ;;  %v12070_v18 = vmul.f32 0.03125, %v12038_v37 }
 0xffd   : > { %v12029_v15 = vpop.xlane.xlu1 %12028 }
 0xffe   : > { %13796 = vrsqrt.f32 %v12085_v6  ;;  %v12086_v56 = vadd.f32 1e-05, %v12070_v18  ;;  %v12067_v38 = vmul.f32 0.03125, %v12029_v15 }
 0xfff   : > { %v12032_v12 = vpop.xlane.xlu0 %12031 }
0x1000   : > { %v13789_v48 = vpop.eup %13788  ;;  %13798 = vrsqrt.f32 %v12086_v56  ;;  %v12083_v44 = vadd.f32 1e-05, %v12067_v38  ;;  %v12068_v50 = vmul.f32 0.03125, %v12032_v12 }
0x1001   : > { %v12113_v47 = vmul.f32 %v13789_v48, %v16547_v26  ;;  %v12047_v45 = vpop.xlane.xlu1 %12046 }
0x1002   : > { %v13791_v36 = vpop.eup %13790  ;;  %13800 = vrsqrt.f32 %v12083_v44  ;;  %v12084_v39 = vadd.f32 1e-05, %v12068_v50  ;;  %v12073_v21 = vmul.f32 0.03125, %v12047_v45 }
0x1003   : > { %v12133_v3 = vmul.f32 %v16645_v30, %v12113_v47  ;;  %v12114_v29 = vmul.f32 %v13791_v36, %v16550_v58  ;;  %v12050_v43 = vpop.xlane.xlu0 %12049 }
0x1004   : > { %v13793_v59 = vpop.eup %13792  ;;  %13802 = vrsqrt.f32 %v12084_v39  ;;  %v12089_v4 = vadd.f32 1e-05, %v12073_v21  ;;  %v12074_v26 = vmul.f32 0.03125, %v12050_v43 }
0x1005   : > { %v12153_v52 = vadd.f32 %v16648_v19, %v12133_v3  ;;  %v12134_v35 = vmul.f32 %v16645_v30, %v12114_v29  ;;  %v12111_v62 = vmul.f32 %v13793_v59, %v16555_v14  ;;  %v12041_v58 = vpop.xlane.xlu1 %12040 }
0x1006   : > { %v13795_v49 = vpop.eup %13794  ;;  %13804 = vrsqrt.f32 %v12089_v4  ;;  %v12090_v10 = vadd.f32 1e-05, %v12074_v26  ;;  %v12071_v17 = vmul.f32 0.03125, %v12041_v58 }
0x1007   : > { %12169 = vst.msk [vmem:[%s16658_s27 + $0x10] sm:$0xff] %vm331_vm0, %v12153_v52  ;;  %v12154_v32 = vadd.f32 %v16648_v19, %v12134_v35  ;;  %v12131_v1 = vmul.f32 %v16645_v30, %v12111_v62  ;;  %v12112_v11 = vmul.f32 %v13795_v49, %v16561_v20  ;;  %v12044_v57 = vpop.xlane.xlu0 %12043 }
0x1008   : > { %v13797_v53 = vpop.eup %13796  ;;  %13806 = vrsqrt.f32 %v12090_v10  ;;  %v12087_v46 = vadd.f32 1e-05, %v12071_v17  ;;  %v12072_v41 = vmul.f32 0.03125, %v12044_v57 }
0x1009   : > { %12170 = vst.msk [vmem:[%s16658_s27 + $0x18] sm:$0xff] %vm331_vm0, %v12154_v32  ;;  %v12151_v14 = vadd.f32 %v16648_v19, %v12131_v1  ;;  %v12132_v13 = vmul.f32 %v16645_v30, %v12112_v11  ;;  %v12117_v27 = vmul.f32 %v13797_v53, %v16567_v25 }
0x100a   : > { %v13799_v22 = vpop.eup %13798  ;;  %13808 = vrsqrt.f32 %v12087_v46  ;;  %v12088_v5 = vadd.f32 1e-05, %v12072_v41  ;;  %v12053_v51 = vpop.xlane.xlu1 %12052 }
0x100b   : > { %12167 = vst.msk [vmem:[%s16658_s27] sm:$0xff] %vm331_vm0, %v12151_v14  ;;  %v12152_v20 = vadd.f32 %v16648_v19, %v12132_v13  ;;  %v12137_v16 = vmul.f32 %v16645_v30, %v12117_v27  ;;  %v12118_v55 = vmul.f32 %v13799_v22, %v16573_v40  ;;  %v12075_v34 = vmul.f32 0.03125, %v12053_v51 }
0x100c   : > { %v13801_v23 = vpop.eup %13800  ;;  %13810 = vrsqrt.f32 %v12088_v5  ;;  %v12056_v42 = vpop.xlane.xlu0 %12055 }
0x100d   : > { %12168 = vst.msk [vmem:[%s16658_s27 + $0x8] sm:$0xff] %vm331_vm0, %v12152_v20  ;;  %v12157_v25 = vadd.f32 %v16648_v19, %v12137_v16  ;;  %v12138_v63 = vmul.f32 %v16645_v30, %v12118_v55  ;;  %v12115_v24 = vmul.f32 %v13801_v23, %v16579_v60  ;;  %v12091_v37 = vadd.f32 1e-05, %v12075_v34 }
0x100e   : > { %v13803_v6 = vpop.eup %13802  ;;  %v12076_v18 = vmul.f32 0.03125, %v12056_v42  ;;  %v12059_v0 = vpop.xlane.xlu1 %12058 }
0x100f   : > { %12173 = vst.msk [vmem:[%s16658_s27 + $0x30] sm:$0xff] %vm331_vm0, %v12157_v25  ;;  %v12158_v40 = vadd.f32 %v16648_v19, %v12138_v63  ;;  %v12135_v15 = vmul.f32 %v16645_v30, %v12115_v24  ;;  %v12116_v56 = vmul.f32 %v13803_v6, %v16585_v8  ;;  %13812 = vrsqrt.f32 %v12091_v37 }
0x1010   : > { %v13805_v38 = vpop.eup %13804  ;;  %v12092_v12 = vadd.f32 1e-05, %v12076_v18  ;;  %v12077_v48 = vmul.f32 0.03125, %v12059_v0  ;;  %v12062_v44 = vpop.xlane.xlu0 %12061 }
0x1011   : > { %12174 = vst.msk [vmem:[%s16658_s27 + $0x38] sm:$0xff] %vm331_vm0, %v12158_v40  ;;  %v12155_v60 = vadd.f32 %v16648_v19, %v12135_v15  ;;  %v12136_v50 = vmul.f32 %v16645_v30, %v12116_v56  ;;  %v12121_v47 = vmul.f32 %v13805_v38, %v16591_v31  ;;  %v12078_v45 = vmul.f32 0.03125, %v12062_v44 }
0x1012   : > { %v13807_v36 = vpop.eup %13806  ;;  %13814 = vrsqrt.f32 %v12092_v12  ;;  %v12093_v39 = vadd.f32 1e-05, %v12077_v48 }
0x1013   : > { %12171 = vst.msk [vmem:[%s16658_s27 + $0x20] sm:$0xff] %vm331_vm0, %v12155_v60  ;;  %v12156_v8 = vadd.f32 %v16648_v19, %v12136_v50  ;;  %v12141_v21 = vmul.f32 %v16645_v30, %v12121_v47  ;;  %v12122_v3 = vmul.f32 %v13807_v36, %v16597_v2  ;;  %v12094_v29 = vadd.f32 1e-05, %v12078_v45 }
0x1014   : > { %v13809_v43 = vpop.eup %13808  ;;  %13816 = vrsqrt.f32 %v12093_v39 }
0x1015   : > { %12172 = vst.msk [vmem:[%s16658_s27 + $0x28] sm:$0xff] %vm331_vm0, %v12156_v8  ;;  %v12161_v31 = vadd.f32 %v16648_v19, %v12141_v21  ;;  %v12142_v59 = vmul.f32 %v16645_v30, %v12122_v3  ;;  %v12119_v4 = vmul.f32 %v13809_v43, %v16603_v9  ;;  %13818 = vrsqrt.f32 %v12094_v29 }
0x1016   : > { %v13811_v26 = vpop.eup %13810 }
0x1017   : > { %12177 = vst.msk [vmem:[%s16658_s27 + $0x50] sm:$0xff] %vm331_vm0, %v12161_v31  ;;  %v12162_v52 = vadd.f32 %v16648_v19, %v12142_v59  ;;  %v12139_v2 = vmul.f32 %v16645_v30, %v12119_v4  ;;  %v12120_v35 = vmul.f32 %v13811_v26, %v16609_v33 }
0x1019   : > { %v13813_v62 = vpop.eup %13812  ;;  %12178 = vst.msk [vmem:[%s16658_s27 + $0x58] sm:$0xff] %vm331_vm0, %v12162_v52  ;;  %v12159_v58 = vadd.f32 %v16648_v19, %v12139_v2  ;;  %v12140_v49 = vmul.f32 %v16645_v30, %v12120_v35 }
0x101a   : > { %v12123_v9 = vmul.f32 %v13813_v62, %v16618_v54 }
0x101b   : > { %12175 = vst.msk [vmem:[%s16658_s27 + $0x40] sm:$0xff] %vm331_vm0, %v12159_v58  ;;  %v12160_v10 = vadd.f32 %v16648_v19, %v12140_v49 }
0x101c   : > { %v13815_v17 = vpop.eup %13814  ;;  %v12143_v32 = vmul.f32 %v16645_v30, %v12123_v9 }
0x101d   : > { %12176 = vst.msk [vmem:[%s16658_s27 + $0x48] sm:$0xff] %vm331_vm0, %v12160_v10  ;;  %v12124_v33 = vmul.f32 %v13815_v17, %v16622_v61 }
0x101e   : > { %v13817_v1 = vpop.eup %13816  ;;  %v12163_v11 = vadd.f32 %v16648_v19, %v12143_v32 }
0x101f   : > { %v13819_v57 = vpop.eup %13818  ;;  %v12144_v54 = vmul.f32 %v16645_v30, %v12124_v33  ;;  %v12125_v53 = vmul.f32 %v13817_v1, %v16627_v28 }
0x1020   : > { %12179 = vst.msk [vmem:[%s16658_s27 + $0x60] sm:$0xff] %vm331_vm0, %v12163_v11  ;;  %v12126_v46 = vmul.f32 %v13819_v57, %v16633_v7 }
0x1021   : > { %v12164_v41 = vadd.f32 %v16648_v19, %v12144_v54  ;;  %v12145_v14 = vmul.f32 %v16645_v30, %v12125_v53 }
0x1022   : > { %v12146_v13 = vmul.f32 %v16645_v30, %v12126_v46 }
0x1023   : > { %12180 = vst.msk [vmem:[%s16658_s27 + $0x68] sm:$0xff] %vm331_vm0, %v12164_v41  ;;  %v12165_v61 = vadd.f32 %v16648_v19, %v12145_v14 }
0x1024   : > { %v12166_v27 = vadd.f32 %v16648_v19, %v12146_v13 }
0x1025   : > { %12181 = vst.msk [vmem:[%s16658_s27 + $0x70] sm:$0xff] %vm331_vm0, %v12165_v61 }
0x1026   : > { %12182 = vst.msk [vmem:[%s16658_s27 + $0x78] sm:$0xff] %vm331_vm0, %v12166_v27 }
0x1027 PF: > { %s17_s24 = sadd.s32 1, %s13842_s24  }
0x1028   : > { %p14_p4 = scmp.ge.s32.totalorder %s17_s24, 4  }
0x102a   :  { %16 = sbr.rel (!%p14_p4) target bundleno = 1 (0x1), region = 78 }

</bundles_post_ra>
